<compile_context>
chip_gen: v7x
topology: tpu7x:2x2x1
jax: 0.10.0
libtpu: 0.0.40
codegen_flags: <defaults>
</compile_context>

<pallas_src>
import jax
import jax.numpy as jnp
from jax.experimental import pallas as pl
from jax.experimental.pallas import tpu as pltpu

LN_EPS = 1e-5


def _layernorm(h, gamma, beta):
    m = jnp.mean(h, axis=-1, keepdims=True)
    v = jnp.mean((h - m) ** 2, axis=-1, keepdims=True)
    return (h - m) * jax.lax.rsqrt(v + LN_EPS) * gamma + beta


def encoder_kernel(
    # inputs ---------------------------------------------------------------
    x_ref, eps_ref,
    gi_gw_sig_ref,                    # sigmoid(global_weights), precomputed (1, G) f32
    gi_ln1_g_ref, gi_ln1_b_ref,
    gi_w1_ref, gi_b1_ref,             # gi_w1 in bf16
    gi_ln2_g_ref, gi_ln2_b_ref,
    gi_w2_ref, gi_b2_ref,             # gi_w2 in bf16
    e0_w_ref, e0_b_ref, e0_g_ref, e0_beta_ref,      # e0_w in bf16
    e1_w_ref, e1_b_ref, e1_g_ref, e1_beta_ref,      # e1_w in bf16
    head_w_ref, head_b_ref,           # fused [mu | logvar] head, bf16 weight
    # outputs --------------------------------------------------------------
    mu_out_ref, lv_out_ref, z_out_ref,
):
    L = eps_ref.shape[-1]
    x = x_ref[...].astype(jnp.float32)

    def bf16_dot(a_f32, w_ref):
        # bf16 operands on the MXU, f32 accumulation.
        return jnp.dot(a_f32.astype(jnp.bfloat16), w_ref[...],
                       preferred_element_type=jnp.float32)

    # ---- GeneImportanceModule ----
    h = _layernorm(x, gi_ln1_g_ref[...], gi_ln1_b_ref[...])
    h = bf16_dot(h, gi_w1_ref) + gi_b1_ref[...]
    h = _layernorm(h, gi_ln2_g_ref[...], gi_ln2_b_ref[...])
    h = jnp.maximum(h, 0.0)
    ctx = jax.nn.sigmoid(bf16_dot(h, gi_w2_ref) + gi_b2_ref[...])
    importance = gi_gw_sig_ref[...] * ctx         # (1, G) broadcast over batch
    embedded = x + x * importance                 # Encoder.preprocess: x + gene_importance(x)

    # ---- encoder MLP: (Linear -> LayerNorm -> ReLU) x 2 ----
    h = bf16_dot(embedded, e0_w_ref) + e0_b_ref[...]
    h = _layernorm(h, e0_g_ref[...], e0_beta_ref[...])
    h = jnp.maximum(h, 0.0)

    h = bf16_dot(h, e1_w_ref) + e1_b_ref[...]
    h = _layernorm(h, e1_g_ref[...], e1_beta_ref[...])
    h = jnp.maximum(h, 0.0)

    # ---- fused mu/logvar head (single N = 2*L matmul) ----
    head = bf16_dot(h, head_w_ref) + head_b_ref[...]
    mu = jnp.clip(head[:, :L], -20.0, 20.0)
    lv = jnp.clip(head[:, L:], -20.0, 20.0)

    # ---- reparameterize ----
    lv_r = jnp.clip(lv, -20.0, 2.0)
    std = jnp.exp(0.5 * lv_r)
    z = mu + eps_ref[...].astype(jnp.float32) * std

    mu_out_ref[...] = mu
    lv_out_ref[...] = lv
    z_out_ref[...] = z


def pack_params(params):
    """Wrapper-side packing: fuse heads, precompute sigmoid(gw), cast weights to bf16."""
    packed = {
        "gi_gw_sig": jax.nn.sigmoid(params["gi_gw"]).astype(jnp.float32),
        "gi_ln1_g": params["gi_ln1_g"], "gi_ln1_b": params["gi_ln1_b"],
        "gi_w1": params["gi_w1"].astype(jnp.bfloat16), "gi_b1": params["gi_b1"],
        "gi_ln2_g": params["gi_ln2_g"], "gi_ln2_b": params["gi_ln2_b"],
        "gi_w2": params["gi_w2"].astype(jnp.bfloat16), "gi_b2": params["gi_b2"],
        "e0_w": params["e0_w"].astype(jnp.bfloat16), "e0_b": params["e0_b"],
        "e0_g": params["e0_g"], "e0_beta": params["e0_beta"],
        "e1_w": params["e1_w"].astype(jnp.bfloat16), "e1_b": params["e1_b"],
        "e1_g": params["e1_g"], "e1_beta": params["e1_beta"],
        # fused [mu | logvar] head -> one (h1, 2*L) matmul in-kernel
        "head_w": jnp.concatenate([params["mu_w"], params["lv_w"]], axis=1).astype(jnp.bfloat16),
        "head_b": jnp.concatenate([params["mu_b"], params["lv_b"]], axis=1),
    }
    return packed


PARAM_ORDER = [
    "gi_gw_sig",
    "gi_ln1_g", "gi_ln1_b",
    "gi_w1", "gi_b1",
    "gi_ln2_g", "gi_ln2_b",
    "gi_w2", "gi_b2",
    "e0_w", "e0_b", "e0_g", "e0_beta",
    "e1_w", "e1_b", "e1_g", "e1_beta",
    "head_w", "head_b",
]


def encoder_forward(x, eps, packed_params, *, tile_b=128):
    """x: (B, n_genes) f32, eps: (B, n_latent) f32, packed_params: from pack_params()."""
    B, G = x.shape
    L = eps.shape[-1]
    tile_b = min(tile_b, B)
    assert B % tile_b == 0 and tile_b % 8 == 0, "batch tile must divide B and be a multiple of 8"

    def row_spec(cols):
        # per-grid-step batch tile
        return pl.BlockSpec((tile_b, cols), lambda i: (i, 0))

    def full_spec(shape):
        # parameters: same (whole) block for every grid step
        return pl.BlockSpec(shape, lambda i: (0,) * len(shape))

    param_arrays = [packed_params[k] for k in PARAM_ORDER]

    in_specs = [row_spec(G), row_spec(L)] + [full_spec(p.shape) for p in param_arrays]
    out_specs = [row_spec(L), row_spec(L), row_spec(L)]
    out_shape = [jax.ShapeDtypeStruct((B, L), jnp.float32)] * 3

    f = pl.pallas_call(
        encoder_kernel,
        out_shape=out_shape,
        grid_spec=pltpu.PrefetchScalarGridSpec(
            num_scalar_prefetch=0,
            grid=(B // tile_b,),
            in_specs=in_specs,
            out_specs=out_specs,
        ),
        compiler_params=pltpu.CompilerParams(
            dimension_semantics=("parallel",),
            vmem_limit_bytes=32 * 1024 * 1024,  # re-derive per generation for large n_genes
        ),
    )
    mu, logvar, z = f(x, eps, *param_arrays)
    return {"mu": mu, "logvar": logvar, "z": z}


def init_params(key, n_genes, n_ctx_hidden, hidden_dims, n_latent):
    """Deterministic synthetic init (matches the module's parameter shapes), all f32."""
    ks = jax.random.split(key, 8)

    def dense(k, d_in, d_out):
        scale = 1.0 / jnp.sqrt(d_in)
        w = jax.random.uniform(k, (d_in, d_out), jnp.float32, -scale, scale)
        b = jnp.zeros((1, d_out), jnp.float32)
        return w, b

    h0, h1 = hidden_dims
    gi_w1, gi_b1 = dense(ks[0], n_genes, n_ctx_hidden)
    gi_w2, gi_b2 = dense(ks[1], n_ctx_hidden, n_genes)
    e0_w, e0_b = dense(ks[2], n_genes, h0)
    e1_w, e1_b = dense(ks[3], h0, h1)
    mu_w, mu_b = dense(ks[4], h1, n_latent)
    lv_w, lv_b = dense(ks[5], h1, n_latent)

    return {
        # GeneImportanceModule
        "gi_gw": jnp.ones((1, n_genes), jnp.float32),        # nn.Parameter(torch.ones(n_genes))
        "gi_ln1_g": jnp.ones((1, n_genes), jnp.float32),
        "gi_ln1_b": jnp.zeros((1, n_genes), jnp.float32),
        "gi_w1": gi_w1, "gi_b1": gi_b1,
        "gi_ln2_g": jnp.ones((1, n_ctx_hidden), jnp.float32),
        "gi_ln2_b": jnp.zeros((1, n_ctx_hidden), jnp.float32),
        "gi_w2": gi_w2, "gi_b2": gi_b2,
        # encoder layer 0
        "e0_w": e0_w, "e0_b": e0_b,
        "e0_g": jnp.ones((1, h0), jnp.float32),
        "e0_beta": jnp.zeros((1, h0), jnp.float32),
        # encoder layer 1
        "e1_w": e1_w, "e1_b": e1_b,
        "e1_g": jnp.ones((1, h1), jnp.float32),
        "e1_beta": jnp.zeros((1, h1), jnp.float32),
        # heads
        "mu_w": mu_w, "mu_b": mu_b,
        "lv_w": lv_w, "lv_b": lv_b,
    }


if __name__ == "__main__":
    # Small-ish shapes consistent with the module's forward; batch chosen so the
    # grid has >= 2 parallel steps (both v7x TensorCores get work) with tile_b=128.
    B = 256            # batch
    TILE_B = 128
    N_GENES = 256
    N_CTX_HIDDEN = 128
    HIDDEN_DIMS = [256, 128]
    N_LATENT = 128

    key = jax.random.PRNGKey(0)
    k_x, k_eps, k_p = jax.random.split(key, 3)

    x = jax.random.normal(k_x, (B, N_GENES), jnp.float32)
    eps = jax.random.normal(k_eps, (B, N_LATENT), jnp.float32)  # reparameterization noise
    params = init_params(k_p, N_GENES, N_CTX_HIDDEN, HIDDEN_DIMS, N_LATENT)
    packed = pack_params(params)

    out = encoder_forward(x, eps, packed, tile_b=TILE_B)
    jax.block_until_ready(out)

    assert out["mu"].shape == (B, N_LATENT)
    assert out["logvar"].shape == (B, N_LATENT)
    assert out["z"].shape == (B, N_LATENT)
    assert all(jnp.all(jnp.isfinite(v)) for v in out.values())
    print("KERNEL_OK")
</pallas_src>

<mosaic_0001>
module attributes {stable_mosaic.version = 11 : i64} {
  func.func @encoder_kernel(%arg0: i32, %arg1: memref<128x256xf32, #tpu.memory_space<vmem>>, %arg2: memref<128x128xf32, #tpu.memory_space<vmem>>, %arg3: memref<1x256xf32, #tpu.memory_space<vmem>>, %arg4: memref<1x256xf32, #tpu.memory_space<vmem>>, %arg5: memref<1x256xf32, #tpu.memory_space<vmem>>, %arg6: memref<256x128xbf16, #tpu.memory_space<vmem>>, %arg7: memref<1x128xf32, #tpu.memory_space<vmem>>, %arg8: memref<1x128xf32, #tpu.memory_space<vmem>>, %arg9: memref<1x128xf32, #tpu.memory_space<vmem>>, %arg10: memref<128x256xbf16, #tpu.memory_space<vmem>>, %arg11: memref<1x256xf32, #tpu.memory_space<vmem>>, %arg12: memref<256x256xbf16, #tpu.memory_space<vmem>>, %arg13: memref<1x256xf32, #tpu.memory_space<vmem>>, %arg14: memref<1x256xf32, #tpu.memory_space<vmem>>, %arg15: memref<1x256xf32, #tpu.memory_space<vmem>>, %arg16: memref<256x128xbf16, #tpu.memory_space<vmem>>, %arg17: memref<1x128xf32, #tpu.memory_space<vmem>>, %arg18: memref<1x128xf32, #tpu.memory_space<vmem>>, %arg19: memref<1x128xf32, #tpu.memory_space<vmem>>, %arg20: memref<128x256xbf16, #tpu.memory_space<vmem>>, %arg21: memref<1x256xf32, #tpu.memory_space<vmem>>, %arg22: memref<128x128xf32, #tpu.memory_space<vmem>>, %arg23: memref<128x128xf32, #tpu.memory_space<vmem>>, %arg24: memref<128x128xf32, #tpu.memory_space<vmem>>) attributes {dimension_semantics = [#tpu.dimension_semantics<parallel>], iteration_bounds = array<i64: 2>, scalar_prefetch = 0 : i64, scratch_operands = 0 : i64, tpu.core_type = #tpu.core_type<tc>, window_params = [{transform_indices = @transform_0, window_bounds = array<i64: 128, 256>}, {transform_indices = @transform_1, window_bounds = array<i64: 128, 128>}, {pipeline_mode = #tpu.pipeline_mode<synchronous>, transform_indices = @transform_2, window_bounds = array<i64: 1, 256>}, {pipeline_mode = #tpu.pipeline_mode<synchronous>, transform_indices = @transform_3, window_bounds = array<i64: 1, 256>}, {pipeline_mode = #tpu.pipeline_mode<synchronous>, transform_indices = @transform_4, window_bounds = array<i64: 1, 256>}, {pipeline_mode = #tpu.pipeline_mode<synchronous>, transform_indices = @transform_5, window_bounds = array<i64: 256, 128>}, {pipeline_mode = #tpu.pipeline_mode<synchronous>, transform_indices = @transform_6, window_bounds = array<i64: 1, 128>}, {pipeline_mode = #tpu.pipeline_mode<synchronous>, transform_indices = @transform_7, window_bounds = array<i64: 1, 128>}, {pipeline_mode = #tpu.pipeline_mode<synchronous>, transform_indices = @transform_8, window_bounds = array<i64: 1, 128>}, {pipeline_mode = #tpu.pipeline_mode<synchronous>, transform_indices = @transform_9, window_bounds = array<i64: 128, 256>}, {pipeline_mode = #tpu.pipeline_mode<synchronous>, transform_indices = @transform_10, window_bounds = array<i64: 1, 256>}, {pipeline_mode = #tpu.pipeline_mode<synchronous>, transform_indices = @transform_11, window_bounds = array<i64: 256, 256>}, {pipeline_mode = #tpu.pipeline_mode<synchronous>, transform_indices = @transform_12, window_bounds = array<i64: 1, 256>}, {pipeline_mode = #tpu.pipeline_mode<synchronous>, transform_indices = @transform_13, window_bounds = array<i64: 1, 256>}, {pipeline_mode = #tpu.pipeline_mode<synchronous>, transform_indices = @transform_14, window_bounds = array<i64: 1, 256>}, {pipeline_mode = #tpu.pipeline_mode<synchronous>, transform_indices = @transform_15, window_bounds = array<i64: 256, 128>}, {pipeline_mode = #tpu.pipeline_mode<synchronous>, transform_indices = @transform_16, window_bounds = array<i64: 1, 128>}, {pipeline_mode = #tpu.pipeline_mode<synchronous>, transform_indices = @transform_17, window_bounds = array<i64: 1, 128>}, {pipeline_mode = #tpu.pipeline_mode<synchronous>, transform_indices = @transform_18, window_bounds = array<i64: 1, 128>}, {pipeline_mode = #tpu.pipeline_mode<synchronous>, transform_indices = @transform_19, window_bounds = array<i64: 128, 256>}, {pipeline_mode = #tpu.pipeline_mode<synchronous>, transform_indices = @transform_20, window_bounds = array<i64: 1, 256>}, {transform_indices = @transform_21, window_bounds = array<i64: 128, 128>}, {transform_indices = @transform_22, window_bounds = array<i64: 128, 128>}, {transform_indices = @transform_23, window_bounds = array<i64: 128, 128>}]} {
    %c0 = arith.constant 0 : index
    %c0_0 = arith.constant 0 : index
    %0 = vector.load %arg1[%c0, %c0_0] : memref<128x256xf32, #tpu.memory_space<vmem>>, vector<128x256xf32>
    %c0_1 = arith.constant 0 : index
    %c0_2 = arith.constant 0 : index
    %1 = vector.load %arg4[%c0_1, %c0_2] : memref<1x256xf32, #tpu.memory_space<vmem>>, vector<1x256xf32>
    %c0_3 = arith.constant 0 : index
    %c0_4 = arith.constant 0 : index
    %2 = vector.load %arg5[%c0_3, %c0_4] : memref<1x256xf32, #tpu.memory_space<vmem>>, vector<1x256xf32>
    %cst = arith.constant dense<0.000000e+00> : vector<128xf32>
    %3 = vector.multi_reduction <add>, %0, %cst [1] : vector<128x256xf32> to vector<128xf32>
    %4 = vector.shape_cast %3 : vector<128xf32> to vector<128x1xf32>
    %cst_5 = arith.constant 2.560000e+02 : f32
    %5 = vector.broadcast %cst_5 : f32 to vector<128x1xf32>
    %6 = arith.divf %4, %5 : vector<128x1xf32>
    %7 = vector.broadcast %6 : vector<128x1xf32> to vector<128x256xf32>
    %8 = arith.subf %0, %7 : vector<128x256xf32>
    %9 = arith.mulf %8, %8 : vector<128x256xf32>
    %cst_6 = arith.constant dense<0.000000e+00> : vector<128xf32>
    %10 = vector.multi_reduction <add>, %9, %cst_6 [1] : vector<128x256xf32> to vector<128xf32>
    %11 = vector.shape_cast %10 : vector<128xf32> to vector<128x1xf32>
    %cst_7 = arith.constant 2.560000e+02 : f32
    %12 = vector.broadcast %cst_7 : f32 to vector<128x1xf32>
    %13 = arith.divf %11, %12 : vector<128x1xf32>
    %14 = vector.broadcast %6 : vector<128x1xf32> to vector<128x256xf32>
    %15 = arith.subf %0, %14 : vector<128x256xf32>
    %cst_8 = arith.constant 9.99999974E-6 : f32
    %16 = vector.broadcast %cst_8 : f32 to vector<128x1xf32>
    %17 = arith.addf %13, %16 : vector<128x1xf32>
    %18 = math.rsqrt %17 : vector<128x1xf32>
    %19 = vector.broadcast %18 : vector<128x1xf32> to vector<128x256xf32>
    %20 = arith.mulf %15, %19 : vector<128x256xf32>
    %21 = vector.broadcast %1 : vector<1x256xf32> to vector<128x256xf32>
    %22 = arith.mulf %20, %21 : vector<128x256xf32>
    %23 = vector.broadcast %2 : vector<1x256xf32> to vector<128x256xf32>
    %24 = arith.addf %22, %23 : vector<128x256xf32>
    %25 = arith.truncf %24 : vector<128x256xf32> to vector<128x256xbf16>
    %c0_9 = arith.constant 0 : index
    %c0_10 = arith.constant 0 : index
    %26 = vector.load %arg6[%c0_9, %c0_10] : memref<256x128xbf16, #tpu.memory_space<vmem>>, vector<256x128xbf16>
    %cst_11 = arith.constant dense<0.000000e+00> : vector<128x128xf32>
    %27 = tpu.matmul %25, %26, %cst_11 {dimension_numbers = #tpu.dot_dimension_numbers<[1], [0], [0], [1], [0, 0, 1, 1], [], []>} : vector<128x256xbf16>, vector<256x128xbf16>, vector<128x128xf32> -> vector<128x128xf32>
    %c0_12 = arith.constant 0 : index
    %c0_13 = arith.constant 0 : index
    %28 = vector.load %arg7[%c0_12, %c0_13] : memref<1x128xf32, #tpu.memory_space<vmem>>, vector<1x128xf32>
    %29 = vector.broadcast %28 : vector<1x128xf32> to vector<128x128xf32>
    %30 = arith.addf %27, %29 : vector<128x128xf32>
    %c0_14 = arith.constant 0 : index
    %c0_15 = arith.constant 0 : index
    %31 = vector.load %arg8[%c0_14, %c0_15] : memref<1x128xf32, #tpu.memory_space<vmem>>, vector<1x128xf32>
    %c0_16 = arith.constant 0 : index
    %c0_17 = arith.constant 0 : index
    %32 = vector.load %arg9[%c0_16, %c0_17] : memref<1x128xf32, #tpu.memory_space<vmem>>, vector<1x128xf32>
    %cst_18 = arith.constant dense<0.000000e+00> : vector<128xf32>
    %33 = vector.multi_reduction <add>, %30, %cst_18 [1] : vector<128x128xf32> to vector<128xf32>
    %34 = vector.shape_cast %33 : vector<128xf32> to vector<128x1xf32>
    %cst_19 = arith.constant 1.280000e+02 : f32
    %35 = vector.broadcast %cst_19 : f32 to vector<128x1xf32>
    %36 = arith.divf %34, %35 : vector<128x1xf32>
    %37 = vector.broadcast %36 : vector<128x1xf32> to vector<128x128xf32>
    %38 = arith.subf %30, %37 : vector<128x128xf32>
    %39 = arith.mulf %38, %38 : vector<128x128xf32>
    %cst_20 = arith.constant dense<0.000000e+00> : vector<128xf32>
    %40 = vector.multi_reduction <add>, %39, %cst_20 [1] : vector<128x128xf32> to vector<128xf32>
    %41 = vector.shape_cast %40 : vector<128xf32> to vector<128x1xf32>
    %cst_21 = arith.constant 1.280000e+02 : f32
    %42 = vector.broadcast %cst_21 : f32 to vector<128x1xf32>
    %43 = arith.divf %41, %42 : vector<128x1xf32>
    %44 = vector.broadcast %36 : vector<128x1xf32> to vector<128x128xf32>
    %45 = arith.subf %30, %44 : vector<128x128xf32>
    %cst_22 = arith.constant 9.99999974E-6 : f32
    %46 = vector.broadcast %cst_22 : f32 to vector<128x1xf32>
    %47 = arith.addf %43, %46 : vector<128x1xf32>
    %48 = math.rsqrt %47 : vector<128x1xf32>
    %49 = vector.broadcast %48 : vector<128x1xf32> to vector<128x128xf32>
    %50 = arith.mulf %45, %49 : vector<128x128xf32>
    %51 = vector.broadcast %31 : vector<1x128xf32> to vector<128x128xf32>
    %52 = arith.mulf %50, %51 : vector<128x128xf32>
    %53 = vector.broadcast %32 : vector<1x128xf32> to vector<128x128xf32>
    %54 = arith.addf %52, %53 : vector<128x128xf32>
    %cst_23 = arith.constant 0.000000e+00 : f32
    %55 = vector.broadcast %cst_23 : f32 to vector<128x128xf32>
    %56 = arith.maximumf %54, %55 : vector<128x128xf32>
    %57 = arith.truncf %56 : vector<128x128xf32> to vector<128x128xbf16>
    %c0_24 = arith.constant 0 : index
    %c0_25 = arith.constant 0 : index
    %58 = vector.load %arg10[%c0_24, %c0_25] : memref<128x256xbf16, #tpu.memory_space<vmem>>, vector<128x256xbf16>
    %cst_26 = arith.constant dense<0.000000e+00> : vector<128x256xf32>
    %59 = tpu.matmul %57, %58, %cst_26 {dimension_numbers = #tpu.dot_dimension_numbers<[1], [0], [0], [1], [0, 0, 1, 1], [], []>} : vector<128x128xbf16>, vector<128x256xbf16>, vector<128x256xf32> -> vector<128x256xf32>
    %c0_27 = arith.constant 0 : index
    %c0_28 = arith.constant 0 : index
    %60 = vector.load %arg11[%c0_27, %c0_28] : memref<1x256xf32, #tpu.memory_space<vmem>>, vector<1x256xf32>
    %61 = vector.broadcast %60 : vector<1x256xf32> to vector<128x256xf32>
    %62 = arith.addf %59, %61 : vector<128x256xf32>
    %63 = arith.negf %62 : vector<128x256xf32>
    %64 = math.exp %63 : vector<128x256xf32>
    %cst_29 = arith.constant 1.000000e+00 : f32
    %65 = vector.broadcast %cst_29 : f32 to vector<128x256xf32>
    %66 = arith.addf %65, %64 : vector<128x256xf32>
    %67 = arith.divf %65, %66 : vector<128x256xf32>
    %c0_30 = arith.constant 0 : index
    %c0_31 = arith.constant 0 : index
    %68 = vector.load %arg3[%c0_30, %c0_31] : memref<1x256xf32, #tpu.memory_space<vmem>>, vector<1x256xf32>
    %69 = vector.broadcast %68 : vector<1x256xf32> to vector<128x256xf32>
    %70 = arith.mulf %69, %67 : vector<128x256xf32>
    %71 = arith.mulf %0, %70 : vector<128x256xf32>
    %72 = arith.addf %0, %71 : vector<128x256xf32>
    %73 = arith.truncf %72 : vector<128x256xf32> to vector<128x256xbf16>
    %c0_32 = arith.constant 0 : index
    %c0_33 = arith.constant 0 : index
    %74 = vector.load %arg12[%c0_32, %c0_33] : memref<256x256xbf16, #tpu.memory_space<vmem>>, vector<256x256xbf16>
    %cst_34 = arith.constant dense<0.000000e+00> : vector<128x256xf32>
    %75 = tpu.matmul %73, %74, %cst_34 {dimension_numbers = #tpu.dot_dimension_numbers<[1], [0], [0], [1], [0, 0, 1, 1], [], []>} : vector<128x256xbf16>, vector<256x256xbf16>, vector<128x256xf32> -> vector<128x256xf32>
    %c0_35 = arith.constant 0 : index
    %c0_36 = arith.constant 0 : index
    %76 = vector.load %arg13[%c0_35, %c0_36] : memref<1x256xf32, #tpu.memory_space<vmem>>, vector<1x256xf32>
    %77 = vector.broadcast %76 : vector<1x256xf32> to vector<128x256xf32>
    %78 = arith.addf %75, %77 : vector<128x256xf32>
    %c0_37 = arith.constant 0 : index
    %c0_38 = arith.constant 0 : index
    %79 = vector.load %arg14[%c0_37, %c0_38] : memref<1x256xf32, #tpu.memory_space<vmem>>, vector<1x256xf32>
    %c0_39 = arith.constant 0 : index
    %c0_40 = arith.constant 0 : index
    %80 = vector.load %arg15[%c0_39, %c0_40] : memref<1x256xf32, #tpu.memory_space<vmem>>, vector<1x256xf32>
    %cst_41 = arith.constant dense<0.000000e+00> : vector<128xf32>
    %81 = vector.multi_reduction <add>, %78, %cst_41 [1] : vector<128x256xf32> to vector<128xf32>
    %82 = vector.shape_cast %81 : vector<128xf32> to vector<128x1xf32>
    %cst_42 = arith.constant 2.560000e+02 : f32
    %83 = vector.broadcast %cst_42 : f32 to vector<128x1xf32>
    %84 = arith.divf %82, %83 : vector<128x1xf32>
    %85 = vector.broadcast %84 : vector<128x1xf32> to vector<128x256xf32>
    %86 = arith.subf %78, %85 : vector<128x256xf32>
    %87 = arith.mulf %86, %86 : vector<128x256xf32>
    %cst_43 = arith.constant dense<0.000000e+00> : vector<128xf32>
    %88 = vector.multi_reduction <add>, %87, %cst_43 [1] : vector<128x256xf32> to vector<128xf32>
    %89 = vector.shape_cast %88 : vector<128xf32> to vector<128x1xf32>
    %cst_44 = arith.constant 2.560000e+02 : f32
    %90 = vector.broadcast %cst_44 : f32 to vector<128x1xf32>
    %91 = arith.divf %89, %90 : vector<128x1xf32>
    %92 = vector.broadcast %84 : vector<128x1xf32> to vector<128x256xf32>
    %93 = arith.subf %78, %92 : vector<128x256xf32>
    %cst_45 = arith.constant 9.99999974E-6 : f32
    %94 = vector.broadcast %cst_45 : f32 to vector<128x1xf32>
    %95 = arith.addf %91, %94 : vector<128x1xf32>
    %96 = math.rsqrt %95 : vector<128x1xf32>
    %97 = vector.broadcast %96 : vector<128x1xf32> to vector<128x256xf32>
    %98 = arith.mulf %93, %97 : vector<128x256xf32>
    %99 = vector.broadcast %79 : vector<1x256xf32> to vector<128x256xf32>
    %100 = arith.mulf %98, %99 : vector<128x256xf32>
    %101 = vector.broadcast %80 : vector<1x256xf32> to vector<128x256xf32>
    %102 = arith.addf %100, %101 : vector<128x256xf32>
    %cst_46 = arith.constant 0.000000e+00 : f32
    %103 = vector.broadcast %cst_46 : f32 to vector<128x256xf32>
    %104 = arith.maximumf %102, %103 : vector<128x256xf32>
    %105 = arith.truncf %104 : vector<128x256xf32> to vector<128x256xbf16>
    %c0_47 = arith.constant 0 : index
    %c0_48 = arith.constant 0 : index
    %106 = vector.load %arg16[%c0_47, %c0_48] : memref<256x128xbf16, #tpu.memory_space<vmem>>, vector<256x128xbf16>
    %cst_49 = arith.constant dense<0.000000e+00> : vector<128x128xf32>
    %107 = tpu.matmul %105, %106, %cst_49 {dimension_numbers = #tpu.dot_dimension_numbers<[1], [0], [0], [1], [0, 0, 1, 1], [], []>} : vector<128x256xbf16>, vector<256x128xbf16>, vector<128x128xf32> -> vector<128x128xf32>
    %c0_50 = arith.constant 0 : index
    %c0_51 = arith.constant 0 : index
    %108 = vector.load %arg17[%c0_50, %c0_51] : memref<1x128xf32, #tpu.memory_space<vmem>>, vector<1x128xf32>
    %109 = vector.broadcast %108 : vector<1x128xf32> to vector<128x128xf32>
    %110 = arith.addf %107, %109 : vector<128x128xf32>
    %c0_52 = arith.constant 0 : index
    %c0_53 = arith.constant 0 : index
    %111 = vector.load %arg18[%c0_52, %c0_53] : memref<1x128xf32, #tpu.memory_space<vmem>>, vector<1x128xf32>
    %c0_54 = arith.constant 0 : index
    %c0_55 = arith.constant 0 : index
    %112 = vector.load %arg19[%c0_54, %c0_55] : memref<1x128xf32, #tpu.memory_space<vmem>>, vector<1x128xf32>
    %cst_56 = arith.constant dense<0.000000e+00> : vector<128xf32>
    %113 = vector.multi_reduction <add>, %110, %cst_56 [1] : vector<128x128xf32> to vector<128xf32>
    %114 = vector.shape_cast %113 : vector<128xf32> to vector<128x1xf32>
    %cst_57 = arith.constant 1.280000e+02 : f32
    %115 = vector.broadcast %cst_57 : f32 to vector<128x1xf32>
    %116 = arith.divf %114, %115 : vector<128x1xf32>
    %117 = vector.broadcast %116 : vector<128x1xf32> to vector<128x128xf32>
    %118 = arith.subf %110, %117 : vector<128x128xf32>
    %119 = arith.mulf %118, %118 : vector<128x128xf32>
    %cst_58 = arith.constant dense<0.000000e+00> : vector<128xf32>
    %120 = vector.multi_reduction <add>, %119, %cst_58 [1] : vector<128x128xf32> to vector<128xf32>
    %121 = vector.shape_cast %120 : vector<128xf32> to vector<128x1xf32>
    %cst_59 = arith.constant 1.280000e+02 : f32
    %122 = vector.broadcast %cst_59 : f32 to vector<128x1xf32>
    %123 = arith.divf %121, %122 : vector<128x1xf32>
    %124 = vector.broadcast %116 : vector<128x1xf32> to vector<128x128xf32>
    %125 = arith.subf %110, %124 : vector<128x128xf32>
    %cst_60 = arith.constant 9.99999974E-6 : f32
    %126 = vector.broadcast %cst_60 : f32 to vector<128x1xf32>
    %127 = arith.addf %123, %126 : vector<128x1xf32>
    %128 = math.rsqrt %127 : vector<128x1xf32>
    %129 = vector.broadcast %128 : vector<128x1xf32> to vector<128x128xf32>
    %130 = arith.mulf %125, %129 : vector<128x128xf32>
    %131 = vector.broadcast %111 : vector<1x128xf32> to vector<128x128xf32>
    %132 = arith.mulf %130, %131 : vector<128x128xf32>
    %133 = vector.broadcast %112 : vector<1x128xf32> to vector<128x128xf32>
    %134 = arith.addf %132, %133 : vector<128x128xf32>
    %cst_61 = arith.constant 0.000000e+00 : f32
    %135 = vector.broadcast %cst_61 : f32 to vector<128x128xf32>
    %136 = arith.maximumf %134, %135 : vector<128x128xf32>
    %137 = arith.truncf %136 : vector<128x128xf32> to vector<128x128xbf16>
    %c0_62 = arith.constant 0 : index
    %c0_63 = arith.constant 0 : index
    %138 = vector.load %arg20[%c0_62, %c0_63] : memref<128x256xbf16, #tpu.memory_space<vmem>>, vector<128x256xbf16>
    %cst_64 = arith.constant dense<0.000000e+00> : vector<128x256xf32>
    %139 = tpu.matmul %137, %138, %cst_64 {dimension_numbers = #tpu.dot_dimension_numbers<[1], [0], [0], [1], [0, 0, 1, 1], [], []>} : vector<128x128xbf16>, vector<128x256xbf16>, vector<128x256xf32> -> vector<128x256xf32>
    %c0_65 = arith.constant 0 : index
    %c0_66 = arith.constant 0 : index
    %140 = vector.load %arg21[%c0_65, %c0_66] : memref<1x256xf32, #tpu.memory_space<vmem>>, vector<1x256xf32>
    %141 = vector.broadcast %140 : vector<1x256xf32> to vector<128x256xf32>
    %142 = arith.addf %139, %141 : vector<128x256xf32>
    %143 = vector.extract_strided_slice %142 {offsets = [0, 0], sizes = [128, 128], strides = [1, 1]} : vector<128x256xf32> to vector<128x128xf32>
    %cst_67 = arith.constant -2.000000e+01 : f32
    %cst_68 = arith.constant 2.000000e+01 : f32
    %144 = vector.broadcast %cst_67 : f32 to vector<128x128xf32>
    %145 = arith.maximumf %144, %143 : vector<128x128xf32>
    %146 = vector.broadcast %cst_68 : f32 to vector<128x128xf32>
    %147 = arith.minimumf %146, %145 : vector<128x128xf32>
    %148 = vector.extract_strided_slice %142 {offsets = [0, 128], sizes = [128, 128], strides = [1, 1]} : vector<128x256xf32> to vector<128x128xf32>
    %cst_69 = arith.constant -2.000000e+01 : f32
    %cst_70 = arith.constant 2.000000e+01 : f32
    %149 = vector.broadcast %cst_69 : f32 to vector<128x128xf32>
    %150 = arith.maximumf %149, %148 : vector<128x128xf32>
    %151 = vector.broadcast %cst_70 : f32 to vector<128x128xf32>
    %152 = arith.minimumf %151, %150 : vector<128x128xf32>
    %cst_71 = arith.constant -2.000000e+01 : f32
    %cst_72 = arith.constant 2.000000e+00 : f32
    %153 = vector.broadcast %cst_71 : f32 to vector<128x128xf32>
    %154 = arith.maximumf %153, %152 : vector<128x128xf32>
    %155 = vector.broadcast %cst_72 : f32 to vector<128x128xf32>
    %156 = arith.minimumf %155, %154 : vector<128x128xf32>
    %cst_73 = arith.constant 5.000000e-01 : f32
    %157 = vector.broadcast %cst_73 : f32 to vector<128x128xf32>
    %158 = arith.mulf %157, %156 : vector<128x128xf32>
    %159 = math.exp %158 : vector<128x128xf32>
    %c0_74 = arith.constant 0 : index
    %c0_75 = arith.constant 0 : index
    %160 = vector.load %arg2[%c0_74, %c0_75] : memref<128x128xf32, #tpu.memory_space<vmem>>, vector<128x128xf32>
    %161 = arith.mulf %160, %159 : vector<128x128xf32>
    %162 = arith.addf %147, %161 : vector<128x128xf32>
    %c0_76 = arith.constant 0 : index
    %c0_77 = arith.constant 0 : index
    %163 = vector.load %arg22[%c0_76, %c0_77] : memref<128x128xf32, #tpu.memory_space<vmem>>, vector<128x128xf32>
    tpu.vector_store %arg22[%c0_76, %c0_77], %147 {strides = array<i32>} : memref<128x128xf32, #tpu.memory_space<vmem>>, vector<128x128xf32>,
    %c0_78 = arith.constant 0 : index
    %c0_79 = arith.constant 0 : index
    %164 = vector.load %arg23[%c0_78, %c0_79] : memref<128x128xf32, #tpu.memory_space<vmem>>, vector<128x128xf32>
    tpu.vector_store %arg23[%c0_78, %c0_79], %152 {strides = array<i32>} : memref<128x128xf32, #tpu.memory_space<vmem>>, vector<128x128xf32>,
    %c0_80 = arith.constant 0 : index
    %c0_81 = arith.constant 0 : index
    %165 = vector.load %arg24[%c0_80, %c0_81] : memref<128x128xf32, #tpu.memory_space<vmem>>, vector<128x128xf32>
    tpu.vector_store %arg24[%c0_80, %c0_81], %162 {strides = array<i32>} : memref<128x128xf32, #tpu.memory_space<vmem>>, vector<128x128xf32>,
    return
  }
  func.func @transform_0(%arg0: i32) -> (i32, i32) {
    %c0_i32 = arith.constant 0 : i32
    %c0_i32_0 = arith.constant 0 : i32
    return %arg0, %c0_i32 : i32, i32
  }
  func.func @transform_1(%arg0: i32) -> (i32, i32) {
    %c0_i32 = arith.constant 0 : i32
    %c0_i32_0 = arith.constant 0 : i32
    return %arg0, %c0_i32 : i32, i32
  }
  func.func @transform_2(%arg0: i32) -> (i32, i32) {
    %c0_i32 = arith.constant 0 : i32
    %c0_i32_0 = arith.constant 0 : i32
    %c0_i32_1 = arith.constant 0 : i32
    return %c0_i32, %c0_i32_0 : i32, i32
  }
  func.func @transform_3(%arg0: i32) -> (i32, i32) {
    %c0_i32 = arith.constant 0 : i32
    %c0_i32_0 = arith.constant 0 : i32
    %c0_i32_1 = arith.constant 0 : i32
    return %c0_i32, %c0_i32_0 : i32, i32
  }
  func.func @transform_4(%arg0: i32) -> (i32, i32) {
    %c0_i32 = arith.constant 0 : i32
    %c0_i32_0 = arith.constant 0 : i32
    %c0_i32_1 = arith.constant 0 : i32
    return %c0_i32, %c0_i32_0 : i32, i32
  }
  func.func @transform_5(%arg0: i32) -> (i32, i32) {
    %c0_i32 = arith.constant 0 : i32
    %c0_i32_0 = arith.constant 0 : i32
    %c0_i32_1 = arith.constant 0 : i32
    return %c0_i32, %c0_i32_0 : i32, i32
  }
  func.func @transform_6(%arg0: i32) -> (i32, i32) {
    %c0_i32 = arith.constant 0 : i32
    %c0_i32_0 = arith.constant 0 : i32
    %c0_i32_1 = arith.constant 0 : i32
    return %c0_i32, %c0_i32_0 : i32, i32
  }
  func.func @transform_7(%arg0: i32) -> (i32, i32) {
    %c0_i32 = arith.constant 0 : i32
    %c0_i32_0 = arith.constant 0 : i32
    %c0_i32_1 = arith.constant 0 : i32
    return %c0_i32, %c0_i32_0 : i32, i32
  }
  func.func @transform_8(%arg0: i32) -> (i32, i32) {
    %c0_i32 = arith.constant 0 : i32
    %c0_i32_0 = arith.constant 0 : i32
    %c0_i32_1 = arith.constant 0 : i32
    return %c0_i32, %c0_i32_0 : i32, i32
  }
  func.func @transform_9(%arg0: i32) -> (i32, i32) {
    %c0_i32 = arith.constant 0 : i32
    %c0_i32_0 = arith.constant 0 : i32
    %c0_i32_1 = arith.constant 0 : i32
    return %c0_i32, %c0_i32_0 : i32, i32
  }
  func.func @transform_10(%arg0: i32) -> (i32, i32) {
    %c0_i32 = arith.constant 0 : i32
    %c0_i32_0 = arith.constant 0 : i32
    %c0_i32_1 = arith.constant 0 : i32
    return %c0_i32, %c0_i32_0 : i32, i32
  }
  func.func @transform_11(%arg0: i32) -> (i32, i32) {
    %c0_i32 = arith.constant 0 : i32
    %c0_i32_0 = arith.constant 0 : i32
    %c0_i32_1 = arith.constant 0 : i32
    return %c0_i32, %c0_i32_0 : i32, i32
  }
  func.func @transform_12(%arg0: i32) -> (i32, i32) {
    %c0_i32 = arith.constant 0 : i32
    %c0_i32_0 = arith.constant 0 : i32
    %c0_i32_1 = arith.constant 0 : i32
    return %c0_i32, %c0_i32_0 : i32, i32
  }
  func.func @transform_13(%arg0: i32) -> (i32, i32) {
    %c0_i32 = arith.constant 0 : i32
    %c0_i32_0 = arith.constant 0 : i32
    %c0_i32_1 = arith.constant 0 : i32
    return %c0_i32, %c0_i32_0 : i32, i32
  }
  func.func @transform_14(%arg0: i32) -> (i32, i32) {
    %c0_i32 = arith.constant 0 : i32
    %c0_i32_0 = arith.constant 0 : i32
    %c0_i32_1 = arith.constant 0 : i32
    return %c0_i32, %c0_i32_0 : i32, i32
  }
  func.func @transform_15(%arg0: i32) -> (i32, i32) {
    %c0_i32 = arith.constant 0 : i32
    %c0_i32_0 = arith.constant 0 : i32
    %c0_i32_1 = arith.constant 0 : i32
    return %c0_i32, %c0_i32_0 : i32, i32
  }
  func.func @transform_16(%arg0: i32) -> (i32, i32) {
    %c0_i32 = arith.constant 0 : i32
    %c0_i32_0 = arith.constant 0 : i32
    %c0_i32_1 = arith.constant 0 : i32
    return %c0_i32, %c0_i32_0 : i32, i32
  }
  func.func @transform_17(%arg0: i32) -> (i32, i32) {
    %c0_i32 = arith.constant 0 : i32
    %c0_i32_0 = arith.constant 0 : i32
    %c0_i32_1 = arith.constant 0 : i32
    return %c0_i32, %c0_i32_0 : i32, i32
  }
  func.func @transform_18(%arg0: i32) -> (i32, i32) {
    %c0_i32 = arith.constant 0 : i32
    %c0_i32_0 = arith.constant 0 : i32
    %c0_i32_1 = arith.constant 0 : i32
    return %c0_i32, %c0_i32_0 : i32, i32
  }
  func.func @transform_19(%arg0: i32) -> (i32, i32) {
    %c0_i32 = arith.constant 0 : i32
    %c0_i32_0 = arith.constant 0 : i32
    %c0_i32_1 = arith.constant 0 : i32
    return %c0_i32, %c0_i32_0 : i32, i32
  }
  func.func @transform_20(%arg0: i32) -> (i32, i32) {
    %c0_i32 = arith.constant 0 : i32
    %c0_i32_0 = arith.constant 0 : i32
    %c0_i32_1 = arith.constant 0 : i32
    return %c0_i32, %c0_i32_0 : i32, i32
  }
  func.func @transform_21(%arg0: i32) -> (i32, i32) {
    %c0_i32 = arith.constant 0 : i32
    %c0_i32_0 = arith.constant 0 : i32
    return %arg0, %c0_i32 : i32, i32
  }
  func.func @transform_22(%arg0: i32) -> (i32, i32) {
    %c0_i32 = arith.constant 0 : i32
    %c0_i32_0 = arith.constant 0 : i32
    return %arg0, %c0_i32 : i32, i32
  }
  func.func @transform_23(%arg0: i32) -> (i32, i32) {
    %c0_i32 = arith.constant 0 : i32
    %c0_i32_0 = arith.constant 0 : i32
    return %arg0, %c0_i32 : i32, i32
  }
}

</mosaic_0001>

<bundles_post_ra>
// kernel: tpu_custom_call.1
= control target key start
LH: loop header
LB: loop body
LE: loop exit
PB: predicated region body
PF: predicated region fallthrough
CT: control target
= control target key end

     0   :  { %s7683_s0 = inlined_call_operand.hbm [shape: f32[256,256], index: 0, kind: input, shape index: {}]   ;;  %s7684_s1 = inlined_call_operand.hbm [shape: f32[256,128], index: 1, kind: input, shape index: {}]   ;;  %s7685_s2 = inlined_call_operand.vmem [shape: f32[1,256], index: 2, kind: input, shape index: {}]   ;;  %s7686_s3 = inlined_call_operand.vmem [shape: f32[1,256], index: 3, kind: input, shape index: {}]   ;;  %s7687_s4 = inlined_call_operand.vmem [shape: f32[1,256], index: 4, kind: input, shape index: {}]   ;;  %s7688_s5 = inlined_call_operand.hbm [shape: bf16[256,128], index: 5, kind: input, shape index: {}]   ;;  %s7689_s6 = inlined_call_operand.vmem [shape: f32[1,128], index: 6, kind: input, shape index: {}]   ;;  %s7690_s7 = inlined_call_operand.vmem [shape: f32[1,128], index: 7, kind: input, shape index: {}]   ;;  %s7691_s8 = inlined_call_operand.vmem [shape: f32[1,128], index: 8, kind: input, shape index: {}]   ;;  %s7692_s9 = inlined_call_operand.hbm [shape: bf16[128,256], index: 9, kind: input, shape index: {}]   ;;  %s7693_s10 = inlined_call_operand.vmem [shape: f32[1,256], index: 10, kind: input, shape index: {}]   ;;  %s7694_s11 = inlined_call_operand.hbm [shape: bf16[256,256], index: 11, kind: input, shape index: {}]   ;;  %s7695_s12 = inlined_call_operand.vmem [shape: f32[1,256], index: 12, kind: input, shape index: {}]   ;;  %s7696_s13 = inlined_call_operand.vmem [shape: f32[1,256], index: 13, kind: input, shape index: {}]   ;;  %s7697_s14 = inlined_call_operand.vmem [shape: f32[1,256], index: 14, kind: input, shape index: {}]   ;;  %s7698_s15 = inlined_call_operand.hbm [shape: bf16[256,128], index: 15, kind: input, shape index: {}]   ;;  %s7699_s16 = inlined_call_operand.vmem [shape: f32[1,128], index: 16, kind: input, shape index: {}]   ;;  %s7700_s17 = inlined_call_operand.vmem [shape: f32[1,128], index: 17, kind: input, shape index: {}]   ;;  %s7701_s18 = inlined_call_operand.vmem [shape: f32[1,128], index: 18, kind: input, shape index: {}]   ;;  %s7702_s19 = inlined_call_operand.hbm [shape: bf16[128,256], index: 19, kind: input, shape index: {}]   ;;  %s7703_s20 = inlined_call_operand.vmem [shape: f32[1,256], index: 20, kind: input, shape index: {}]   ;;  %s7704_s21 = inlined_call_operand.hbm [shape: f32[256,128], index: 21, kind: output, shape index: {0}]   ;;  %s7705_s22 = inlined_call_operand.hbm [shape: f32[256,128], index: 22, kind: output, shape index: {1}]   ;;  %s7706_s23 = inlined_call_operand.hbm [shape: f32[256,128], index: 23, kind: output, shape index: {2}]  }
   0x1   :  { %7728 = sst [smem:[#allocation29_spill]] %s7683_s0 }
   0x2   :  { %7729 = sst [smem:[#allocation30_spill]] %s7684_s1 }
   0x3   :  { %7730 = sst [smem:[#allocation31_spill]] %s7685_s2 }
   0x4   :  { %7731 = sst [smem:[#allocation32_spill]] %s7686_s3 }
   0x5   :  { %7732 = sst [smem:[#allocation33_spill]] %s7687_s4 }
   0x6   :  { %7733 = sst [smem:[#allocation34_spill]] %s7688_s5 }
   0x7   :  { %7734 = sst [smem:[#allocation35_spill]] %s7689_s6 }
   0x8   :  { %7735 = sst [smem:[#allocation36_spill]] %s7690_s7 }
   0x9   :  { %7736 = sst [smem:[#allocation37_spill]] %s7692_s9 }
   0xa   :  { %7737 = sst [smem:[#allocation38_spill]] %s7694_s11 }
   0xb   :  { %7738 = sst [smem:[#allocation39_spill]] %s7697_s14 }
   0xc   :  { %7739 = sst [smem:[#allocation40_spill]] %s7698_s15 }
   0xd   :  { %7740 = sst [smem:[#allocation41_spill]] %s7699_s16 }
   0xe   :  { %7741 = sst [smem:[#allocation42_spill]] %s7700_s17 }
   0xf   :  { %7742 = sst [smem:[#allocation43_spill]] %s7701_s18 }
  0x10   :  { %7743 = sst [smem:[#allocation44_spill]] %s7702_s19 }
  0x11   :  { %7744 = sst [smem:[#allocation45_spill]] %s7703_s20 }
  0x12   :  { %7745 = sst [smem:[#allocation46_spill]] %s7704_s21 }
  0x13   :  { %7746 = sst [smem:[#allocation47_spill]] %s7705_s22 }
  0x14   :  { %7747 = sst [smem:[#allocation48_spill]] %s7706_s23 }
  0x15   :  { %29 = vsyncpa [#allocation3], 0 }
  0x16   :  { %31 = vsyncpa [#allocation3 + $0x1], 0 }
  0x17   :  { %32 = vsyncpa [#allocation6], 0 }
  0x18   :  { %34 = vsyncpa [#allocation6 + $0x1], 0 }
  0x19   :  { %35 = vsyncpa [#allocation9], 0 }
  0x1a   :  { %36 = vsyncpa [#allocation12], 0 }
  0x1b   :  { %37 = vsyncpa [#allocation4], 0 }
  0x1c   :  { %39 = vsyncpa [#allocation4 + $0x1], 0 }
  0x1d   :  { %40 = vsyncpa [#allocation16], 0 }
  0x1e   :  { %42 = vsyncpa [#allocation16 + $0x1], 0  ;;  %s5604_s4 = smov 0   ;;  %s5606_s30 = smov 0  }
  0x1f   :  { %s5608_s24 = smov 0   ;;  %s5610_s25 = smov 0  }
  0x20 LB: > { %7748 = sst [smem:[#allocation25_spill]] %s5459_s24  ;;  %s5465_s5 = smov [#allocation7]   ;;  %s5463_s25 = sphi %s5610_s25, %s7796_s25   ;;  %s5459_s24 = sphi %s5608_s24, %s7798_s24   ;;  %s5455_s30 = sphi %s5606_s30, %s7800_s30   ;;  %s5451_s4 = sphi %s5604_s4, %s7799_s4  }
  0x21   : > { %s603_s1 = sshll.u32 %s5465_s5, 4  ;;  %s5625_s26 = sadd.s32 4294967295, %s5463_s25   ;;  %s5630_s1 = int_to_ptr.vmem [resolvable:$true] %s603_s1 }
  0x22   : > { %p4184_p0 = scmp.ge.s32.totalorder %s5463_s25, 1  ;;  %p7714_p1 = scmp.eq.s32.totalorder %s5625_s26, 0 }
  0x23   : > { %p582_p2 = scmp.lt.s32.totalorder %s5463_s25, 3  ;;  %s5466_s6 = smov [#allocation8]  }
  0x24   : > { %s625_s27 = sshll.u32 %s5466_s6, 4  ;;  %s5467_s28 = smov [#allocation11]   ;;  %s5645_s27 = int_to_ptr.vmem [resolvable:$true] %s625_s27 }
  0x25   : > { %p5632_p3 = pnand %p4184_p0, %p582_p2  ;;  %s5647_s29 = sshll.u32 %s5467_s28, 4  ;;  %s664_s29 = int_to_ptr.vmem [resolvable:$true] %s5647_s29 }
  0x26   : > { %s7751_s5 = sld [smem:[#allocation34_spill]] }
  0x27   : > { %s7749_s2 = scalar_select %p5632_p3, 1, 0 }
  0x28   : > { %p4582_p5 = pneg %p5632_p3 }
  0x2a   : > { %p5641_p6 = pnand %p4582_p5, %p7714_p1 }
  0x2c   : > { %s5121_s23 = scalar_lea.hbm %s7751_s5, 2048  ;;  %p5657_p8 = pneg %p5641_p6 }
  0x2d   : > { %p5122_p7 = scmp.ne.s32.totalorder %s7751_s5, %s5121_s23  ;;  %p5128_p11 = scmp.lt.u32.totalorder %s5121_s23, %s7751_s5 }
  0x2f   : > { %p5124_p9 = pnand %p5657_p8, %p5122_p7 }
  0x31   : > { %p5125_p10 = pneg %p5124_p9 }
  0x33   : > { %p5130_p12 = pnand %p5128_p11, %p5125_p10 }
  0x35   : > { %5133 = shalt.err (!%p5130_p12)
}
  0x36   : > { %s5134_s21 = scalar_lea.vmem %s5630_s1, 2048  ;;  %p5142_p5 = scmp.lt.s32.totalorder %s5630_s1, %s5630_s1 }
  0x37   : > { %p5135_p13 = scmp.ne.s32.totalorder %s5630_s1, %s5134_s21  ;;  %p5143_p4 = scmp.lt.s32.totalorder %s5134_s21, %s5134_s21 }
  0x39   : > { %p5137_p0 = pnand %p5135_p13, %p5657_p8  ;;  %p5144_p7 = por %p5143_p4, %p5142_p5 }
  0x3b   : > { %p5138_p2 = pneg %p5137_p0 }
  0x3d   : > { %p5145_p9 = pnand %p5144_p7, %p5138_p2 }
  0x3f   : > { %5148 = shalt.err (!%p5145_p9)
}
  0x40   : > { %s7713_s22 = smov 64   ;;  %s5469_s20 = smov 4  }
  0x41   : > { %4585 = dma.hbm_to_vmem [thread:$0]  (!%p5641_p6), %s7751_s5, 2048, %s5630_s1, [#allocation6], %s7713_s22, %s7713_s22, %s5469_s20  }
  0x42   : > { %s7753_s9 = sld [smem:[#allocation37_spill]] }
  0x48   : > { %s5149_s21 = scalar_lea.hbm %s7753_s9, 2048 }
  0x49   : > { %p5150_p4 = scmp.ne.s32.totalorder %s7753_s9, %s5149_s21  ;;  %p5156_p12 = scmp.lt.u32.totalorder %s5149_s21, %s7753_s9 }
  0x4b   : > { %p5152_p10 = pnand %p5150_p4, %p5657_p8 }
  0x4d   : > { %p5153_p11 = pneg %p5152_p10 }
  0x4f   : > { %p5158_p13 = pnand %p5156_p12, %p5153_p11 }
  0x51   : > { %5161 = shalt.err (!%p5158_p13)
}
  0x52   : > { %s5162_s1 = scalar_lea.vmem %s5645_s27, 2048  ;;  %p5170_p7 = scmp.lt.s32.totalorder %s5645_s27, %s5645_s27 }
  0x53   : > { %p5163_p0 = scmp.ne.s32.totalorder %s5645_s27, %s5162_s1  ;;  %p5171_p9 = scmp.lt.s32.totalorder %s5162_s1, %s5162_s1 }
  0x55   : > { %p5165_p2 = pnand %p5163_p0, %p5657_p8  ;;  %p5172_p4 = por %p5171_p9, %p5170_p7 }
  0x57   : > { %p5166_p5 = pneg %p5165_p2 }
  0x59   : > { %p5173_p10 = pnand %p5172_p4, %p5166_p5 }
  0x5b   : > { %5176 = shalt.err (!%p5173_p10)
}
  0x5c   : > { %s7716_s17 = smov 128   ;;  %s7718_s14 = smov 8  }
  0x5d   : > { %4588 = dma.hbm_to_vmem [thread:$0]  (!%p5641_p6), %s7753_s9, 2048, %s5645_s27, [#allocation9], %s7716_s17, %s7716_s17, %s7718_s14  }
  0x5e   : > { %s7754_s15 = sld [smem:[#allocation40_spill]] }
  0x64   : > { %s5177_s0 = scalar_lea.hbm %s7754_s15, 2048 }
  0x65   : > { %p5178_p11 = scmp.ne.s32.totalorder %s7754_s15, %s5177_s0  ;;  %p5184_p0 = scmp.lt.u32.totalorder %s5177_s0, %s7754_s15 }
  0x67   : > { %p5180_p12 = pnand %p5178_p11, %p5657_p8 }
  0x69   : > { %p5181_p13 = pneg %p5180_p12 }
  0x6b   : > { %p5186_p2 = pnand %p5184_p0, %p5181_p13 }
  0x6d   : > { %5189 = shalt.err (!%p5186_p2)
}
  0x6e   : > { %s5190_s16 = scalar_lea.vmem %s664_s29, 2048  ;;  %p5198_p4 = scmp.lt.s32.totalorder %s664_s29, %s664_s29 }
  0x6f   : > { %p5191_p5 = scmp.ne.s32.totalorder %s664_s29, %s5190_s16  ;;  %p5199_p10 = scmp.lt.s32.totalorder %s5190_s16, %s5190_s16 }
  0x71   : > { %p5193_p7 = pnand %p5191_p5, %p5657_p8  ;;  %p5200_p1 = por %p5199_p10, %p5198_p4 }
  0x73   : > { %p5194_p9 = pneg %p5193_p7 }
  0x75   : > { %p5201_p3 = pnand %p5200_p1, %p5194_p9 }
  0x77   : > { %5204 = shalt.err (!%p5201_p3)
}
  0x78   : > { %s7755_s27 = smov 64   ;;  %s5472_s23 = smov [#allocation10]  }
  0x79   : > { %4594 = dma.hbm_to_vmem [thread:$0]  (!%p5641_p6), %s7754_s15, 2048, %s664_s29, [#allocation12], %s7755_s27, %s7755_s27, %s5469_s20  }
  0x7a   : > { %s641_s3 = sshll.u32 %s5472_s23, 4  ;;  %s5473_s0 = smov [#allocation13]   ;;  %s642_s3 = int_to_ptr.vmem [resolvable:$true] %s641_s3 }
  0x7b   : > { %s685_s28 = sshll.u32 %s5473_s0, 4  ;;  %s7756_s11 = sld [smem:[#allocation38_spill]]  ;;  %s686_s28 = int_to_ptr.vmem [resolvable:$true] %s685_s28 }
  0x81   : > { %s5205_s16 = scalar_lea.hbm %s7756_s11, 4096 }
  0x82   : > { %p5206_p1 = scmp.ne.s32.totalorder %s7756_s11, %s5205_s16  ;;  %p5212_p12 = scmp.lt.u32.totalorder %s5205_s16, %s7756_s11 }
  0x84   : > { %p5208_p3 = pnand %p5206_p1, %p5657_p8 }
  0x86   : > { %p5209_p11 = pneg %p5208_p3 }
  0x88   : > { %p5214_p13 = pnand %p5212_p12, %p5209_p11 }
  0x8a   : > { %5217 = shalt.err (!%p5214_p13)
}
  0x8b   : > { %s5218_s29 = scalar_lea.vmem %s642_s3, 4096  ;;  %p5226_p7 = scmp.lt.s32.totalorder %s642_s3, %s642_s3 }
  0x8c   : > { %p5219_p0 = scmp.ne.s32.totalorder %s642_s3, %s5218_s29  ;;  %p5227_p9 = scmp.lt.s32.totalorder %s5218_s29, %s5218_s29 }
  0x8e   : > { %p5221_p2 = pnand %p5219_p0, %p5657_p8  ;;  %p5228_p4 = por %p5227_p9, %p5226_p7 }
  0x90   : > { %p5222_p5 = pneg %p5221_p2 }
  0x92   : > { %p5229_p10 = pnand %p5228_p4, %p5222_p5 }
  0x94   : > { %5232 = shalt.err (!%p5229_p10)
}
  0x95   : > { %s7757_s20 = smov 8   ;;  %s7758_s17 = smov 128  }
  0x96   : > { %4591 = dma.hbm_to_vmem [thread:$0]  (!%p5641_p6), %s7756_s11, 4096, %s642_s3, [#allocation9], %s7758_s17, %s7758_s17, %s7757_s20  }
  0x97   : > { %s7759_s19 = sld [smem:[#allocation44_spill]] }
  0x9d   : > { %s5233_s23 = scalar_lea.hbm %s7759_s19, 2048 }
  0x9e   : > { %p5234_p1 = scmp.ne.s32.totalorder %s7759_s19, %s5233_s23  ;;  %p5240_p12 = scmp.lt.u32.totalorder %s5233_s23, %s7759_s19 }
  0xa0   : > { %p5236_p3 = pnand %p5234_p1, %p5657_p8 }
  0xa2   : > { %p5237_p11 = pneg %p5236_p3 }
  0xa4   : > { %p5242_p13 = pnand %p5240_p12, %p5237_p11 }
  0xa6   : > { %5245 = shalt.err (!%p5242_p13)
}
  0xa7   : > { %s5246_s22 = scalar_lea.vmem %s686_s28, 2048  ;;  %p5254_p7 = scmp.lt.s32.totalorder %s686_s28, %s686_s28 }
  0xa8   : > { %p5247_p0 = scmp.ne.s32.totalorder %s686_s28, %s5246_s22  ;;  %p5255_p9 = scmp.lt.s32.totalorder %s5246_s22, %s5246_s22 }
  0xaa   : > { %p5249_p2 = pnand %p5247_p0, %p5657_p8  ;;  %p5256_p4 = por %p5255_p9, %p5254_p7 }
  0xac   : > { %p5250_p5 = pneg %p5249_p2 }
  0xae   : > { %p5257_p10 = pnand %p5256_p4, %p5250_p5 }
  0xb0   : > { %5260 = shalt.err (!%p5257_p10)
}
  0xb1   : > { %4597 = dma.hbm_to_vmem [thread:$0]  (!%p5641_p6), %s7759_s19, 2048, %s686_s28, [#allocation12], %s7758_s17, %s7758_s17, %s7757_s20  }
  0xb2   : > { %s7721_s7 = sadd.s32 4294967294, %s5463_s25   ;;  %s5773_s6 = sadd.s32 1, %s5463_s25  }
  0xb3   : > { %7760 = sst [smem:[#allocation26_spill]] %s5773_s6  ;;  %s55_s5 = sadd.s32 1, %s5459_s24 }
  0xb4   : > { %s52_s14 = ssub.s32 %s5463_s25, %s5773_s6  ;;  %p62_p8 = scmp.ne.s32.totalorder %s5459_s24, %s5455_s30 }
  0xb5   : > { %p53_p1 = scmp.eq.s32.totalorder %s52_s14, 0  ;;  %p63_p3 = scmp.eq.s32.totalorder %s5463_s25, 0 }
  0xb6   : > { %p68_p11 = scmp.ne.s32.totalorder %s5455_s30, %s5451_s4  ;;  %p517_p12 = scmp.eq.s32.totalorder %s5625_s26, 1 }
  0xb7   : > { %s5785_s27 = scalar_select %p53_p1, %s5459_s24, %s55_s5  }
  0xb8   : > { %p64_p13 = por %p63_p3, %p62_p8  ;;  %p7762_p0 = scmp.eq.s32.totalorder %s5625_s26, 0 }
  0xb9   : > { %7761 = sst [smem:[#allocation27_spill]] %s5785_s27  ;;  %p5793_p6 = por %p517_p12, %p62_p8 }
  0xba   : > { %p5789_p2 = por %p7762_p0, %p68_p11  ;;  %p523_p5 = scmp.eq.s32.totalorder %s7721_s7, 1 }
  0xbb   : > { %s7764_s28 = scalar_select %p5793_p6, 1, 0 }
  0xbc   : > { %p4620_p7 = scmp.lt.s32.totalorder %s5463_s25, 2  ;;  %s5801_s23 = sand.u32 1, %s5459_s24  }
  0xbd   : > { %p5803_p9 = por %p523_p5, %p68_p11  ;;  %s4191_s21 = sshll.u32 %s5801_s23, 8 }
  0xbe   : > { %s4387_s1 = sshll.u32 %s5463_s25, 12  ;;  %s7767_s3 = sld [smem:[#allocation29_spill]] }
  0xbf   : > { %s7765_s0 = scalar_select %p5803_p9, 1, 0 }
  0xc0   : > { %s706_s5 = scalar_lea.vmem [#allocation2], %s4191_s21  ;;  %p5814_p4 = pnand %p4620_p7, %p64_p13 }
  0xc1   : > { %7766 = sst [smem:[#allocation28_spill]] %s7765_s0  ;;  %s714_s14 = sshll.u32 %s706_s5, 4  ;;  %s5818_s14 = int_to_ptr.vmem [resolvable:$true] %s714_s14 }
  0xc2   : > { %p5263_p8 = pneg %p5814_p4 }
  0xc4   : > { %s5812_s29 = scalar_lea.hbm %s7767_s3, %s4387_s1  ;;  %s5266_s16 = scalar_lea.hbm %s7767_s3, 8192 }
  0xc5   : > { %s5261_s11 = scalar_lea.hbm %s5812_s29, 4096  ;;  %p5267_p11 = scmp.lt.u32.totalorder %s5812_s29, %s7767_s3 }
  0xc6   : > { %p5262_p10 = scmp.ne.s32.totalorder %s5812_s29, %s5261_s11  ;;  %p5268_p12 = scmp.lt.u32.totalorder %s5266_s16, %s5261_s11 }
  0xc7   : > { %p5270_p0 = scmp.lt.u32.totalorder %s5261_s11, %s5812_s29 }
  0xc8   : > { %p5264_p1 = pnand %p5263_p8, %p5262_p10  ;;  %p5269_p13 = por %p5268_p12, %p5267_p11 }
  0xca   : > { %p5265_p3 = pneg %p5264_p1  ;;  %p5271_p5 = por %p5270_p0, %p5269_p13 }
  0xcc   : > { %p5272_p7 = pnand %p5271_p5, %p5265_p3 }
  0xce   : > { %5275 = shalt.err (!%p5272_p7)
}
  0xcf   : > { %s5276_s9 = scalar_lea.vmem %s5818_s14, 4096  ;;  %s5474_s1 = smov [#allocation2]  }
  0xd0   : > { %p5277_p10 = scmp.ne.s32.totalorder %s5818_s14, %s5276_s9  ;;  %s5281_s21 = sshll.u32 %s5474_s1, 4  ;;  %s5282_s21 = int_to_ptr.vmem [resolvable:$false] %s5281_s21 }
  0xd1   : > { %s5283_s22 = scalar_lea.vmem %s5282_s21, 8192  ;;  %p5284_p6 = scmp.lt.s32.totalorder %s5818_s14, %s5282_s21 }
  0xd2   : > { %p5279_p1 = pnand %p5277_p10, %p5263_p8  ;;  %p5285_p11 = scmp.lt.s32.totalorder %s5283_s22, %s5276_s9 }
  0xd4   : > { %p5280_p9 = pneg %p5279_p1  ;;  %p5286_p12 = por %p5285_p11, %p5284_p6 }
  0xd6   : > { %p5287_p13 = pnand %p5286_p12, %p5280_p9 }
  0xd8   : > { %5290 = shalt.err (!%p5287_p13)
}
  0xd9   : > { %s5475_s11 = smov 256   ;;  %s5476_s16 = smov 16  }
  0xda   : > { %s7769_s5 = scalar_lea.sflag [#allocation3], %s5801_s23  ;;  %s724_s1 = sand.u32 1, %s5463_s25  }
  0xdb   : > { %4601 = dma.hbm_to_vmem [thread:$0]  (!%p5814_p4), %s5812_s29, 4096, %s5818_s14, %s7769_s5, %s5475_s11, %s5475_s11, %s5476_s16  }
  0xdc   : > { %s4195_s3 = sshll.u32 %s5801_s23, 7  ;;  %s4388_s21 = sshll.u32 %s5463_s25, 11 }
  0xdd   : > { %s728_s9 = scalar_lea.vmem [#allocation5], %s4195_s3  ;;  %s7770_s27 = sld [smem:[#allocation30_spill]] }
  0xde   : > { %s735_s22 = sshll.u32 %s728_s9, 4  ;;  %s5858_s6 = scalar_lea.sflag [#allocation6], %s724_s1  ;;  %s5856_s22 = int_to_ptr.vmem [resolvable:$true] %s735_s22 }
  0xe3   : > { %s5854_s24 = scalar_lea.hbm %s7770_s27, %s4388_s21  ;;  %s5296_s15 = scalar_lea.hbm %s7770_s27, 4096 }
  0xe4   : > { %s5291_s0 = scalar_lea.hbm %s5854_s24, 2048  ;;  %p5297_p0 = scmp.lt.u32.totalorder %s5854_s24, %s7770_s27 }
  0xe5   : > { %p5292_p6 = scmp.ne.s32.totalorder %s5854_s24, %s5291_s0  ;;  %p5298_p5 = scmp.lt.u32.totalorder %s5296_s15, %s5291_s0 }
  0xe6   : > { %p5300_p10 = scmp.lt.u32.totalorder %s5291_s0, %s5854_s24 }
  0xe7   : > { %p5294_p9 = pnand %p5292_p6, %p5263_p8  ;;  %p5299_p7 = por %p5298_p5, %p5297_p0 }
  0xe9   : > { %p5295_p3 = pneg %p5294_p9  ;;  %p5301_p1 = por %p5300_p10, %p5299_p7 }
  0xeb   : > { %p5302_p11 = pnand %p5301_p1, %p5295_p3 }
  0xed   : > { %5305 = shalt.err (!%p5302_p11)
}
  0xee   : > { %s5306_s14 = scalar_lea.vmem %s5856_s22, 2048  ;;  %s5477_s11 = smov [#allocation5]  }
  0xef   : > { %p5307_p12 = scmp.ne.s32.totalorder %s5856_s22, %s5306_s14  ;;  %s5311_s16 = sshll.u32 %s5477_s11, 4  ;;  %s5312_s16 = int_to_ptr.vmem [resolvable:$false] %s5311_s16 }
  0xf0   : > { %s5313_s5 = scalar_lea.vmem %s5312_s16, 4096  ;;  %p5314_p9 = scmp.lt.s32.totalorder %s5856_s22, %s5312_s16 }
  0xf1   : > { %p5309_p13 = pnand %p5307_p12, %p5263_p8  ;;  %p5315_p0 = scmp.lt.s32.totalorder %s5313_s5, %s5306_s14 }
  0xf3   : > { %p5310_p6 = pneg %p5309_p13  ;;  %p5316_p5 = por %p5315_p0, %p5314_p9 }
  0xf5   : > { %p5317_p7 = pnand %p5316_p5, %p5310_p6 }
  0xf7   : > { %5320 = shalt.err (!%p5317_p7)
}
  0xf8   : > { %4604 = dma.hbm_to_vmem [thread:$0]  (!%p5814_p4), %s5854_s24, 2048, %s5856_s22, %s5858_s6, %s7758_s17, %s7758_s17, %s7757_s20  }
  0xf9   : > { %p7771_p8 = scmp.ne.s32.totalorder %s7749_s2, 0 }
  0xfa   : > { %s5890_s0 = sand.u32 (!%p7771_p8), 1, %s5455_s30  }
  0xfb   : > { %747 = sbr.rel (%p7771_p8) target bundleno = 2802 (0xaf2), region = 104  ;;  %s4199_s1 = sshll.u32 (!%p7771_p8), %s5890_s0, 8 }
  0xfc   : > { %s750_s21 = scalar_lea.sflag (!%p7771_p8), [#allocation3], %s5890_s0  ;;  %s5894_s9 = scalar_lea.vmem (!%p7771_p8), [#allocation2], %s4199_s1 }
 0x102   : > { %5422 = dma.done.wait (%p5789_p2), %s750_s21, 4096  }
 0x103   : > { %5424 = vsyncadd (%p5789_p2), %s750_s21, 4294963200  ;;  %s758_s24 = sand.u32 1, %s5625_s26   ;;  %s5902_s2 = sshll.u32 %s5890_s0, 7 }
 0x104   : > { %s759_s20 = scalar_lea.sflag [#allocation6], %s758_s24  ;;  %s5907_s17 = scalar_lea.vmem [#allocation5], %s5902_s2 }
 0x105   : > { %5426 = dma.done.wait (%p5789_p2), %s759_s20, 2048  }
 0x106   : > { %5428 = vsyncadd (%p5789_p2), %s759_s20, 4294965248  ;;  %p7772_p4 = scmp.eq.s32.totalorder %s5625_s26, 0 }
 0x108   : > { %5430 = dma.done.wait (%p7772_p4), [#allocation6], 2048   ;;  %p7773_p3 = pmov %p7772_p4 }
 0x10a   : > { %5432 = vsyncadd (%p7773_p3), [#allocation6], 4294965248  ;;  %p7774_p10 = pmov %p7773_p3 }
 0x10b   : > { %p7775_p1 = pmov %p7773_p3 }
 0x10c   : > { %5434 = dma.done.wait (%p7774_p10), [#allocation9], 6144  }
 0x10d   : > { %5436 = vsyncadd (%p7775_p1), [#allocation9], 4294961152  ;;  %p7776_p11 = pmov %p7775_p1 }
 0x10e   : > { %p7777_p12 = pmov %p7775_p1 }
 0x10f   : > { %5438 = dma.done.wait (%p7776_p11), [#allocation12], 4096  }
 0x110   : > { %5440 = vsyncadd (%p7777_p12), [#allocation12], 4294963200  ;;  %v5926_v0 = vld [vmem:[%s5894_s9] sm:$0xff]  ;;  %v5929_v1 = vld [vmem:[%s5894_s9 + $0x8] sm:$0xff]  ;;  %s7778_s18 = sld [smem:[#allocation32_spill]]  ;;  %s7779_s3 = sld [smem:[#allocation33_spill]] }
 0x111   : > { %v5932_v2 = vld [vmem:[%s5894_s9 + $0x20] sm:$0xff]  ;;  %v900_v3 = vadd.f32 %v5929_v1, %v5926_v0  ;;  %v5937_v4 = vld [vmem:[%s5894_s9 + $0x28] sm:$0xff]  ;;  %v5940_v5 = vld [vmem:[%s5894_s9 + $0x10] sm:$0xff]  ;;  %s7780_s29 = sld [smem:[#allocation35_spill]]  ;;  %s7781_s16 = sld [smem:[#allocation36_spill]] }
 0x112   : > { %v5943_v6 = vld [vmem:[%s5894_s9 + $0x18] sm:$0xff]  ;;  %v906_v7 = vadd.f32 %v5937_v4, %v5932_v2  ;;  %v5948_v8 = vld [vmem:[%s5894_s9 + $0x30] sm:$0xff]  ;;  %v5958_v12 = vld [vmem:[%s5894_s9 + $0x40] sm:$0xff]  ;;  %s7785_s21 = sld [smem:[#allocation42_spill]]  ;;  %s7786_s6 = sld [smem:[#allocation43_spill]] }
 0x113   : > { %v5951_v9 = vld [vmem:[%s5894_s9 + $0x38] sm:$0xff]  ;;  %901 = vadd.xlane.f32.xlu0 %v900_v3  ;;  %v903_v10 = vadd.f32 %v5943_v6, %v5940_v5  ;;  %v5961_v13 = vld [vmem:[%s5894_s9 + $0x48] sm:$0xff]  ;;  %v5964_v14 = vld [vmem:[%s5894_s9 + $0x50] sm:$0xff]  ;;  %s7787_s23 = sld [smem:[#allocation45_spill]]  ;;  %s7399_s15 = scalar_lea.vmem [#allocation17], %s5902_s2 }
 0x114   : > { %907 = vadd.xlane.f32.xlu1 %v906_v7  ;;  %v909_v11 = vadd.f32 %v5951_v9, %v5948_v8  ;;  %v5967_v15 = vld [vmem:[%s5894_s9 + $0x58] sm:$0xff]  ;;  %v912_v16 = vadd.f32 %v5961_v13, %v5958_v12  ;;  %v5974_v18 = vld [vmem:[%s5894_s9 + $0x60] sm:$0xff]  ;;  %v5977_v19 = vld [vmem:[%s5894_s9 + $0x68] sm:$0xff]  ;;  %s7789_s20 = sld [smem:[#allocation47_spill]]  ;;  %p7790_p13 = scmp.ne.s32.totalorder %s7764_s28, 0 }
 0x115   : > { %v915_v17 = vadd.f32 %v5967_v15, %v5964_v14  ;;  %v5980_v20 = vld [vmem:[%s5894_s9 + $0x70] sm:$0xff]  ;;  %v5983_v21 = vld [vmem:[%s5894_s9 + $0x78] sm:$0xff]  ;;  %v5986_v22 = vld [vmem:[%s5894_s9 + $0x80] sm:$0xff]  ;;  %v918_v24 = vadd.f32 %v5977_v19, %v5974_v18  ;;  %s5479_s22 = smov [#allocation14]  }
 0x116   : > { %v5989_v23 = vld [vmem:[%s5894_s9 + $0x88] sm:$0xff]  ;;  %v5994_v25 = vld [vmem:[%s5894_s9 + $0x90] sm:$0xff]  ;;  %v5997_v26 = vld [vmem:[%s5894_s9 + $0x98] sm:$0xff]  ;;  %v921_v27 = vadd.f32 %v5983_v21, %v5980_v20 }
 0x117   : > { %904 = vadd.xlane.f32.xlu0 %v903_v10  ;;  %v6002_v28 = vld [vmem:[%s5894_s9 + $0xa0] sm:$0xff]  ;;  %v6005_v29 = vld [vmem:[%s5894_s9 + $0xa8] sm:$0xff]  ;;  %v924_v30 = vadd.f32 %v5989_v23, %v5986_v22  ;;  %v6010_v31 = vld [vmem:[%s5894_s9 + $0xb0] sm:$0xff]  ;;  %v927_v33 = vadd.f32 %v5997_v26, %v5994_v25 }
 0x118   : > { %910 = vadd.xlane.f32.xlu1 %v909_v11  ;;  %v6013_v32 = vld [vmem:[%s5894_s9 + $0xb8] sm:$0xff]  ;;  %v6018_v34 = vld [vmem:[%s5894_s9 + $0xc0] sm:$0xff]  ;;  %v6021_v35 = vld [vmem:[%s5894_s9 + $0xc8] sm:$0xff]  ;;  %v930_v36 = vadd.f32 %v6005_v29, %v6002_v28 }
 0x119   : > { %v6026_v37 = vld [vmem:[%s5894_s9 + $0xd0] sm:$0xff]  ;;  %v6029_v38 = vld [vmem:[%s5894_s9 + $0xd8] sm:$0xff]  ;;  %v933_v39 = vadd.f32 %v6013_v32, %v6010_v31  ;;  %v6034_v40 = vld [vmem:[%s5894_s9 + $0xe0] sm:$0xff]  ;;  %v936_v42 = vadd.f32 %v6021_v35, %v6018_v34 }
 0x11a   : > { %v6037_v41 = vld [vmem:[%s5894_s9 + $0xe8] sm:$0xff]  ;;  %v6042_v43 = vld [vmem:[%s5894_s9 + $0xf0] sm:$0xff]  ;;  %v6045_v44 = vld [vmem:[%s5894_s9 + $0xf8] sm:$0xff]  ;;  %v939_v45 = vadd.f32 %v6029_v38, %v6026_v37 }
 0x11b   : > { %913 = vadd.xlane.f32.xlu0 %v912_v16  ;;  %v942_v46 = vadd.f32 %v6037_v41, %v6034_v40  ;;  %v945_v47 = vadd.f32 %v6045_v44, %v6042_v43  ;;  %v4673_v48 = vld [vmem:[#allocation7 + $0x40] sm:$0xff]  }
 0x11c   : > { %916 = vadd.xlane.f32.xlu1 %v915_v17  ;;  %v4674_v49 = vld [vmem:[#allocation7] sm:$0xff]   ;;  %4392 = vmatprep.subr.bf16.mxu0 %v4673_v48 }
 0x11d   : > { %4393 = vmatpush3.bf16.msra.mxu0 %v4674_v49 }
 0x11f   : > { %919 = vadd.xlane.f32.xlu0 %v918_v24 }
 0x120   : > { %922 = vadd.xlane.f32.xlu1 %v921_v27 }
 0x123   : > { %925 = vadd.xlane.f32.xlu0 %v924_v30 }
 0x124   : > { %928 = vadd.xlane.f32.xlu1 %v927_v33 }
 0x127   : > { %931 = vadd.xlane.f32.xlu0 %v930_v36 }
 0x128   : > { %934 = vadd.xlane.f32.xlu1 %v933_v39 }
 0x12b   : > { %937 = vadd.xlane.f32.xlu0 %v936_v42 }
 0x12c   : > { %940 = vadd.xlane.f32.xlu1 %v939_v45 }
 0x12f   : > { %943 = vadd.xlane.f32.xlu0 %v942_v46 }
 0x130   : > { %946 = vadd.xlane.f32.xlu1 %v945_v47 }
 0x1a0   : > { %v902_v50 = vpop.xlane.xlu0 %901 }
 0x1a1   : > { %v949_v51 = vmul.f32 0.00390625, %v902_v50  ;;  %v908_v52 = vpop.xlane.xlu1 %907 }
 0x1a2   : > { %v951_v53 = vmul.f32 0.00390625, %v908_v52 }
 0x1a3   : > { %v6054_v54 = vsub.f32 %v5926_v0, %v949_v51  ;;  %v6057_v55 = vsub.f32 %v5929_v1, %v949_v51 }
 0x1a4   : > { %v6060_v56 = vsub.f32 %v5932_v2, %v951_v53  ;;  %v6063_v57 = vsub.f32 %v5937_v4, %v951_v53  ;;  %v905_v58 = vpop.xlane.xlu0 %904 }
 0x1a5   : > { %v950_v59 = vmul.f32 0.00390625, %v905_v58  ;;  %v911_v60 = vpop.xlane.xlu1 %910  ;;  %v997_v61 = vmul.f32 %v6054_v54, %v6054_v54  ;;  %v998_v62 = vmul.f32 %v6057_v55, %v6057_v55 }
 0x1a6   : > { %v952_v63 = vmul.f32 0.00390625, %v911_v60  ;;  %v1001_v0 = vmul.f32 %v6060_v56, %v6060_v56  ;;  %v1002_v1 = vmul.f32 %v6063_v57, %v6063_v57 }
 0x1a7   : > { %v6074_v2 = vsub.f32 %v5940_v5, %v950_v59  ;;  %v6077_v3 = vsub.f32 %v5943_v6, %v950_v59  ;;  %v1029_v4 = vadd.f32 %v998_v62, %v997_v61 }
 0x1a8   : > { %v6080_v7 = vsub.f32 %v5948_v8, %v952_v63  ;;  %v6083_v10 = vsub.f32 %v5951_v9, %v952_v63  ;;  %v914_v11 = vpop.xlane.xlu0 %913  ;;  %v1035_v24 = vadd.f32 %v1002_v1, %v1001_v0 }
 0x1a9   : > { %v953_v16 = vmul.f32 0.00390625, %v914_v11  ;;  %1030 = vadd.xlane.f32.xlu0 %v1029_v4  ;;  %v917_v17 = vpop.xlane.xlu1 %916  ;;  %v999_v27 = vmul.f32 %v6074_v2, %v6074_v2  ;;  %v1000_v5 = vmul.f32 %v6077_v3, %v6077_v3 }
 0x1aa   : > { %v954_v6 = vmul.f32 0.00390625, %v917_v17  ;;  %v1003_v30 = vmul.f32 %v6080_v7, %v6080_v7  ;;  %v1004_v8 = vmul.f32 %v6083_v10, %v6083_v10 }
 0x1ab   : > { %v6094_v9 = vsub.f32 %v5958_v12, %v953_v16  ;;  %v6097_v33 = vsub.f32 %v5961_v13, %v953_v16  ;;  %v1032_v36 = vadd.f32 %v1000_v5, %v999_v27 }
 0x1ac   : > { %v6100_v39 = vsub.f32 %v5964_v14, %v954_v6  ;;  %v6103_v42 = vsub.f32 %v5967_v15, %v954_v6  ;;  %v920_v45 = vpop.xlane.xlu0 %919  ;;  %v1038_v48 = vadd.f32 %v1004_v8, %v1003_v30  ;;  %v4675_v6 = vld [vmem:[#allocation7 + $0x48] sm:$0xff]  }
 0x1ad   : > { %v955_v46 = vmul.f32 0.00390625, %v920_v45  ;;  %1036 = vadd.xlane.f32.xlu0 %v1035_v24  ;;  %1033 = vadd.xlane.f32.xlu1 %v1032_v36  ;;  %v923_v47 = vpop.xlane.xlu1 %922  ;;  %v1005_v12 = vmul.f32 %v6094_v9, %v6094_v9  ;;  %v1006_v13 = vmul.f32 %v6097_v33, %v6097_v33  ;;  %v4676_v8 = vld [vmem:[#allocation7 + $0x8] sm:$0xff]  }
 0x1ae   : > { %v956_v49 = vmul.f32 0.00390625, %v923_v47  ;;  %v1007_v14 = vmul.f32 %v6100_v39, %v6100_v39  ;;  %v1008_v15 = vmul.f32 %v6103_v42, %v6103_v42  ;;  %4394 = vmatprep.subr.bf16.mxu0 %v4675_v6 }
 0x1af   : > { %v6114_v50 = vsub.f32 %v5974_v18, %v955_v46  ;;  %v6117_v51 = vsub.f32 %v5977_v19, %v955_v46  ;;  %v1041_v52 = vadd.f32 %v1006_v13, %v1005_v12  ;;  %4395 = vmatpush3.bf16.msra.mxu0 %v4676_v8  ;;  %v4681_v8 = vld [vmem:[#allocation7 + $0x60] sm:$0xff]  }
 0x1b0   : > { %v6120_v53 = vsub.f32 %v5980_v20, %v956_v49  ;;  %v6123_v58 = vsub.f32 %v5983_v21, %v956_v49  ;;  %v926_v59 = vpop.xlane.xlu0 %925  ;;  %v1044_v62 = vadd.f32 %v1008_v15, %v1007_v14 }
 0x1b1   : > { %v957_v60 = vmul.f32 0.00390625, %v926_v59  ;;  %1039 = vadd.xlane.f32.xlu1 %v1038_v48  ;;  %1042 = vadd.xlane.f32.xlu0 %v1041_v52  ;;  %v929_v61 = vpop.xlane.xlu1 %928  ;;  %v1009_v18 = vmul.f32 %v6114_v50, %v6114_v50  ;;  %v1010_v19 = vmul.f32 %v6117_v51, %v6117_v51  ;;  %v4677_v52 = vld [vmem:[#allocation7 + $0x50] sm:$0xff]  }
 0x1b2   : > { %v958_v63 = vmul.f32 0.00390625, %v929_v61  ;;  %v1011_v20 = vmul.f32 %v6120_v53, %v6120_v53  ;;  %v1012_v21 = vmul.f32 %v6123_v58, %v6123_v58  ;;  %4396 = vmatprep.subr.bf16.mxu0 %v4677_v52 }
 0x1b3   : > { %v6134_v0 = vsub.f32 %v5986_v22, %v957_v60  ;;  %v6137_v1 = vsub.f32 %v5989_v23, %v957_v60  ;;  %v1047_v4 = vadd.f32 %v1010_v19, %v1009_v18 }
 0x1b4   : > { %v6140_v11 = vsub.f32 %v5994_v25, %v958_v63  ;;  %v6143_v16 = vsub.f32 %v5997_v26, %v958_v63  ;;  %v932_v17 = vpop.xlane.xlu0 %931  ;;  %v1050_v5 = vadd.f32 %v1012_v21, %v1011_v20 }
 0x1b5   : > { %v959_v24 = vmul.f32 0.00390625, %v932_v17  ;;  %1045 = vadd.xlane.f32.xlu1 %v1044_v62  ;;  %1048 = vadd.xlane.f32.xlu0 %v1047_v4  ;;  %v935_v27 = vpop.xlane.xlu1 %934  ;;  %v1013_v22 = vmul.f32 %v6134_v0, %v6134_v0  ;;  %v1014_v23 = vmul.f32 %v6137_v1, %v6137_v1  ;;  %v4678_v62 = vld [vmem:[#allocation7 + $0x10] sm:$0xff]  }
 0x1b6   : > { %v960_v30 = vmul.f32 0.00390625, %v935_v27  ;;  %v1015_v25 = vmul.f32 %v6140_v11, %v6140_v11  ;;  %v1016_v26 = vmul.f32 %v6143_v16, %v6143_v16  ;;  %4397 = vmatpush3.bf16.msra.mxu0 %v4678_v62 }
 0x1b7   : > { %v6154_v36 = vsub.f32 %v6002_v28, %v959_v24  ;;  %v6157_v45 = vsub.f32 %v6005_v29, %v959_v24  ;;  %v1053_v46 = vadd.f32 %v1014_v23, %v1013_v22  ;;  %v4679_v24 = vld [vmem:[#allocation7 + $0x58] sm:$0xff]  }
 0x1b8   : > { %v6160_v47 = vsub.f32 %v6010_v31, %v960_v30  ;;  %v6163_v48 = vsub.f32 %v6013_v32, %v960_v30  ;;  %v938_v12 = vpop.xlane.xlu0 %937  ;;  %v1056_v14 = vadd.f32 %v1016_v26, %v1015_v25  ;;  %v4680_v23 = vld [vmem:[#allocation7 + $0x18] sm:$0xff]   ;;  %4398 = vmatprep.subr.bf16.mxu0 %v4679_v24 }
 0x1b9   : > { %v961_v13 = vmul.f32 0.00390625, %v938_v12  ;;  %1051 = vadd.xlane.f32.xlu1 %v1050_v5  ;;  %1054 = vadd.xlane.f32.xlu0 %v1053_v46  ;;  %v941_v49 = vpop.xlane.xlu1 %940  ;;  %v1017_v28 = vmul.f32 %v6154_v36, %v6154_v36  ;;  %v1018_v29 = vmul.f32 %v6157_v45, %v6157_v45  ;;  %v4682_v46 = vld [vmem:[#allocation7 + $0x20] sm:$0xff]  }
 0x1ba   : > { %v962_v15 = vmul.f32 0.00390625, %v941_v49  ;;  %v1019_v31 = vmul.f32 %v6160_v47, %v6160_v47  ;;  %v1020_v32 = vmul.f32 %v6163_v48, %v6163_v48  ;;  %4399 = vmatpush3.bf16.msra.mxu0 %v4680_v23  ;;  %v4684_v49 = vld [vmem:[#allocation7 + $0x28] sm:$0xff]  }
 0x1bb   : > { %v6174_v59 = vsub.f32 %v6018_v34, %v961_v13  ;;  %v6177_v60 = vsub.f32 %v6021_v35, %v961_v13  ;;  %v1059_v61 = vadd.f32 %v1018_v29, %v1017_v28  ;;  %4400 = vmatprep.subr.bf16.mxu0 %v4681_v8  ;;  %v4683_v13 = vld [vmem:[#allocation7 + $0x68] sm:$0xff]   ;;  %v4686_v28 = vld [vmem:[#allocation7 + $0x30] sm:$0xff]   ;;  %v4687_v29 = vld [vmem:[#allocation7 + $0x78] sm:$0xff]  }
 0x1bc   : > { %v6180_v18 = vsub.f32 %v6026_v37, %v962_v15  ;;  %v6183_v19 = vsub.f32 %v6029_v38, %v962_v15  ;;  %v944_v63 = vpop.xlane.xlu0 %943  ;;  %v1062_v4 = vadd.f32 %v1020_v32, %v1019_v31  ;;  %v4688_v15 = vld [vmem:[#allocation7 + $0x38] sm:$0xff]  }
 0x1bd   : > { %v963_v20 = vmul.f32 0.00390625, %v944_v63  ;;  %1057 = vadd.xlane.f32.xlu1 %v1056_v14  ;;  %1060 = vadd.xlane.f32.xlu0 %v1059_v61  ;;  %v947_v21 = vpop.xlane.xlu1 %946  ;;  %v1021_v34 = vmul.f32 %v6174_v59, %v6174_v59  ;;  %v1022_v35 = vmul.f32 %v6177_v60, %v6177_v60  ;;  %v4685_v14 = vld [vmem:[#allocation7 + $0x70] sm:$0xff]   ;;  %v1158_v61 = vlaneseq }
 0x1be   : > { %v964_v17 = vmul.f32 0.00390625, %v947_v21  ;;  %v1023_v37 = vmul.f32 %v6180_v18, %v6180_v18  ;;  %v1024_v38 = vmul.f32 %v6183_v19, %v6183_v19  ;;  %4401 = vmatpush3.bf16.msra.mxu0 %v4682_v46 }
 0x1bf   : > { %v6194_v27 = vsub.f32 %v6034_v40, %v963_v20  ;;  %v6197_v5 = vsub.f32 %v6037_v41, %v963_v20  ;;  %v1065_v22 = vadd.f32 %v1022_v35, %v1021_v34  ;;  %4402 = vmatprep.subr.bf16.mxu0 %v4683_v13  ;;  %v1159_v35 = vshrl.u32 %v1158_v61, 7  ;;  %v899_v13 = vld [vmem:[%s7779_s3] sm:$0x3]  ;;  %s7354_s3 = scalar_lea.vmem [#allocation15], %s5902_s2 }
 0x1c0   : > { %v6200_v6 = vsub.f32 %v6042_v43, %v964_v17  ;;  %v6203_v30 = vsub.f32 %v6045_v44, %v964_v17  ;;  %v1068_v25 = vadd.f32 %v1024_v38, %v1023_v37 }
 0x1c1   : > { %1063 = vadd.xlane.f32.xlu1 %v1062_v4  ;;  %1066 = vadd.xlane.f32.xlu0 %v1065_v22  ;;  %v1025_v26 = vmul.f32 %v6194_v27, %v6194_v27  ;;  %v1026_v40 = vmul.f32 %v6197_v5, %v6197_v5 }
 0x1c2   : > { %v1027_v41 = vmul.f32 %v6200_v6, %v6200_v6  ;;  %v1028_v43 = vmul.f32 %v6203_v30, %v6203_v30  ;;  %4403 = vmatpush3.bf16.msra.mxu0 %v4684_v49 }
 0x1c3   : > { %v1071_v44 = vadd.f32 %v1026_v40, %v1025_v26  ;;  %4404 = vmatprep.subr.bf16.mxu0 %v4685_v14  ;;  %v6215_v26 = vsub.s32 1, %v1159_v35 }
 0x1c4   : > { %v1074_v12 = vadd.f32 %v1028_v43, %v1027_v41  ;;  %v898_v43 = vld [vmem:[%s7778_s18] sm:$0x3]  ;;  %s7782_s18 = sld [smem:[#allocation31_spill]] }
 0x1c5   : > { %1069 = vadd.xlane.f32.xlu1 %v1068_v25  ;;  %1072 = vadd.xlane.f32.xlu0 %v1071_v44  ;;  %v6213_v25 = vsub.s32 0, %v1159_v35  ;;  %v6227_v14 = vrot.slane %v898_v43, %v6215_v26 }
 0x1c6   : > { %4405 = vmatpush3.bf16.msra.mxu0 %v4686_v28 }
 0x1c7   : > { %4406 = vmatprep.subr.bf16.mxu0 %v4687_v29  ;;  %v6224_v49 = vrot.slane %v898_v43, %v6213_v25  ;;  %v6232_v61 = vrot.slane %v899_v13, %v6213_v25 }
 0x1c9   : > { %1075 = vadd.xlane.f32.xlu1 %v1074_v12 }
 0x1ca   : > { %4407 = vmatpush3.bf16.msra.mxu0 %v4688_v15 }
 0x236   : > { %v1031_v31 = vpop.xlane.xlu0 %1030 }
 0x237   : > { %v1077_v32 = vmul.f32 0.00390625, %v1031_v31 }
 0x239   : > { %v1093_v52 = vadd.f32 1e-05, %v1077_v32 }
 0x23a   : > { %v1034_v62 = vpop.xlane.xlu1 %1033  ;;  %v1037_v63 = vpop.xlane.xlu0 %1036 }
 0x23b   : > { %4801 = vrsqrt.f32 %v1093_v52  ;;  %v1078_v20 = vmul.f32 0.00390625, %v1034_v62  ;;  %v1079_v21 = vmul.f32 0.00390625, %v1037_v63 }
 0x23d   : > { %v1094_v4 = vadd.f32 1e-05, %v1078_v20  ;;  %v1095_v34 = vadd.f32 1e-05, %v1079_v21  ;;  %v6236_v21 = vrot.slane %v899_v13, %v6215_v26 }
 0x23e   : > { %v1040_v17 = vpop.xlane.xlu1 %1039  ;;  %v1043_v37 = vpop.xlane.xlu0 %1042 }
 0x23f   : > { %4803 = vrsqrt.f32 %v1094_v4  ;;  %v1080_v38 = vmul.f32 0.00390625, %v1040_v17  ;;  %v1081_v24 = vmul.f32 0.00390625, %v1043_v37 }
 0x240   : > { %4805 = vrsqrt.f32 %v1095_v34 }
 0x241   : > { %v1096_v22 = vadd.f32 1e-05, %v1080_v38  ;;  %v1097_v23 = vadd.f32 1e-05, %v1081_v24 }
 0x242   : > { %v1046_v40 = vpop.xlane.xlu1 %1045  ;;  %v1049_v41 = vpop.xlane.xlu0 %1048 }
 0x243   : > { %4807 = vrsqrt.f32 %v1096_v22  ;;  %v1082_v8 = vmul.f32 0.00390625, %v1046_v40  ;;  %v1083_v44 = vmul.f32 0.00390625, %v1049_v41 }
 0x244   : > { %4809 = vrsqrt.f32 %v1097_v23 }
 0x245   : > { %v4802_v46 = vpop.eup %4801  ;;  %v1098_v12 = vadd.f32 1e-05, %v1082_v8  ;;  %v1099_v28 = vadd.f32 1e-05, %v1083_v44 }
 0x246   : > { %v1052_v29 = vpop.xlane.xlu1 %1051  ;;  %v1126_v15 = vmul.f32 %v4802_v46, %v6057_v55  ;;  %v1125_v31 = vmul.f32 %v4802_v46, %v6054_v54  ;;  %v1055_v52 = vpop.xlane.xlu0 %1054 }
 0x247   : > { %4811 = vrsqrt.f32 %v1098_v12  ;;  %v1084_v32 = vmul.f32 0.00390625, %v1052_v29  ;;  %v1085_v17 = vmul.f32 0.00390625, %v1055_v52 }
 0x248   : > { %v1169_v20 = vmul.f32 %v6227_v14, %v1126_v15  ;;  %v1168_v4 = vmul.f32 %v6224_v49, %v1125_v31  ;;  %4813 = vrsqrt.f32 %v1099_v28 }
 0x249   : > { %v4804_v62 = vpop.eup %4803  ;;  %v1100_v63 = vadd.f32 1e-05, %v1084_v32  ;;  %v1101_v13 = vadd.f32 1e-05, %v1085_v17 }
 0x24a   : > { %v4806_v34 = vpop.eup %4805  ;;  %v1058_v55 = vpop.xlane.xlu1 %1057  ;;  %v1128_v54 = vmul.f32 %v4804_v62, %v6077_v3  ;;  %v1127_v35 = vmul.f32 %v4804_v62, %v6074_v2  ;;  %v1212_v41 = vadd.f32 %v6236_v21, %v1169_v20  ;;  %v1211_v43 = vadd.f32 %v6232_v61, %v1168_v4 }
 0x24b   : > { %4815 = vrsqrt.f32 %v1100_v63  ;;  %v1086_v37 = vmul.f32 0.00390625, %v1058_v55  ;;  %v1130_v38 = vmul.f32 %v4806_v34, %v6063_v57  ;;  %v1129_v28 = vmul.f32 %v4806_v34, %v6060_v56  ;;  %v1061_v29 = vpop.xlane.xlu0 %1060 }
 0x24c   : > { %v1171_v24 = vmul.f32 %v6227_v14, %v1128_v54  ;;  %v1170_v22 = vmul.f32 %v6224_v49, %v1127_v35  ;;  %v1087_v56 = vmul.f32 0.00390625, %v1061_v29 }
 0x24d   : > { %v4808_v23 = vpop.eup %4807  ;;  %v1102_v40 = vadd.f32 1e-05, %v1086_v37  ;;  %v1173_v8 = vmul.f32 %v6227_v14, %v1130_v38  ;;  %v1172_v34 = vmul.f32 %v6224_v49, %v1129_v28 }
 0x24e   : > { %v1064_v3 = vpop.xlane.xlu1 %1063  ;;  %v1214_v2 = vadd.f32 %v6236_v21, %v1171_v24  ;;  %v1213_v44 = vadd.f32 %v6232_v61, %v1170_v22  ;;  %v1132_v46 = vmul.f32 %v4808_v23, %v6083_v10  ;;  %v1131_v57 = vmul.f32 %v4808_v23, %v6080_v7  ;;  %v4810_v12 = vpop.eup %4809 }
 0x24f   : > { %4817 = vrsqrt.f32 %v1102_v40  ;;  %v1088_v62 = vmul.f32 0.00390625, %v1064_v3  ;;  %v1216_v20 = vadd.f32 %v6236_v21, %v1173_v8  ;;  %v1134_v7 = vmul.f32 %v4810_v12, %v6097_v33 }
 0x250   : > { %v1244_v15 = vpack.c.bf16 %v1214_v2, %v1212_v41  ;;  %v1243_v31 = vpack.c.bf16 %v1213_v44, %v1211_v43  ;;  %v1175_v32 = vmul.f32 %v6227_v14, %v1132_v46  ;;  %v1174_v63 = vmul.f32 %v6224_v49, %v1131_v57  ;;  %v1067_v43 = vpop.xlane.xlu0 %1066 }
 0x251   : > { %v4812_v52 = vpop.eup %4811  ;;  %4819 = vrsqrt.f32 %v1101_v13  ;;  %v1177_v35 = vmul.f32 %v6227_v14, %v1134_v7  ;;  %v1104_v37 = vadd.f32 1e-05, %v1088_v62  ;;  %v1215_v23 = vadd.f32 %v6232_v61, %v1172_v34 }
 0x252   : > { %1426 = vmatprep.mubr.bf16.mxu0 %v1244_v15  ;;  %v1218_v10 = vadd.f32 %v6236_v21, %v1175_v32  ;;  %v1136_v4 = vmul.f32 %v4812_v52, %v6103_v42  ;;  %v4814_v55 = vpop.eup %4813  ;;  %v1217_v38 = vadd.f32 %v6232_v61, %v1174_v63  ;;  %v1135_v22 = vmul.f32 %v4812_v52, %v6100_v39  ;;  %v1070_v33 = vpop.xlane.xlu1 %1069 }
 0x253   : > { %1427 = vmatmul.mubr.bf16.vlgmr.msra.gmra.mrb[0].mxu0 %v1243_v31  ;;  %v1103_v42 = vadd.f32 1e-05, %v1087_v56  ;;  %v1133_v41 = vmul.f32 %v4810_v12, %v6094_v9  ;;  %v1220_v8 = vadd.f32 %v6236_v21, %v1177_v35  ;;  %v1138_v3 = vmul.f32 %v4814_v55, %v6117_v51 }
 0x254   : > { %v1246_v54 = vpack.c.bf16 %v1218_v10, %v1216_v20  ;;  %v1179_v24 = vmul.f32 %v6227_v14, %v1136_v4  ;;  %4821 = vrsqrt.f32 %v1104_v37  ;;  %v1090_v44 = vmul.f32 0.00390625, %v1070_v33  ;;  %v1073_v7 = vpop.xlane.xlu0 %1072 }
 0x255   : > { %v4816_v17 = vpop.eup %4815  ;;  %v1245_v46 = vpack.c.bf16 %v1217_v38, %v1215_v23  ;;  %v1178_v39 = vmul.f32 %v6224_v49, %v1135_v22  ;;  %4823 = vrsqrt.f32 %v1103_v42  ;;  %v1089_v29 = vmul.f32 0.00390625, %v1067_v43 }
 0x256   : > { %1434 = vmatprep.mubr.bf16.mxu0 %v1246_v54  ;;  %v1222_v40 = vadd.f32 %v6236_v21, %v1179_v24  ;;  %v1140_v2 = vmul.f32 %v4816_v17, %v6123_v58  ;;  %v1176_v9 = vmul.f32 %v6224_v49, %v1133_v41  ;;  %v1181_v12 = vmul.f32 %v6227_v14, %v1138_v3  ;;  %v1076_v32 = vpop.xlane.xlu1 %1075 }
 0x257   : > { %v1106_v15 = vadd.f32 1e-05, %v1090_v44  ;;  %v1221_v58 = vadd.f32 %v6232_v61, %v1178_v39  ;;  %v1139_v31 = vmul.f32 %v4816_v17, %v6120_v53  ;;  %v1105_v63 = vadd.f32 1e-05, %v1089_v29 }
 0x258   : > { %v1248_v57 = vpack.c.bf16 %v1222_v40, %v1220_v8  ;;  %v1183_v13 = vmul.f32 %v6227_v14, %v1140_v2  ;;  %v1219_v20 = vadd.f32 %v6232_v61, %v1176_v9  ;;  %v1137_v10 = vmul.f32 %v4814_v55, %v6114_v50 }
 0x259   : > { %v4818_v28 = vpop.eup %4817  ;;  %v1224_v4 = vadd.f32 %v6236_v21, %v1181_v12  ;;  %4825 = vrsqrt.f32 %v1106_v15  ;;  %v1092_v34 = vmul.f32 0.00390625, %v1076_v32  ;;  %v1182_v53 = vmul.f32 %v6224_v49, %v1139_v31 }
 0x25a   : > { %v1226_v52 = vadd.f32 %v6236_v21, %v1183_v13  ;;  %v1144_v62 = vmul.f32 %v4818_v28, %v6143_v16  ;;  %v1247_v54 = vpack.c.bf16 %v1221_v58, %v1219_v20  ;;  %4827 = vrsqrt.f32 %v1105_v63 }
 0x25b   : > { %1435 = vmatmul.mubr.bf16.gmra.mrb[4].mxu0 %v1245_v46  ;;  %v4820_v51 = vpop.eup %4819  ;;  %v1091_v16 = vmul.f32 0.00390625, %v1073_v7  ;;  %v1180_v38 = vmul.f32 %v6224_v49, %v1137_v10  ;;  %v1108_v24 = vadd.f32 1e-05, %v1092_v34  ;;  %v1143_v22 = vmul.f32 %v4818_v28, %v6140_v11 }
 0x25c   : > { %1442 = vmatprep.mubr.bf16.mxu0 %v1248_v57  ;;  %v1142_v56 = vmul.f32 %v4820_v51, %v6137_v1  ;;  %v1250_v35 = vpack.c.bf16 %v1226_v52, %v1224_v4  ;;  %v1187_v17 = vmul.f32 %v6227_v14, %v1144_v62  ;;  %v1225_v1 = vadd.f32 %v6232_v61, %v1182_v53 }
 0x25d   : > { %v1107_v23 = vadd.f32 1e-05, %v1091_v16  ;;  %v1223_v40 = vadd.f32 %v6232_v61, %v1180_v38  ;;  %v1141_v41 = vmul.f32 %v4820_v51, %v6134_v0  ;;  %4829 = vrsqrt.f32 %v1108_v24 }
 0x25e   : > { %v4822_v37 = vpop.eup %4821  ;;  %v1185_v50 = vmul.f32 %v6227_v14, %v1142_v56  ;;  %v1230_v33 = vadd.f32 %v6236_v21, %v1187_v17  ;;  %v1186_v2 = vmul.f32 %v6224_v49, %v1143_v22 }
 0x25f   : > { %v4824_v55 = vpop.eup %4823  ;;  %v1148_v42 = vmul.f32 %v4822_v37, %v6163_v48  ;;  %v1249_v3 = vpack.c.bf16 %v1225_v1, %v1223_v40  ;;  %4831 = vrsqrt.f32 %v1107_v23  ;;  %v1184_v48 = vmul.f32 %v6224_v49, %v1141_v41 }
 0x260   : > { %v1228_v43 = vadd.f32 %v6236_v21, %v1185_v50  ;;  %v1146_v8 = vmul.f32 %v4824_v55, %v6157_v45  ;;  %v1229_v57 = vadd.f32 %v6232_v61, %v1186_v2  ;;  %v1147_v45 = vmul.f32 %v4822_v37, %v6160_v47 }
 0x261   : > { %v1191_v11 = vmul.f32 %v6227_v14, %v1148_v42  ;;  %v1227_v29 = vadd.f32 %v6232_v61, %v1184_v48  ;;  %v1145_v9 = vmul.f32 %v4824_v55, %v6154_v36 }
 0x262   : > { %v1252_v44 = vpack.c.bf16 %v1230_v33, %v1228_v43  ;;  %v1189_v39 = vmul.f32 %v6227_v14, %v1146_v8  ;;  %v1190_v58 = vmul.f32 %v6224_v49, %v1147_v45 }
 0x263   : > { %1443 = vmatmul.mubr.bf16.gmra.mrb[8].mxu0 %v1247_v54  ;;  %v4826_v46 = vpop.eup %4825  ;;  %v1234_v13 = vadd.f32 %v6236_v21, %v1191_v11  ;;  %v1251_v15 = vpack.c.bf16 %v1229_v57, %v1227_v29  ;;  %v1188_v47 = vmul.f32 %v6224_v49, %v1145_v9 }
 0x264   : > { %1450 = vmatprep.mubr.bf16.mxu0 %v1250_v35  ;;  %v4828_v0 = vpop.eup %4827  ;;  %v1152_v28 = vmul.f32 %v4826_v46, %v6183_v19  ;;  %v1232_v12 = vadd.f32 %v6236_v21, %v1189_v39  ;;  %v1233_v36 = vadd.f32 %v6232_v61, %v1190_v58  ;;  %v1151_v63 = vmul.f32 %v4826_v46, %v6180_v18 }
 0x265   : > { %v1150_v51 = vmul.f32 %v4828_v0, %v6177_v60  ;;  %v1231_v10 = vadd.f32 %v6232_v61, %v1188_v47  ;;  %v1149_v7 = vmul.f32 %v4828_v0, %v6174_v59 }
 0x266   : > { %v1254_v31 = vpack.c.bf16 %v1234_v13, %v1232_v12  ;;  %v1195_v32 = vmul.f32 %v6227_v14, %v1152_v28  ;;  %v1194_v54 = vmul.f32 %v6224_v49, %v1151_v63 }
 0x267   : > { %v4830_v52 = vpop.eup %4829  ;;  %v1193_v19 = vmul.f32 %v6227_v14, %v1150_v51  ;;  %v1253_v34 = vpack.c.bf16 %v1233_v36, %v1231_v10  ;;  %v1192_v18 = vmul.f32 %v6224_v49, %v1149_v7 }
 0x268   : > { %v1238_v60 = vadd.f32 %v6236_v21, %v1195_v32  ;;  %v1156_v20 = vmul.f32 %v4830_v52, %v6203_v30  ;;  %v1237_v17 = vadd.f32 %v6232_v61, %v1194_v54  ;;  %v1155_v59 = vmul.f32 %v4830_v52, %v6200_v6 }
 0x269   : > { %v4832_v62 = vpop.eup %4831  ;;  %v1236_v4 = vadd.f32 %v6236_v21, %v1193_v19 }
 0x26a   : > { %v1154_v56 = vmul.f32 %v4832_v62, %v6197_v5  ;;  %v1199_v35 = vmul.f32 %v6227_v14, %v1156_v20  ;;  %v1235_v5 = vadd.f32 %v6232_v61, %v1192_v18  ;;  %v1153_v16 = vmul.f32 %v4832_v62, %v6194_v27  ;;  %v6334_v27 = vld [vmem:[%s7780_s29] ss:$0 sm:$0xff]  ;;  %s7783_s29 = sld [smem:[#allocation39_spill]] }
 0x26b   : > { %1451 = vmatmul.mubr.bf16.gmra.mrb[12].mxu0 %v1249_v3  ;;  %v1256_v53 = vpack.c.bf16 %v1238_v60, %v1236_v4  ;;  %v1198_v55 = vmul.f32 %v6224_v49, %v1155_v59 }
 0x26c   : > { %1458 = vmatprep.mubr.bf16.mxu0 %v1252_v44  ;;  %v1197_v30 = vmul.f32 %v6227_v14, %v1154_v56  ;;  %v1242_v37 = vadd.f32 %v6236_v21, %v1199_v35  ;;  %v1255_v50 = vpack.c.bf16 %v1237_v17, %v1235_v5  ;;  %v1196_v1 = vmul.f32 %v6224_v49, %v1153_v16 }
 0x26d   : > { %v1241_v14 = vadd.f32 %v6232_v61, %v1198_v55 }
 0x26e   : > { %v1240_v38 = vadd.f32 %v6236_v21, %v1197_v30  ;;  %v1239_v6 = vadd.f32 %v6232_v61, %v1196_v1 }
 0x270   : > { %v1258_v24 = vpack.c.bf16 %v1242_v37, %v1240_v38  ;;  %v1257_v22 = vpack.c.bf16 %v1241_v14, %v1239_v6 }
 0x273   : > { %1459 = vmatmul.mubr.bf16.gmra.mrb[16].mxu0 %v1251_v15 }
 0x274   : > { %1466 = vmatprep.mubr.bf16.mxu0 %v1254_v31 }
 0x27b   : > { %1467 = vmatmul.mubr.bf16.gmra.mrb[20].mxu0 %v1253_v34 }
 0x27c   : > { %1474 = vmatprep.mubr.bf16.mxu0 %v1256_v53 }
 0x283   : > { %1475 = vmatmul.mubr.bf16.gmra.mrb[24].mxu0 %v1255_v50 }
 0x284   : > { %1482 = vmatprep.mubr.bf16.mxu0 %v1258_v24 }
 0x28b   : > { %1483 = vmatmul.mubr.bf16.gmra.mrb[28].mxu0 %v1257_v22 }
 0x326   : > { %v4408_v33 = vpop.f32.mrb[0].mxu0 }
 0x327   : > { %v4409_v42 = vpop.f32.mrb[1].mxu0 }
 0x328   : > { %v4410_v21 = vadd.f32 %v4409_v42, %v4408_v33  ;;  %v4411_v23 = vpop.f32.mrb[2].mxu0 }
 0x329   : > { %v4412_v40 = vpop.f32.mrb[3].mxu0 }
 0x32a   : > { %v4413_v41 = vadd.f32 %v4412_v40, %v4411_v23  ;;  %v6337_v49 = vadd.f32 %v4410_v21, %v6334_v27  ;;  %v4689_v23 = vld [vmem:[#allocation8 + $0x4] ss:$8 sps:$4 sm:$0xff]   ;;  %v4691_v40 = vld [vmem:[#allocation8] ss:$8 sps:$4 sm:$0xff]  }
 0x32b   : > { %1846 = vmatprep.subr.bf16.mxu1 %v4689_v23 }
 0x32c   : > { %1493 = vadd.xlane.f32.xlu0 %v6337_v49  ;;  %v6341_v61 = vadd.f32 %v4413_v41, %v6334_v27  ;;  %v4692_v41 = vld [vmem:[#allocation8 + $0x14] ss:$8 sps:$4 sm:$0xff]   ;;  %1847 = vmatpush1.bf16.msra.mxu1 %v4691_v40  ;;  %v4707_v40 = vld [vmem:[#allocation8 + $0x64] ss:$8 sps:$4 sm:$0xff]  }
 0x32d   : > { %1848 = vmatprep.subr.bf16.mxu1 %v4692_v41  ;;  %v4709_v41 = vld [vmem:[#allocation8 + $0x60] ss:$8 sps:$4 sm:$0xff]  }
 0x32e   : > { %1495 = vadd.xlane.f32.xlu1 %v6341_v61  ;;  %v4414_v43 = vpop.f32.mrb[4].mxu0 }
 0x32f   : > { %v4415_v8 = vpop.f32.mrb[5].mxu0 }
 0x330   : > { %v4416_v3 = vadd.f32 %v4415_v8, %v4414_v43  ;;  %v4417_v2 = vpop.f32.mrb[6].mxu0 }
 0x331   : > { %v4418_v44 = vpop.f32.mrb[7].mxu0 }
 0x332   : > { %v4419_v11 = vadd.f32 %v4418_v44, %v4417_v2  ;;  %v6345_v46 = vadd.f32 %v4416_v3, %v6334_v27 }
 0x334   : > { %1497 = vadd.xlane.f32.xlu0 %v6345_v46  ;;  %v6349_v48 = vadd.f32 %v4419_v11, %v6334_v27 }
 0x336   : > { %1499 = vadd.xlane.f32.xlu1 %v6349_v48  ;;  %v4420_v39 = vpop.f32.mrb[8].mxu0 }
 0x337   : > { %v4421_v0 = vpop.f32.mrb[9].mxu0 }
 0x338   : > { %v4422_v57 = vadd.f32 %v4421_v0, %v4420_v39  ;;  %v4423_v45 = vpop.f32.mrb[10].mxu0 }
 0x339   : > { %v4424_v13 = vpop.f32.mrb[11].mxu0 }
 0x33a   : > { %v4425_v28 = vadd.f32 %v4424_v13, %v4423_v45  ;;  %v6353_v29 = vadd.f32 %v4422_v57, %v6334_v27 }
 0x33c   : > { %1501 = vadd.xlane.f32.xlu0 %v6353_v29  ;;  %v6357_v9 = vadd.f32 %v4425_v28, %v6334_v27 }
 0x33e   : > { %1503 = vadd.xlane.f32.xlu1 %v6357_v9  ;;  %v4426_v12 = vpop.f32.mrb[12].mxu0 }
 0x33f   : > { %v4427_v51 = vpop.f32.mrb[13].mxu0 }
 0x340   : > { %v4428_v15 = vadd.f32 %v4427_v51, %v4426_v12  ;;  %v4429_v58 = vpop.f32.mrb[14].mxu0 }
 0x341   : > { %v4430_v31 = vpop.f32.mrb[15].mxu0 }
 0x342   : > { %v4431_v32 = vadd.f32 %v4430_v31, %v4429_v58  ;;  %v6361_v52 = vadd.f32 %v4428_v15, %v6334_v27 }
 0x344   : > { %1505 = vadd.xlane.f32.xlu0 %v6361_v52  ;;  %v6365_v47 = vadd.f32 %v4431_v32, %v6334_v27 }
 0x346   : > { %1507 = vadd.xlane.f32.xlu1 %v6365_v47  ;;  %v4432_v19 = vpop.f32.mrb[16].mxu0 }
 0x347   : > { %v4433_v62 = vpop.f32.mrb[17].mxu0 }
 0x348   : > { %v4434_v36 = vadd.f32 %v4433_v62, %v4432_v19  ;;  %v4435_v63 = vpop.f32.mrb[18].mxu0 }
 0x349   : > { %v4436_v60 = vpop.f32.mrb[19].mxu0 }
 0x34a   : > { %v4437_v20 = vadd.f32 %v4436_v60, %v4435_v63  ;;  %v6369_v10 = vadd.f32 %v4434_v36, %v6334_v27  ;;  %v4694_v63 = vld [vmem:[#allocation8 + $0x10] ss:$8 sps:$4 sm:$0xff]  }
 0x34b   : > { %1849 = vmatpush1.bf16.msra.mxu1 %v4694_v63  ;;  %v6483_v63 = vld [vmem:[#allocation10 + $0x14] ss:$8 sps:$4 sm:$0xff]  }
 0x34c   : > { %1509 = vadd.xlane.f32.xlu0 %v6369_v10  ;;  %v6373_v7 = vadd.f32 %v4437_v20, %v6334_v27 }
 0x34e   : > { %1511 = vadd.xlane.f32.xlu1 %v6373_v7  ;;  %v4438_v4 = vpop.f32.mrb[20].mxu0 }
 0x34f   : > { %v4439_v56 = vpop.f32.mrb[21].mxu0 }
 0x350   : > { %v4440_v34 = vadd.f32 %v4439_v56, %v4438_v4  ;;  %v4441_v54 = vpop.f32.mrb[22].mxu0  ;;  %v4695_v4 = vld [vmem:[#allocation8 + $0x24] ss:$8 sps:$4 sm:$0xff]   ;;  %v4698_v56 = vld [vmem:[#allocation8 + $0x34] ss:$8 sps:$4 sm:$0xff]  }
 0x351   : > { %v4442_v53 = vpop.f32.mrb[23].mxu0  ;;  %1850 = vmatprep.subr.bf16.mxu1 %v4695_v4  ;;  %v6498_v4 = vld [vmem:[#allocation10 + $0x30] ss:$8 sps:$4 sm:$0xff]  }
 0x352   : > { %v4443_v35 = vadd.f32 %v4442_v53, %v4441_v54  ;;  %v6377_v18 = vadd.f32 %v4440_v34, %v6334_v27 }
 0x354   : > { %1513 = vadd.xlane.f32.xlu0 %v6377_v18  ;;  %v6381_v30 = vadd.f32 %v4443_v35, %v6334_v27 }
 0x356   : > { %1515 = vadd.xlane.f32.xlu1 %v6381_v30  ;;  %v4444_v17 = vpop.f32.mrb[24].mxu0 }
 0x357   : > { %v4445_v59 = vpop.f32.mrb[25].mxu0 }
 0x358   : > { %v4446_v37 = vadd.f32 %v4445_v59, %v4444_v17  ;;  %v4447_v5 = vpop.f32.mrb[26].mxu0  ;;  %v4700_v17 = vld [vmem:[#allocation8 + $0x30] ss:$8 sps:$4 sm:$0xff]  }
 0x359   : > { %v4448_v16 = vpop.f32.mrb[27].mxu0 }
 0x35a   : > { %v4449_v38 = vadd.f32 %v4448_v16, %v4447_v5  ;;  %v6385_v50 = vadd.f32 %v4446_v37, %v6334_v27  ;;  %v4701_v5 = vld [vmem:[#allocation8 + $0x44] ss:$8 sps:$4 sm:$0xff]   ;;  %v4703_v16 = vld [vmem:[#allocation8 + $0x40] ss:$8 sps:$4 sm:$0xff]  }
 0x35c   : > { %1517 = vadd.xlane.f32.xlu0 %v6385_v50  ;;  %v6389_v55 = vadd.f32 %v4449_v38, %v6334_v27  ;;  %v4704_v38 = vld [vmem:[#allocation8 + $0x54] ss:$8 sps:$4 sm:$0xff]  }
 0x35e   : > { %1519 = vadd.xlane.f32.xlu1 %v6389_v55  ;;  %v4450_v24 = vpop.f32.mrb[28].mxu0 }
 0x35f   : > { %v4451_v1 = vpop.f32.mrb[29].mxu0 }
 0x360   : > { %v4452_v14 = vadd.f32 %v4451_v1, %v4450_v24  ;;  %v4453_v6 = vpop.f32.mrb[30].mxu0 }
 0x361   : > { %v4454_v22 = vpop.f32.mrb[31].mxu0 }
 0x362   : > { %v4455_v33 = vadd.f32 %v4454_v22, %v4453_v6  ;;  %v6393_v42 = vadd.f32 %v4452_v14, %v6334_v27  ;;  %v4706_v22 = vld [vmem:[#allocation8 + $0x50] ss:$8 sps:$4 sm:$0xff]  }
 0x364   : > { %1521 = vadd.xlane.f32.xlu0 %v6393_v42  ;;  %v6397_v21 = vadd.f32 %v4455_v33, %v6334_v27 }
 0x366   : > { %1523 = vadd.xlane.f32.xlu1 %v6397_v21 }
 0x3b9   : > { %v1494_v43 = vpop.xlane.xlu0 %1493 }
 0x3ba   : > { %v1526_v8 = vmul.f32 0.0078125, %v1494_v43  ;;  %v4710_v43 = vld [vmem:[#allocation8 + $0x74] ss:$8 sps:$4 sm:$0xff]  }
 0x3bb   : > { %v1496_v3 = vpop.xlane.xlu1 %1495 }
 0x3bc   : > { %v6401_v2 = vsub.f32 %v6337_v49, %v1526_v8  ;;  %v1527_v44 = vmul.f32 0.0078125, %v1496_v3 }
 0x3be   : > { %v6404_v11 = vsub.f32 %v6341_v61, %v1527_v44  ;;  %v1558_v27 = vmul.f32 %v6401_v2, %v6401_v2 }
 0x3c0   : > { %1574 = vadd.xlane.f32.xlu0 %v1558_v27  ;;  %v1559_v39 = vmul.f32 %v6404_v11, %v6404_v11 }
 0x3c1   : > { %v1498_v0 = vpop.xlane.xlu0 %1497 }
 0x3c2   : > { %v1528_v57 = vmul.f32 0.0078125, %v1498_v0  ;;  %1576 = vadd.xlane.f32.xlu1 %v1559_v39  ;;  %v4712_v39 = vld [vmem:[#allocation8 + $0x70] ss:$8 sps:$4 sm:$0xff]  }
 0x3c3   : > { %v1500_v45 = vpop.xlane.xlu1 %1499 }
 0x3c4   : > { %v6411_v13 = vsub.f32 %v6345_v46, %v1528_v57  ;;  %v1529_v49 = vmul.f32 0.0078125, %v1500_v45  ;;  %v5478_v45 = vmov 0  }
 0x3c5   : > { %1878 = vmatprep.mubr.bf16.mxu1 %v5478_v45 }
 0x3c6   : > { %v6414_v28 = vsub.f32 %v6349_v48, %v1529_v49  ;;  %v1560_v61 = vmul.f32 %v6411_v13, %v6411_v13 }
 0x3c8   : > { %1578 = vadd.xlane.f32.xlu0 %v1560_v61  ;;  %v1561_v12 = vmul.f32 %v6414_v28, %v6414_v28 }
 0x3c9   : > { %v1502_v51 = vpop.xlane.xlu0 %1501 }
 0x3ca   : > { %v1530_v15 = vmul.f32 0.0078125, %v1502_v51  ;;  %1580 = vadd.xlane.f32.xlu1 %v1561_v12 }
 0x3cb   : > { %v1504_v58 = vpop.xlane.xlu1 %1503 }
 0x3cc   : > { %v6421_v31 = vsub.f32 %v6353_v29, %v1530_v15  ;;  %v1531_v46 = vmul.f32 0.0078125, %v1504_v58 }
 0x3ce   : > { %v6424_v32 = vsub.f32 %v6357_v9, %v1531_v46  ;;  %v1562_v48 = vmul.f32 %v6421_v31, %v6421_v31  ;;  %v4697_v9 = vld [vmem:[#allocation8 + $0x20] ss:$8 sps:$4 sm:$0xff]  }
 0x3cf   : > { %1851 = vmatpush1.bf16.msra.mxu1 %v4697_v9  ;;  %v6501_v9 = vld [vmem:[#allocation10 + $0x44] ss:$8 sps:$4 sm:$0xff]  }
 0x3d0   : > { %1582 = vadd.xlane.f32.xlu0 %v1562_v48  ;;  %v1563_v19 = vmul.f32 %v6424_v32, %v6424_v32  ;;  %1852 = vmatprep.subr.bf16.mxu1 %v4698_v56  ;;  %v6504_v56 = vld [vmem:[#allocation10 + $0x40] ss:$8 sps:$4 sm:$0xff]  }
 0x3d1   : > { %v1506_v62 = vpop.xlane.xlu0 %1505 }
 0x3d2   : > { %v1532_v36 = vmul.f32 0.0078125, %v1506_v62  ;;  %1584 = vadd.xlane.f32.xlu1 %v1563_v19  ;;  %v6481_v62 = vld [vmem:[#allocation10] ss:$8 sps:$4 sm:$0xff]  }
 0x3d3   : > { %v1508_v60 = vpop.xlane.xlu1 %1507  ;;  %1853 = vmatpush1.bf16.msra.mxu1 %v4700_v17 }
 0x3d4   : > { %v6431_v20 = vsub.f32 %v6361_v52, %v1532_v36  ;;  %v1533_v29 = vmul.f32 0.0078125, %v1508_v60  ;;  %1854 = vmatprep.subr.bf16.mxu1 %v4701_v5  ;;  %v4715_v36 = vld [vmem:[#allocation10 + $0x4] ss:$8 sps:$4 sm:$0xff]   ;;  %v6492_v60 = vld [vmem:[#allocation10 + $0x20] ss:$8 sps:$4 sm:$0xff]  }
 0x3d5   : > { %2479 = vmatprep.subr.bf16.mxu0 %v4715_v36 }
 0x3d6   : > { %v6434_v34 = vsub.f32 %v6365_v47, %v1533_v29  ;;  %v1564_v54 = vmul.f32 %v6431_v20, %v6431_v20  ;;  %2480 = vmatpush1.bf16.msra.mxu0 %v6481_v62  ;;  %v6495_v29 = vld [vmem:[#allocation10 + $0x34] ss:$8 sps:$4 sm:$0xff]  }
 0x3d7   : > { %1855 = vmatpush1.bf16.msra.mxu1 %v4703_v16  ;;  %2481 = vmatprep.subr.bf16.mxu0 %v6483_v63 }
 0x3d8   : > { %1586 = vadd.xlane.f32.xlu0 %v1564_v54  ;;  %v1565_v53 = vmul.f32 %v6434_v34, %v6434_v34  ;;  %1856 = vmatprep.subr.bf16.mxu1 %v4704_v38  ;;  %v6507_v54 = vld [vmem:[#allocation10 + $0x54] ss:$8 sps:$4 sm:$0xff]  }
 0x3d9   : > { %v1510_v35 = vpop.xlane.xlu0 %1509 }
 0x3da   : > { %v1534_v52 = vmul.f32 0.0078125, %v1510_v35  ;;  %1588 = vadd.xlane.f32.xlu1 %v1565_v53  ;;  %v6510_v53 = vld [vmem:[#allocation10 + $0x50] ss:$8 sps:$4 sm:$0xff]  }
 0x3db   : > { %v1512_v59 = vpop.xlane.xlu1 %1511  ;;  %1857 = vmatpush1.bf16.msra.mxu1 %v4706_v22 }
 0x3dc   : > { %v6441_v37 = vsub.f32 %v6369_v10, %v1534_v52  ;;  %v1535_v47 = vmul.f32 0.0078125, %v1512_v59  ;;  %1858 = vmatprep.subr.bf16.mxu1 %v4707_v40 }
 0x3de   : > { %v6444_v24 = vsub.f32 %v6373_v7, %v1535_v47  ;;  %v1566_v1 = vmul.f32 %v6441_v37, %v6441_v37 }
 0x3df   : > { %1859 = vmatpush1.bf16.msra.mxu1 %v4709_v41 }
 0x3e0   : > { %1590 = vadd.xlane.f32.xlu0 %v1566_v1  ;;  %v1567_v14 = vmul.f32 %v6444_v24, %v6444_v24  ;;  %1860 = vmatprep.subr.bf16.mxu1 %v4710_v43 }
 0x3e1   : > { %v1514_v6 = vpop.xlane.xlu0 %1513 }
 0x3e2   : > { %v1536_v10 = vmul.f32 0.0078125, %v1514_v6  ;;  %1592 = vadd.xlane.f32.xlu1 %v1567_v14 }
 0x3e3   : > { %v1516_v33 = vpop.xlane.xlu1 %1515  ;;  %1861 = vmatpush1.bf16.msra.mxu1 %v4712_v39 }
 0x3e4   : > { %v6451_v23 = vsub.f32 %v6377_v18, %v1536_v10  ;;  %v1537_v7 = vmul.f32 0.0078125, %v1516_v33  ;;  %4520 = vmatprep.subr.bf16.mxu1 %v4715_v36  ;;  %v6517_v33 = vld [vmem:[%s7781_s16] ss:$0 sm:$0xff]  ;;  %s7784_s16 = sld [smem:[#allocation41_spill]] }
 0x3e6   : > { %v6454_v8 = vsub.f32 %v6381_v30, %v1537_v7  ;;  %v1568_v3 = vmul.f32 %v6451_v23, %v6451_v23 }
 0x3e8   : > { %1594 = vadd.xlane.f32.xlu0 %v1568_v3  ;;  %v1569_v44 = vmul.f32 %v6454_v8, %v6454_v8  ;;  %v6523_v3 = vld [vmem:[%s7691_s8] ss:$0 sm:$0xff] }
 0x3e9   : > { %v1518_v27 = vpop.xlane.xlu0 %1517 }
 0x3ea   : > { %v1538_v18 = vmul.f32 0.0078125, %v1518_v27  ;;  %1596 = vadd.xlane.f32.xlu1 %v1569_v44 }
 0x3eb   : > { %v1520_v0 = vpop.xlane.xlu1 %1519 }
 0x3ec   : > { %v6461_v57 = vsub.f32 %v6385_v50, %v1538_v18  ;;  %v1539_v30 = vmul.f32 0.0078125, %v1520_v0 }
 0x3ee   : > { %v6465_v49 = vsub.f32 %v6389_v55, %v1539_v30  ;;  %v1570_v61 = vmul.f32 %v6461_v57, %v6461_v57 }
 0x3f0   : > { %1598 = vadd.xlane.f32.xlu0 %v1570_v61  ;;  %v1571_v12 = vmul.f32 %v6465_v49, %v6465_v49 }
 0x3f1   : > { %v1522_v51 = vpop.xlane.xlu0 %1521 }
 0x3f2   : > { %v1540_v15 = vmul.f32 0.0078125, %v1522_v51  ;;  %1600 = vadd.xlane.f32.xlu1 %v1571_v12 }
 0x3f3   : > { %v1524_v50 = vpop.xlane.xlu1 %1523 }
 0x3f4   : > { %v6472_v58 = vsub.f32 %v6393_v42, %v1540_v15  ;;  %v1541_v46 = vmul.f32 0.0078125, %v1524_v50  ;;  %v6486_v42 = vld [vmem:[#allocation10 + $0x10] ss:$8 sps:$4 sm:$0xff]  }
 0x3f5   : > { %2482 = vmatpush1.bf16.msra.mxu0 %v6486_v42 }
 0x3f6   : > { %v6475_v48 = vsub.f32 %v6397_v21, %v1541_v46  ;;  %v1572_v55 = vmul.f32 %v6472_v58, %v6472_v58  ;;  %v6489_v21 = vld [vmem:[#allocation10 + $0x24] ss:$8 sps:$4 sm:$0xff]  }
 0x3f7   : > { %2483 = vmatprep.subr.bf16.mxu0 %v6489_v21 }
 0x3f8   : > { %1602 = vadd.xlane.f32.xlu0 %v1572_v55  ;;  %v1573_v19 = vmul.f32 %v6475_v48, %v6475_v48 }
 0x3f9   : > { %2484 = vmatpush1.bf16.msra.mxu0 %v6492_v60 }
 0x3fa   : > { %1604 = vadd.xlane.f32.xlu1 %v1573_v19  ;;  %2485 = vmatprep.subr.bf16.mxu0 %v6495_v29 }
 0x3fd   : > { %2486 = vmatpush1.bf16.msra.mxu0 %v6498_v4 }
 0x3fe   : > { %2487 = vmatprep.subr.bf16.mxu0 %v6501_v9 }
 0x401   : > { %2488 = vmatpush1.bf16.msra.mxu0 %v6504_v56 }
 0x402   : > { %2489 = vmatprep.subr.bf16.mxu0 %v6507_v54 }
 0x405   : > { %2490 = vmatpush1.bf16.msra.mxu0 %v6510_v53 }
 0x44d   : > { %v1575_v35 = vpop.xlane.xlu0 %1574 }
 0x44e   : > { %v1606_v52 = vmul.f32 0.0078125, %v1575_v35 }
 0x44f   : > { %v1577_v17 = vpop.xlane.xlu1 %1576 }
 0x450   : > { %v1622_v59 = vadd.f32 1e-05, %v1606_v52  ;;  %v1607_v47 = vmul.f32 0.0078125, %v1577_v17 }
 0x452   : > { %4833 = vrsqrt.f32 %v1622_v59  ;;  %v1623_v5 = vadd.f32 1e-05, %v1607_v47 }
 0x454   : > { %4835 = vrsqrt.f32 %v1623_v5 }
 0x455   : > { %v1579_v16 = vpop.xlane.xlu0 %1578 }
 0x456   : > { %v1608_v38 = vmul.f32 0.0078125, %v1579_v16 }
 0x457   : > { %v1581_v1 = vpop.xlane.xlu1 %1580 }
 0x458   : > { %v1624_v14 = vadd.f32 1e-05, %v1608_v38  ;;  %v1609_v6 = vmul.f32 0.0078125, %v1581_v1 }
 0x45a   : > { %4837 = vrsqrt.f32 %v1624_v14  ;;  %v1625_v10 = vadd.f32 1e-05, %v1609_v6 }
 0x45c   : > { %v4834_v22 = vpop.eup %4833  ;;  %4839 = vrsqrt.f32 %v1625_v10 }
 0x45d   : > { %v1583_v7 = vpop.xlane.xlu0 %1582  ;;  %v1654_v40 = vmul.f32 %v4834_v22, %v6401_v2 }
 0x45e   : > { %v4836_v41 = vpop.eup %4835  ;;  %v1610_v43 = vmul.f32 0.0078125, %v1583_v7 }
 0x45f   : > { %v1585_v44 = vpop.xlane.xlu1 %1584  ;;  %v1655_v27 = vmul.f32 %v4836_v41, %v6404_v11  ;;  %v1676_v18 = vmul.f32 %v6517_v33, %v1654_v40 }
 0x460   : > { %v1626_v39 = vadd.f32 1e-05, %v1610_v43  ;;  %v1611_v0 = vmul.f32 0.0078125, %v1585_v44 }
 0x461   : > { %v1677_v30 = vmul.f32 %v6517_v33, %v1655_v27  ;;  %v1698_v61 = vadd.f32 %v6523_v3, %v1676_v18 }
 0x462   : > { %4841 = vrsqrt.f32 %v1626_v39  ;;  %v1627_v2 = vadd.f32 1e-05, %v1611_v0 }
 0x463   : > { %v1699_v12 = vadd.f32 %v6523_v3, %v1677_v30  ;;  %v1714_v50 = vmax.f32 %v1698_v61, 0.0 }
 0x464   : > { %v4838_v51 = vpop.eup %4837  ;;  %4843 = vrsqrt.f32 %v1627_v2 }
 0x465   : > { %v1587_v15 = vpop.xlane.xlu0 %1586  ;;  %v1715_v46 = vmax.f32 %v1699_v12, 0.0  ;;  %v1656_v55 = vmul.f32 %v4838_v51, %v6411_v13 }
 0x466   : > { %v4840_v11 = vpop.eup %4839  ;;  %v1612_v19 = vmul.f32 0.0078125, %v1587_v15 }
 0x467   : > { %v1589_v36 = vpop.xlane.xlu1 %1588  ;;  %v1730_v35 = vpack.c.bf16 %v1715_v46, %v1714_v50  ;;  %v1657_v52 = vmul.f32 %v4840_v11, %v6414_v28  ;;  %v1678_v17 = vmul.f32 %v6517_v33, %v1656_v55 }
 0x468   : > { %v1628_v59 = vadd.f32 1e-05, %v1612_v19  ;;  %v1613_v47 = vmul.f32 0.0078125, %v1589_v36 }
 0x469   : > { %1879 = vmatmul.mubr.bf16.vlgmr.msra.gmra.mrb[0].mxu1 %v1730_v35  ;;  %v1679_v5 = vmul.f32 %v6517_v33, %v1657_v52  ;;  %v1700_v16 = vadd.f32 %v6523_v3, %v1678_v17 }
 0x46a   : > { %4845 = vrsqrt.f32 %v1628_v59  ;;  %v1629_v38 = vadd.f32 1e-05, %v1613_v47  ;;  %1888 = vmatprep.mubr.bf16.mxu1 %v5478_v45  ;;  %4536 = vmatpush1.bf16.msra.mxu1 %v6481_v62 }
 0x46b   : > { %v1701_v13 = vadd.f32 %v6523_v3, %v1679_v5  ;;  %4521 = vmatprep.subr.bf16.mxu1 %v6483_v63  ;;  %v1716_v14 = vmax.f32 %v1700_v16, 0.0 }
 0x46c   : > { %v4842_v28 = vpop.eup %4841  ;;  %4847 = vrsqrt.f32 %v1629_v38 }
 0x46d   : > { %v1591_v1 = vpop.xlane.xlu0 %1590  ;;  %v1717_v6 = vmax.f32 %v1701_v13, 0.0  ;;  %v1658_v10 = vmul.f32 %v4842_v28, %v6421_v31 }
 0x46e   : > { %v4844_v22 = vpop.eup %4843  ;;  %v1614_v7 = vmul.f32 0.0078125, %v1591_v1  ;;  %4537 = vmatpush1.bf16.msra.mxu1 %v6486_v42 }
 0x46f   : > { %v1593_v40 = vpop.xlane.xlu1 %1592  ;;  %v1731_v41 = vpack.c.bf16 %v1717_v6, %v1716_v14  ;;  %v1659_v43 = vmul.f32 %v4844_v22, %v6424_v32  ;;  %v1680_v62 = vmul.f32 %v6517_v33, %v1658_v10  ;;  %4522 = vmatprep.subr.bf16.mxu1 %v6489_v21 }
 0x470   : > { %v1630_v63 = vadd.f32 1e-05, %v1614_v7  ;;  %v1615_v44 = vmul.f32 0.0078125, %v1593_v40 }
 0x471   : > { %1889 = vmatmul.mubr.bf16.gmra.mrb[4].mxu1 %v1731_v41  ;;  %v1681_v27 = vmul.f32 %v6517_v33, %v1659_v43  ;;  %v1702_v18 = vadd.f32 %v6523_v3, %v1680_v62 }
 0x472   : > { %4849 = vrsqrt.f32 %v1630_v63  ;;  %v1631_v31 = vadd.f32 1e-05, %v1615_v44  ;;  %1898 = vmatprep.mubr.bf16.mxu1 %v5478_v45  ;;  %4538 = vmatpush1.bf16.msra.mxu1 %v6492_v60 }
 0x473   : > { %v1703_v42 = vadd.f32 %v6523_v3, %v1681_v27  ;;  %4523 = vmatprep.subr.bf16.mxu1 %v6495_v29  ;;  %v1718_v39 = vmax.f32 %v1702_v18, 0.0 }
 0x474   : > { %v4846_v32 = vpop.eup %4845  ;;  %4851 = vrsqrt.f32 %v1631_v31 }
 0x475   : > { %v1595_v21 = vpop.xlane.xlu0 %1594  ;;  %v1719_v0 = vmax.f32 %v1703_v42, 0.0  ;;  %v1660_v30 = vmul.f32 %v4846_v32, %v6431_v20 }
 0x476   : > { %v4848_v61 = vpop.eup %4847  ;;  %v1616_v2 = vmul.f32 0.0078125, %v1595_v21  ;;  %4539 = vmatpush1.bf16.msra.mxu1 %v6498_v4 }
 0x477   : > { %v1597_v12 = vpop.xlane.xlu1 %1596  ;;  %v1732_v51 = vpack.c.bf16 %v1719_v0, %v1718_v39  ;;  %v1661_v15 = vmul.f32 %v4848_v61, %v6434_v34  ;;  %v1682_v60 = vmul.f32 %v6517_v33, %v1660_v30  ;;  %4524 = vmatprep.subr.bf16.mxu1 %v6501_v9 }
 0x478   : > { %v1632_v29 = vadd.f32 1e-05, %v1616_v2  ;;  %v1617_v50 = vmul.f32 0.0078125, %v1597_v12 }
 0x479   : > { %1899 = vmatmul.mubr.bf16.gmra.mrb[8].mxu1 %v1732_v51  ;;  %v1683_v46 = vmul.f32 %v6517_v33, %v1661_v15  ;;  %v1704_v55 = vadd.f32 %v6523_v3, %v1682_v60 }
 0x47a   : > { %4853 = vrsqrt.f32 %v1632_v29  ;;  %v1633_v20 = vadd.f32 1e-05, %v1617_v50  ;;  %1908 = vmatprep.mubr.bf16.mxu1 %v5478_v45  ;;  %4540 = vmatpush1.bf16.msra.mxu1 %v6504_v56 }
 0x47b   : > { %v1705_v4 = vadd.f32 %v6523_v3, %v1683_v46  ;;  %4525 = vmatprep.subr.bf16.mxu1 %v6507_v54  ;;  %v1720_v11 = vmax.f32 %v1704_v55, 0.0 }
 0x47c   : > { %v4850_v34 = vpop.eup %4849  ;;  %4855 = vrsqrt.f32 %v1633_v20 }
 0x47d   : > { %v1599_v9 = vpop.xlane.xlu0 %1598  ;;  %v1721_v19 = vmax.f32 %v1705_v4, 0.0  ;;  %v1662_v36 = vmul.f32 %v4850_v34, %v6441_v37 }
 0x47e   : > { %v4852_v35 = vpop.eup %4851  ;;  %v1618_v52 = vmul.f32 0.0078125, %v1599_v9  ;;  %4541 = vmatpush1.bf16.msra.mxu1 %v6510_v53 }
 0x47f   : > { %v1601_v17 = vpop.xlane.xlu1 %1600  ;;  %v1733_v59 = vpack.c.bf16 %v1721_v19, %v1720_v11  ;;  %v1663_v47 = vmul.f32 %v4852_v35, %v6444_v24  ;;  %v1684_v56 = vmul.f32 %v6517_v33, %v1662_v36  ;;  %v4731_v11 = vld [vmem:[#allocation10 + $0x60] ss:$8 sps:$4 sm:$0xff]   ;;  %v4734_v19 = vld [vmem:[#allocation10 + $0x70] ss:$8 sps:$4 sm:$0xff]  }
 0x480   : > { %v1634_v5 = vadd.f32 1e-05, %v1618_v52  ;;  %v1619_v16 = vmul.f32 0.0078125, %v1601_v17  ;;  %v4737_v36 = vld [vmem:[#allocation10 + $0x80] ss:$8 sps:$4 sm:$0xff]  }
 0x481   : > { %1909 = vmatmul.mubr.bf16.gmra.mrb[12].mxu1 %v1733_v59  ;;  %v1685_v54 = vmul.f32 %v6517_v33, %v1663_v47  ;;  %v1706_v38 = vadd.f32 %v6523_v3, %v1684_v56  ;;  %v4740_v35 = vld [vmem:[#allocation10 + $0x90] ss:$8 sps:$4 sm:$0xff]   ;;  %v4745_v52 = vld [vmem:[#allocation10 + $0xa4] ss:$8 sps:$4 sm:$0xff]   ;;  %v4743_v17 = vld [vmem:[#allocation10 + $0xa0] ss:$8 sps:$4 sm:$0xff]  }
 0x482   : > { %4857 = vrsqrt.f32 %v1634_v5  ;;  %v1635_v13 = vadd.f32 1e-05, %v1619_v16  ;;  %1918 = vmatprep.mubr.bf16.mxu1 %v5478_v45  ;;  %v4748_v59 = vld [vmem:[#allocation10 + $0xb4] ss:$8 sps:$4 sm:$0xff]   ;;  %v4746_v47 = vld [vmem:[#allocation10 + $0xb0] ss:$8 sps:$4 sm:$0xff]  }
 0x483   : > { %v1707_v37 = vadd.f32 %v6523_v3, %v1685_v54  ;;  %v1722_v1 = vmax.f32 %v1706_v38, 0.0  ;;  %v4751_v56 = vld [vmem:[#allocation10 + $0xc4] ss:$8 sps:$4 sm:$0xff]   ;;  %v4749_v5 = vld [vmem:[#allocation10 + $0xc0] ss:$8 sps:$4 sm:$0xff]  }
 0x484   : > { %v4854_v53 = vpop.eup %4853  ;;  %4859 = vrsqrt.f32 %v1635_v13  ;;  %v4754_v16 = vld [vmem:[#allocation10 + $0xd4] ss:$8 sps:$4 sm:$0xff]   ;;  %v4752_v54 = vld [vmem:[#allocation10 + $0xd0] ss:$8 sps:$4 sm:$0xff]   ;;  %v4757_v38 = vld [vmem:[#allocation10 + $0xe4] ss:$8 sps:$4 sm:$0xff]  }
 0x485   : > { %v1603_v28 = vpop.xlane.xlu0 %1602  ;;  %v1723_v24 = vmax.f32 %v1707_v37, 0.0  ;;  %v1664_v14 = vmul.f32 %v4854_v53, %v6451_v23  ;;  %v4755_v13 = vld [vmem:[#allocation10 + $0xe0] ss:$8 sps:$4 sm:$0xff]   ;;  %v4760_v37 = vld [vmem:[#allocation10 + $0xf4] ss:$8 sps:$4 sm:$0xff]  }
 0x486   : > { %v4856_v6 = vpop.eup %4855  ;;  %v1620_v10 = vmul.f32 0.0078125, %v1603_v28  ;;  %v4758_v53 = vld [vmem:[#allocation10 + $0xf0] ss:$8 sps:$4 sm:$0xff]   ;;  %v1754_v28 = vld [vmem:[%s7693_s10] sm:$0x3] }
 0x487   : > { %v1605_v22 = vpop.xlane.xlu1 %1604  ;;  %v1734_v7 = vpack.c.bf16 %v1723_v24, %v1722_v1  ;;  %v1665_v40 = vmul.f32 %v4856_v6, %v6454_v8  ;;  %v1686_v41 = vmul.f32 %v6517_v33, %v1664_v14  ;;  %v6594_v1 = vrot.slane %v1754_v28, %v6213_v25 }
 0x488   : > { %v1636_v43 = vadd.f32 1e-05, %v1620_v10  ;;  %v1621_v62 = vmul.f32 0.0078125, %v1605_v22  ;;  %v6597_v24 = vrot.slane %v1754_v28, %v6215_v26 }
 0x489   : > { %1919 = vmatmul.mubr.bf16.gmra.mrb[16].mxu1 %v1734_v7  ;;  %v1687_v63 = vmul.f32 %v6517_v33, %v1665_v40  ;;  %v1708_v44 = vadd.f32 %v6523_v3, %v1686_v41 }
 0x48a   : > { %4861 = vrsqrt.f32 %v1636_v43  ;;  %v1637_v27 = vadd.f32 1e-05, %v1621_v62  ;;  %1928 = vmatprep.mubr.bf16.mxu1 %v5478_v45 }
 0x48b   : > { %v1709_v23 = vadd.f32 %v6523_v3, %v1687_v63  ;;  %v1724_v31 = vmax.f32 %v1708_v44, 0.0 }
 0x48c   : > { %v4858_v18 = vpop.eup %4857  ;;  %4863 = vrsqrt.f32 %v1637_v27 }
 0x48d   : > { %v1725_v42 = vmax.f32 %v1709_v23, 0.0  ;;  %v1666_v8 = vmul.f32 %v4858_v18, %v6461_v57 }
 0x48e   : > { %v4860_v32 = vpop.eup %4859 }
 0x48f   : > { %v1735_v21 = vpack.c.bf16 %v1725_v42, %v1724_v31  ;;  %v1667_v39 = vmul.f32 %v4860_v32, %v6465_v49  ;;  %v1688_v0 = vmul.f32 %v6517_v33, %v1666_v8 }
 0x491   : > { %1929 = vmatmul.mubr.bf16.gmra.mrb[20].mxu1 %v1735_v21  ;;  %v1689_v30 = vmul.f32 %v6517_v33, %v1667_v39  ;;  %v1710_v61 = vadd.f32 %v6523_v3, %v1688_v0 }
 0x492   : > { %1938 = vmatprep.mubr.bf16.mxu1 %v5478_v45 }
 0x493   : > { %v1711_v2 = vadd.f32 %v6523_v3, %v1689_v30  ;;  %v1726_v51 = vmax.f32 %v1710_v61, 0.0 }
 0x494   : > { %v4862_v12 = vpop.eup %4861 }
 0x495   : > { %v1727_v15 = vmax.f32 %v1711_v2, 0.0  ;;  %v1668_v57 = vmul.f32 %v4862_v12, %v6472_v58  ;;  %v4733_v58 = vld [vmem:[#allocation10 + $0x64] ss:$8 sps:$4 sm:$0xff]  }
 0x496   : > { %v4864_v60 = vpop.eup %4863  ;;  %2491 = vmatprep.subr.bf16.mxu0 %v4733_v58  ;;  %4526 = vmatprep.subr.bf16.mxu1 %v4733_v58 }
 0x497   : > { %v1736_v29 = vpack.c.bf16 %v1727_v15, %v1726_v51  ;;  %v1669_v49 = vmul.f32 %v4864_v60, %v6475_v48  ;;  %v1690_v50 = vmul.f32 %v6517_v33, %v1668_v57  ;;  %2492 = vmatpush1.bf16.msra.mxu0 %v4731_v11  ;;  %4542 = vmatpush1.bf16.msra.mxu1 %v4731_v11  ;;  %v4736_v48 = vld [vmem:[#allocation10 + $0x74] ss:$8 sps:$4 sm:$0xff]  }
 0x498   : > { %2493 = vmatprep.subr.bf16.mxu0 %v4736_v48  ;;  %4527 = vmatprep.subr.bf16.mxu1 %v4736_v48 }
 0x499   : > { %1939 = vmatmul.mubr.bf16.gmra.mrb[24].mxu1 %v1736_v29  ;;  %v1691_v46 = vmul.f32 %v6517_v33, %v1669_v49  ;;  %v1712_v55 = vadd.f32 %v6523_v3, %v1690_v50  ;;  %v4739_v33 = vld [vmem:[#allocation10 + $0x84] ss:$8 sps:$4 sm:$0xff]  }
 0x49a   : > { %1948 = vmatprep.mubr.bf16.mxu1 %v5478_v45 }
 0x49b   : > { %v1713_v20 = vadd.f32 %v6523_v3, %v1691_v46  ;;  %v1728_v4 = vmax.f32 %v1712_v55, 0.0  ;;  %2494 = vmatpush1.bf16.msra.mxu0 %v4734_v19  ;;  %4543 = vmatpush1.bf16.msra.mxu1 %v4734_v19  ;;  %v4742_v3 = vld [vmem:[#allocation10 + $0x94] ss:$8 sps:$4 sm:$0xff]  }
 0x49c   : > { %2495 = vmatprep.subr.bf16.mxu0 %v4739_v33  ;;  %4528 = vmatprep.subr.bf16.mxu1 %v4739_v33 }
 0x49d   : > { %v1729_v34 = vmax.f32 %v1713_v20, 0.0 }
 0x49f   : > { %v1737_v9 = vpack.c.bf16 %v1729_v34, %v1728_v4  ;;  %2496 = vmatpush1.bf16.msra.mxu0 %v4737_v36  ;;  %4544 = vmatpush1.bf16.msra.mxu1 %v4737_v36  ;;  %v2151_v36 = vld [vmem:[%s7782_s18] sm:$0x3] }
 0x4a0   : > { %2497 = vmatprep.subr.bf16.mxu0 %v4742_v3  ;;  %4529 = vmatprep.subr.bf16.mxu1 %v4742_v3  ;;  %v6620_v28 = vrot.slane %v2151_v36, %v6215_v26 }
 0x4a1   : > { %1949 = vmatmul.mubr.bf16.gmra.mrb[28].mxu1 %v1737_v9 }
 0x4a3   : > { %2498 = vmatpush1.bf16.msra.mxu0 %v4740_v35  ;;  %4545 = vmatpush1.bf16.msra.mxu1 %v4740_v35 }
 0x4a4   : > { %2499 = vmatprep.subr.bf16.mxu0 %v4745_v52  ;;  %4530 = vmatprep.subr.bf16.mxu1 %v4745_v52 }
 0x4a7   : > { %2500 = vmatpush1.bf16.msra.mxu0 %v4743_v17  ;;  %4546 = vmatpush1.bf16.msra.mxu1 %v4743_v17 }
 0x4a8   : > { %2501 = vmatprep.subr.bf16.mxu0 %v4748_v59  ;;  %4531 = vmatprep.subr.bf16.mxu1 %v4748_v59 }
 0x4ab   : > { %2502 = vmatpush1.bf16.msra.mxu0 %v4746_v47  ;;  %4547 = vmatpush1.bf16.msra.mxu1 %v4746_v47 }
 0x4ac   : > { %2503 = vmatprep.subr.bf16.mxu0 %v4751_v56  ;;  %4532 = vmatprep.subr.bf16.mxu1 %v4751_v56  ;;  %v6615_v56 = vrot.slane %v2151_v36, %v6213_v25 }
 0x4af   : > { %2504 = vmatpush1.bf16.msra.mxu0 %v4749_v5  ;;  %4548 = vmatpush1.bf16.msra.mxu1 %v4749_v5 }
 0x4b0   : > { %2505 = vmatprep.subr.bf16.mxu0 %v4754_v16  ;;  %4533 = vmatprep.subr.bf16.mxu1 %v4754_v16 }
 0x4b3   : > { %2506 = vmatpush1.bf16.msra.mxu0 %v4752_v54  ;;  %4549 = vmatpush1.bf16.msra.mxu1 %v4752_v54 }
 0x4b4   : > { %2507 = vmatprep.subr.bf16.mxu0 %v4757_v38  ;;  %4534 = vmatprep.subr.bf16.mxu1 %v4757_v38 }
 0x4b7   : > { %2508 = vmatpush1.bf16.msra.mxu0 %v4755_v13  ;;  %4550 = vmatpush1.bf16.msra.mxu1 %v4755_v13 }
 0x4b8   : > { %2509 = vmatprep.subr.bf16.mxu0 %v4760_v37  ;;  %4535 = vmatprep.subr.bf16.mxu1 %v4760_v37 }
 0x4bb   : > { %2510 = vmatpush1.bf16.msra.mxu0 %v4758_v53  ;;  %4551 = vmatpush1.bf16.msra.mxu1 %v4758_v53 }
 0x53c   : > { %v1880_v14 = vpop.f32.mrb[0].mxu1 }
 0x53d   : > { %v1881_v6 = vadd.f32 %v1880_v14, %v6594_v1  ;;  %v1882_v10 = vpop.f32.mrb[1].mxu1 }
 0x53e   : > { %v1883_v22 = vadd.f32 %v1882_v10, %v6597_v24  ;;  %v1884_v7 = vpop.f32.mrb[2].mxu1 }
 0x53f   : > { %v4244_v40 = vmul.f32 -1.442695, %v1881_v6  ;;  %v1885_v41 = vadd.f32 %v1884_v7, %v6594_v1  ;;  %v1886_v43 = vpop.f32.mrb[3].mxu1 }
 0x540   : > { %v4245_v62 = vmul.f32 -1.442695, %v1883_v22  ;;  %v1887_v63 = vadd.f32 %v1886_v43, %v6597_v24 }
 0x541   : > { %4865 = vpow2.f32 %v4244_v40  ;;  %v4246_v44 = vmul.f32 -1.442695, %v1885_v41 }
 0x542   : > { %4867 = vpow2.f32 %v4245_v62  ;;  %v4247_v27 = vmul.f32 -1.442695, %v1887_v63 }
 0x543   : > { %4869 = vpow2.f32 %v4246_v44 }
 0x544   : > { %4871 = vpow2.f32 %v4247_v27  ;;  %v1890_v23 = vpop.f32.mrb[4].mxu1 }
 0x545   : > { %v1891_v18 = vadd.f32 %v1890_v23, %v6594_v1  ;;  %v1892_v31 = vpop.f32.mrb[5].mxu1 }
 0x546   : > { %v1893_v42 = vadd.f32 %v1892_v31, %v6597_v24  ;;  %v1894_v8 = vpop.f32.mrb[6].mxu1 }
 0x547   : > { %v4248_v32 = vmul.f32 -1.442695, %v1891_v18  ;;  %v1895_v21 = vadd.f32 %v1894_v8, %v6594_v1  ;;  %v1896_v39 = vpop.f32.mrb[7].mxu1 }
 0x548   : > { %v4249_v0 = vmul.f32 -1.442695, %v1893_v42  ;;  %v1897_v30 = vadd.f32 %v1896_v39, %v6597_v24 }
 0x549   : > { %4873 = vpow2.f32 %v4248_v32  ;;  %v4250_v61 = vmul.f32 -1.442695, %v1895_v21  ;;  %v5089_v21 = vld [vmem:[%s5894_s9 + $0x8] sm:$0xff] }
 0x54a   : > { %4875 = vpow2.f32 %v4249_v0  ;;  %v4251_v2 = vmul.f32 -1.442695, %v1897_v30  ;;  %v5090_v0 = vld [vmem:[%s5894_s9] sm:$0xff] }
 0x54b   : > { %v4866_v12 = vpop.eup %4865  ;;  %4877 = vpow2.f32 %v4250_v61 }
 0x54c   : > { %v4868_v51 = vpop.eup %4867  ;;  %v2055_v15 = vadd.f32 1.0, %v4866_v12  ;;  %4879 = vpow2.f32 %v4251_v2  ;;  %v1900_v57 = vpop.f32.mrb[8].mxu1 }
 0x54d   : > { %v4870_v60 = vpop.eup %4869  ;;  %v2056_v29 = vadd.f32 1.0, %v4868_v51  ;;  %v1901_v49 = vadd.f32 %v1900_v57, %v6594_v1  ;;  %v1902_v50 = vpop.f32.mrb[9].mxu1 }
 0x54e   : > { %v4872_v46 = vpop.eup %4871  ;;  %4881 = vrcp.f32 %v2055_v15  ;;  %v2057_v55 = vadd.f32 1.0, %v4870_v60  ;;  %v1903_v20 = vadd.f32 %v1902_v50, %v6597_v24  ;;  %v1904_v4 = vpop.f32.mrb[10].mxu1  ;;  %v5091_v15 = vld [vmem:[%s5894_s9 + $0x10] sm:$0xff] }
 0x54f   : > { %4883 = vrcp.f32 %v2056_v29  ;;  %v2058_v34 = vadd.f32 1.0, %v4872_v46  ;;  %v4252_v9 = vmul.f32 -1.442695, %v1901_v49  ;;  %v1905_v58 = vadd.f32 %v1904_v4, %v6594_v1  ;;  %v1906_v11 = vpop.f32.mrb[11].mxu1  ;;  %v5092_v46 = vld [vmem:[%s5894_s9 + $0x18] sm:$0xff] }
 0x550   : > { %4885 = vrcp.f32 %v2057_v55  ;;  %v4253_v48 = vmul.f32 -1.442695, %v1903_v20  ;;  %v1907_v19 = vadd.f32 %v1906_v11, %v6597_v24 }
 0x551   : > { %4887 = vrcp.f32 %v2058_v34  ;;  %v4254_v33 = vmul.f32 -1.442695, %v1905_v58 }
 0x552   : > { %4889 = vpow2.f32 %v4252_v9  ;;  %v4255_v3 = vmul.f32 -1.442695, %v1907_v19 }
 0x553   : > { %v4874_v35 = vpop.eup %4873  ;;  %4891 = vpow2.f32 %v4253_v48 }
 0x554   : > { %v4876_v52 = vpop.eup %4875  ;;  %v2059_v17 = vadd.f32 1.0, %v4874_v35  ;;  %4893 = vpow2.f32 %v4254_v33  ;;  %v1910_v59 = vpop.f32.mrb[12].mxu1 }
 0x555   : > { %v4878_v47 = vpop.eup %4877  ;;  %v2060_v5 = vadd.f32 1.0, %v4876_v52  ;;  %4895 = vpow2.f32 %v4255_v3  ;;  %v1911_v16 = vadd.f32 %v1910_v59, %v6594_v1  ;;  %v1912_v54 = vpop.f32.mrb[13].mxu1 }
 0x556   : > { %v4880_v38 = vpop.eup %4879  ;;  %4897 = vrcp.f32 %v2059_v17  ;;  %v2061_v13 = vadd.f32 1.0, %v4878_v47  ;;  %v1913_v37 = vadd.f32 %v1912_v54, %v6597_v24  ;;  %v1914_v53 = vpop.f32.mrb[14].mxu1 }
 0x557   : > { %4899 = vrcp.f32 %v2060_v5  ;;  %v2062_v14 = vadd.f32 1.0, %v4880_v38  ;;  %v4256_v6 = vmul.f32 -1.442695, %v1911_v16  ;;  %v1915_v10 = vadd.f32 %v1914_v53, %v6594_v1  ;;  %v1916_v22 = vpop.f32.mrb[15].mxu1 }
 0x558   : > { %v4882_v7 = vpop.eup %4881  ;;  %4901 = vrcp.f32 %v2061_v13  ;;  %v4257_v40 = vmul.f32 -1.442695, %v1913_v37  ;;  %v1917_v41 = vadd.f32 %v1916_v22, %v6597_v24  ;;  %v5093_v22 = vld [vmem:[%s5894_s9 + $0x28] sm:$0xff] }
 0x559   : > { %v4884_v43 = vpop.eup %4883  ;;  %v2163_v62 = vmul.f32 %v4882_v7, %v6615_v56  ;;  %4903 = vrcp.f32 %v2062_v14  ;;  %v4258_v63 = vmul.f32 -1.442695, %v1915_v10 }
 0x55a   : > { %v4886_v44 = vpop.eup %4885  ;;  %4905 = vpow2.f32 %v4256_v6  ;;  %v4259_v27 = vmul.f32 -1.442695, %v1917_v41  ;;  %v2164_v23 = vmul.f32 %v4884_v43, %v6620_v28 }
 0x55b   : > { %v4888_v18 = vpop.eup %4887  ;;  %v2165_v31 = vmul.f32 %v4886_v44, %v6615_v56  ;;  %4907 = vpow2.f32 %v4257_v40  ;;  %v2195_v30 = vmul.f32 %v5090_v0, %v2163_v62 }
 0x55c   : > { %v4890_v42 = vpop.eup %4889  ;;  %4909 = vpow2.f32 %v4258_v63  ;;  %v1920_v8 = vpop.f32.mrb[16].mxu1  ;;  %v2166_v32 = vmul.f32 %v4888_v18, %v6620_v28  ;;  %v2196_v39 = vmul.f32 %v5089_v21, %v2164_v23  ;;  %v5094_v63 = vld [vmem:[%s5894_s9 + $0x20] sm:$0xff] }
 0x55d   : > { %v4892_v61 = vpop.eup %4891  ;;  %v2063_v2 = vadd.f32 1.0, %v4890_v42  ;;  %4911 = vpow2.f32 %v4259_v27  ;;  %v1921_v12 = vadd.f32 %v1920_v8, %v6594_v1  ;;  %v1922_v51 = vpop.f32.mrb[17].mxu1  ;;  %v2197_v57 = vmul.f32 %v5091_v15, %v2165_v31  ;;  %v5095_v42 = vld [vmem:[%s5894_s9 + $0x38] sm:$0xff] }
 0x55e   : > { %v4894_v60 = vpop.eup %4893  ;;  %v2064_v29 = vadd.f32 1.0, %v4892_v61  ;;  %v1923_v49 = vadd.f32 %v1922_v51, %v6597_v24  ;;  %v1924_v50 = vpop.f32.mrb[18].mxu1  ;;  %v2198_v55 = vmul.f32 %v5092_v46, %v2166_v32  ;;  %v2228_v20 = vadd.f32 %v5089_v21, %v2196_v39 }
 0x55f   : > { %v4896_v4 = vpop.eup %4895  ;;  %4913 = vrcp.f32 %v2063_v2  ;;  %v2065_v34 = vadd.f32 1.0, %v4894_v60  ;;  %v4260_v9 = vmul.f32 -1.442695, %v1921_v12  ;;  %v1925_v58 = vadd.f32 %v1924_v50, %v6594_v1  ;;  %v1926_v11 = vpop.f32.mrb[19].mxu1  ;;  %v5096_v50 = vld [vmem:[%s5894_s9 + $0x30] sm:$0xff] }
 0x560   : > { %v4898_v48 = vpop.eup %4897  ;;  %4915 = vrcp.f32 %v2064_v29  ;;  %v2066_v19 = vadd.f32 1.0, %v4896_v4  ;;  %v4261_v33 = vmul.f32 -1.442695, %v1923_v49  ;;  %v1927_v36 = vadd.f32 %v1926_v11, %v6597_v24 }
 0x561   : > { %v4900_v3 = vpop.eup %4899  ;;  %4917 = vrcp.f32 %v2065_v34  ;;  %v4262_v35 = vmul.f32 -1.442695, %v1925_v58  ;;  %v2230_v52 = vadd.f32 %v5092_v46, %v2198_v55  ;;  %v2227_v17 = vadd.f32 %v5090_v0, %v2195_v30 }
 0x562   : > { %v4902_v59 = vpop.eup %4901  ;;  %4919 = vrcp.f32 %v2066_v19  ;;  %v4263_v47 = vmul.f32 -1.442695, %v1927_v36  ;;  %v2229_v5 = vadd.f32 %v5091_v15, %v2197_v57  ;;  %v2168_v16 = vmul.f32 %v4900_v3, %v6620_v28 }
 0x563   : > { %v4904_v54 = vpop.eup %4903  ;;  %4921 = vpow2.f32 %v4260_v9  ;;  %v2260_v38 = vpack.c.bf16 %v2230_v52, %v2228_v20  ;;  %v2167_v13 = vmul.f32 %v4898_v48, %v6615_v56  ;;  %v2169_v37 = vmul.f32 %v4902_v59, %v6615_v56  ;;  %v5097_v52 = vld [vmem:[%s5894_s9 + $0x48] sm:$0xff] }
 0x564   : > { %v4906_v53 = vpop.eup %4905  ;;  %4923 = vpow2.f32 %v4261_v33  ;;  %v1930_v14 = vpop.f32.mrb[20].mxu1  ;;  %v2259_v6 = vpack.c.bf16 %v2229_v5, %v2227_v17  ;;  %v2170_v10 = vmul.f32 %v4904_v54, %v6620_v28  ;;  %v2200_v7 = vmul.f32 %v5093_v22, %v2168_v16 }
 0x565   : > { %v4908_v40 = vpop.eup %4907  ;;  %v2067_v41 = vadd.f32 1.0, %v4906_v53  ;;  %4925 = vpow2.f32 %v4262_v35  ;;  %v1931_v43 = vadd.f32 %v1930_v14, %v6594_v1  ;;  %2511 = vmatprep.mubr.bf16.mxu0 %v2260_v38  ;;  %v1932_v62 = vpop.f32.mrb[21].mxu1  ;;  %v2199_v44 = vmul.f32 %v5094_v63, %v2167_v13 }
 0x566   : > { %v4910_v27 = vpop.eup %4909  ;;  %v2068_v23 = vadd.f32 1.0, %v4908_v40  ;;  %4927 = vpow2.f32 %v4263_v47  ;;  %v1933_v18 = vadd.f32 %v1932_v62, %v6597_v24  ;;  %2512 = vmatmul.mubr.bf16.vlgmr.msra.gmra.mrb[32].mxu0 %v2259_v6  ;;  %v1934_v31 = vpop.f32.mrb[22].mxu1  ;;  %v2202_v8 = vmul.f32 %v5095_v42, %v2170_v10  ;;  %v5098_v6 = vld [vmem:[%s5894_s9 + $0x58] sm:$0xff] }
 0x567   : > { %v4912_v32 = vpop.eup %4911  ;;  %4929 = vrcp.f32 %v2067_v41  ;;  %v2069_v21 = vadd.f32 1.0, %v4910_v27  ;;  %v4264_v39 = vmul.f32 -1.442695, %v1931_v43  ;;  %v1935_v0 = vadd.f32 %v1934_v31, %v6594_v1  ;;  %v1936_v30 = vpop.f32.mrb[23].mxu1  ;;  %v5099_v31 = vld [vmem:[%s5894_s9 + $0x40] sm:$0xff] }
 0x568   : > { %4931 = vrcp.f32 %v2068_v23  ;;  %v2070_v61 = vadd.f32 1.0, %v4912_v32  ;;  %v4265_v2 = vmul.f32 -1.442695, %v1933_v18  ;;  %v1937_v12 = vadd.f32 %v1936_v30, %v6597_v24  ;;  %v5100_v32 = vld [vmem:[%s5894_s9 + $0x50] sm:$0xff] }
 0x569   : > { %v4914_v51 = vpop.eup %4913  ;;  %4933 = vrcp.f32 %v2069_v21  ;;  %v4266_v15 = vmul.f32 -1.442695, %v1935_v0  ;;  %v2232_v57 = vadd.f32 %v5093_v22, %v2200_v7  ;;  %v2234_v60 = vadd.f32 %v5095_v42, %v2202_v8 }
 0x56a   : > { %v4916_v29 = vpop.eup %4915  ;;  %4935 = vrcp.f32 %v2070_v61  ;;  %v4267_v49 = vmul.f32 -1.442695, %v1937_v12  ;;  %v2201_v46 = vmul.f32 %v5096_v50, %v2169_v37  ;;  %v2231_v4 = vadd.f32 %v5094_v63, %v2199_v44 }
 0x56b   : > { %v4918_v55 = vpop.eup %4917  ;;  %4937 = vpow2.f32 %v4264_v39  ;;  %v2262_v20 = vpack.c.bf16 %v2234_v60, %v2232_v57  ;;  %v2172_v34 = vmul.f32 %v4916_v29, %v6620_v28  ;;  %v2171_v48 = vmul.f32 %v4914_v51, %v6615_v56 }
 0x56c   : > { %v4920_v9 = vpop.eup %4919  ;;  %4939 = vpow2.f32 %v4265_v2  ;;  %v1940_v58 = vpop.f32.mrb[24].mxu1  ;;  %v2233_v11 = vadd.f32 %v5096_v50, %v2201_v46  ;;  %v2173_v19 = vmul.f32 %v4918_v55, %v6615_v56 }
 0x56d   : > { %v4922_v33 = vpop.eup %4921  ;;  %4941 = vpow2.f32 %v4266_v15  ;;  %v1941_v36 = vadd.f32 %v1940_v58, %v6594_v1  ;;  %2521 = vmatprep.mubr.bf16.mxu0 %v2262_v20  ;;  %v1942_v3 = vpop.f32.mrb[25].mxu1  ;;  %v2174_v35 = vmul.f32 %v4920_v9, %v6620_v28  ;;  %v2204_v17 = vmul.f32 %v5097_v52, %v2172_v34 }
 0x56e   : > { %v4924_v59 = vpop.eup %4923  ;;  %v2071_v47 = vadd.f32 1.0, %v4922_v33  ;;  %4943 = vpow2.f32 %v4267_v49  ;;  %v1943_v5 = vadd.f32 %v1942_v3, %v6597_v24  ;;  %v2261_v16 = vpack.c.bf16 %v2233_v11, %v2231_v4  ;;  %v1944_v54 = vpop.f32.mrb[26].mxu1  ;;  %v5101_v4 = vld [vmem:[%s5894_s9 + $0x68] sm:$0xff] }
 0x56f   : > { %v4926_v38 = vpop.eup %4925  ;;  %v2072_v13 = vadd.f32 1.0, %v4924_v59  ;;  %v4268_v37 = vmul.f32 -1.442695, %v1941_v36  ;;  %v1945_v53 = vadd.f32 %v1944_v54, %v6594_v1  ;;  %v1946_v14 = vpop.f32.mrb[27].mxu1  ;;  %v2206_v10 = vmul.f32 %v5098_v6, %v2174_v35  ;;  %v5102_v59 = vld [vmem:[%s5894_s9 + $0x78] sm:$0xff] }
 0x570   : > { %v4928_v22 = vpop.eup %4927  ;;  %4945 = vrcp.f32 %v2071_v47  ;;  %v2073_v7 = vadd.f32 1.0, %v4926_v38  ;;  %v4269_v40 = vmul.f32 -1.442695, %v1943_v5  ;;  %2522 = vmatmul.mubr.bf16.gmra.mrb[36].mxu0 %v2261_v16  ;;  %v1947_v41 = vadd.f32 %v1946_v14, %v6597_v24  ;;  %v5103_v38 = vld [vmem:[%s5894_s9 + $0x60] sm:$0xff] }
 0x571   : > { %v4930_v43 = vpop.eup %4929  ;;  %4947 = vrcp.f32 %v2072_v13  ;;  %v2074_v62 = vadd.f32 1.0, %v4928_v22  ;;  %v4270_v63 = vmul.f32 -1.442695, %v1945_v53  ;;  %v2236_v44 = vadd.f32 %v5097_v52, %v2204_v17 }
 0x572   : > { %v4932_v27 = vpop.eup %4931  ;;  %4949 = vrcp.f32 %v2073_v7  ;;  %v4271_v23 = vmul.f32 -1.442695, %v1947_v41  ;;  %v2238_v18 = vadd.f32 %v5098_v6, %v2206_v10  ;;  %v2203_v42 = vmul.f32 %v5099_v31, %v2171_v48 }
 0x573   : > { %v4934_v8 = vpop.eup %4933  ;;  %4951 = vrcp.f32 %v2074_v62  ;;  %v2205_v21 = vmul.f32 %v5100_v32, %v2173_v19  ;;  %v2176_v39 = vmul.f32 %v4932_v27, %v6620_v28  ;;  %v2175_v0 = vmul.f32 %v4930_v43, %v6615_v56  ;;  %v5105_v62 = vld [vmem:[%s5894_s9 + $0x80] sm:$0xff] }
 0x574   : > { %v4936_v30 = vpop.eup %4935  ;;  %4953 = vpow2.f32 %v4268_v37  ;;  %v1950_v61 = vpop.f32.mrb[28].mxu1  ;;  %v2264_v2 = vpack.c.bf16 %v2238_v18, %v2236_v44  ;;  %v2235_v12 = vadd.f32 %v5099_v31, %v2203_v42  ;;  %v2177_v51 = vmul.f32 %v4934_v8, %v6615_v56  ;;  %v5106_v18 = vld [vmem:[%s5894_s9 + $0x88] sm:$0xff] }
 0x575   : > { %v4938_v15 = vpop.eup %4937  ;;  %4955 = vpow2.f32 %v4269_v40  ;;  %v1951_v57 = vadd.f32 %v1950_v61, %v6594_v1  ;;  %v1952_v60 = vpop.f32.mrb[29].mxu1  ;;  %v2237_v29 = vadd.f32 %v5100_v32, %v2205_v21  ;;  %v2178_v49 = vmul.f32 %v4936_v30, %v6620_v28  ;;  %v5107_v32 = vld [vmem:[%s5894_s9 + $0x90] sm:$0xff]  ;;  %v5108_v61 = vld [vmem:[%s5894_s9 + $0x98] sm:$0xff] }
 0x576   : > { %v4940_v50 = vpop.eup %4939  ;;  %v2075_v46 = vadd.f32 1.0, %v4938_v15  ;;  %4957 = vpow2.f32 %v4270_v63  ;;  %2531 = vmatprep.mubr.bf16.mxu0 %v2264_v2  ;;  %v1953_v55 = vadd.f32 %v1952_v60, %v6597_v24  ;;  %v1954_v20 = vpop.f32.mrb[30].mxu1  ;;  %v2208_v34 = vmul.f32 %v5101_v4, %v2176_v39 }
 0x577   : > { %v4942_v9 = vpop.eup %4941  ;;  %v2076_v58 = vadd.f32 1.0, %v4940_v50  ;;  %4959 = vpow2.f32 %v4271_v23  ;;  %v4272_v11 = vmul.f32 -1.442695, %v1951_v57  ;;  %v2263_v48 = vpack.c.bf16 %v2237_v29, %v2235_v12  ;;  %v1956_v19 = vpop.f32.mrb[31].mxu1 }
 0x578   : > { %v4944_v33 = vpop.eup %4943  ;;  %4961 = vrcp.f32 %v2075_v46  ;;  %v2077_v36 = vadd.f32 1.0, %v4942_v9  ;;  %v4273_v3 = vmul.f32 -1.442695, %v1953_v55  ;;  %v1955_v35 = vadd.f32 %v1954_v20, %v6594_v1 }
 0x579   : > { %4963 = vrcp.f32 %v2076_v58  ;;  %v2078_v52 = vadd.f32 1.0, %v4944_v33  ;;  %2532 = vmatmul.mubr.bf16.gmra.mrb[40].mxu0 %v2263_v48  ;;  %v1957_v17 = vadd.f32 %v1956_v19, %v6597_v24  ;;  %v2210_v47 = vmul.f32 %v5102_v59, %v2178_v49  ;;  %v5104_v24 = vld [vmem:[%s5894_s9 + $0x70] sm:$0xff]  ;;  %v5109_v48 = vld [vmem:[%s5894_s9 + $0xa0] sm:$0xff] }
 0x57a   : > { %v4946_v5 = vpop.eup %4945  ;;  %4965 = vrcp.f32 %v2077_v36  ;;  %v4274_v16 = vmul.f32 -1.442695, %v1955_v35  ;;  %v2240_v54 = vadd.f32 %v5101_v4, %v2208_v34  ;;  %v2207_v13 = vmul.f32 %v5103_v38, %v2175_v0 }
 0x57b   : > { %v4948_v37 = vpop.eup %4947  ;;  %v2179_v53 = vmul.f32 %v4946_v5, %v6615_v56  ;;  %4967 = vrcp.f32 %v2078_v52  ;;  %v4275_v1 = vmul.f32 -1.442695, %v1957_v17  ;;  %v2242_v14 = vadd.f32 %v5102_v59, %v2210_v47  ;;  %v5111_v59 = vld [vmem:[%s5894_s9 + $0xb0] sm:$0xff] }
 0x57c   : > { %v4950_v6 = vpop.eup %4949  ;;  %4969 = vpow2.f32 %v4272_v11  ;;  %v2209_v10 = vmul.f32 %v5104_v24, %v2177_v51  ;;  %v2239_v22 = vadd.f32 %v5103_v38, %v2207_v13  ;;  %v2180_v7 = vmul.f32 %v4948_v37, %v6620_v28 }
 0x57d   : > { %v4952_v40 = vpop.eup %4951  ;;  %v2181_v41 = vmul.f32 %v4950_v6, %v6615_v56  ;;  %4971 = vpow2.f32 %v4273_v3  ;;  %v2266_v43 = vpack.c.bf16 %v2242_v14, %v2240_v54  ;;  %v2211_v63 = vmul.f32 %v5105_v62, %v2179_v53  ;;  %v5110_v3 = vld [vmem:[%s5894_s9 + $0xa8] sm:$0xff]  ;;  %v5112_v54 = vld [vmem:[%s5894_s9 + $0xb8] sm:$0xff] }
 0x57e   : > { %v4954_v44 = vpop.eup %4953  ;;  %4973 = vpow2.f32 %v4274_v16  ;;  %v2241_v27 = vadd.f32 %v5104_v24, %v2209_v10  ;;  %v2182_v23 = vmul.f32 %v4952_v40, %v6620_v28  ;;  %v2212_v31 = vmul.f32 %v5106_v18, %v2180_v7 }
 0x57f   : > { %v4956_v42 = vpop.eup %4955  ;;  %v2079_v8 = vadd.f32 1.0, %v4954_v44  ;;  %4975 = vpow2.f32 %v4275_v1  ;;  %2541 = vmatprep.mubr.bf16.mxu0 %v2266_v43  ;;  %v2213_v21 = vmul.f32 %v5107_v32, %v2181_v41  ;;  %v2243_v15 = vadd.f32 %v5105_v62, %v2211_v63 }
 0x580   : > { %v4958_v39 = vpop.eup %4957  ;;  %v2080_v0 = vadd.f32 1.0, %v4956_v42  ;;  %v2265_v30 = vpack.c.bf16 %v2241_v27, %v2239_v22  ;;  %v2214_v2 = vmul.f32 %v5108_v61, %v2182_v23  ;;  %v2244_v49 = vadd.f32 %v5106_v18, %v2212_v31  ;;  %v5113_v27 = vld [vmem:[%s5894_s9 + $0xc0] sm:$0xff]  ;;  %v5114_v31 = vld [vmem:[%s5894_s9 + $0xc8] sm:$0xff] }
 0x581   : > { %v4960_v12 = vpop.eup %4959  ;;  %4977 = vrcp.f32 %v2079_v8  ;;  %v2081_v51 = vadd.f32 1.0, %v4958_v39  ;;  %v2245_v57 = vadd.f32 %v5107_v32, %v2213_v21  ;;  %v5115_v8 = vld [vmem:[%s5894_s9 + $0xd0] sm:$0xff]  ;;  %v5116_v21 = vld [vmem:[%s5894_s9 + $0xd8] sm:$0xff] }
 0x582   : > { %v4962_v60 = vpop.eup %4961  ;;  %4979 = vrcp.f32 %v2080_v0  ;;  %v2082_v29 = vadd.f32 1.0, %v4960_v12  ;;  %2542 = vmatmul.mubr.bf16.gmra.mrb[44].mxu0 %v2265_v30  ;;  %v2246_v50 = vadd.f32 %v5108_v61, %v2214_v2 }
 0x583   : > { %v4964_v46 = vpop.eup %4963  ;;  %4981 = vrcp.f32 %v2081_v51  ;;  %v2267_v55 = vpack.c.bf16 %v2245_v57, %v2243_v15  ;;  %v2183_v20 = vmul.f32 %v4962_v60, %v6615_v56  ;;  %3602 = vmatprep.mubr.bf16.mxu0 %v5478_v45 }
 0x584   : > { %v4966_v4 = vpop.eup %4965  ;;  %4983 = vrcp.f32 %v2082_v29  ;;  %v2268_v34 = vpack.c.bf16 %v2246_v50, %v2244_v49  ;;  %v2184_v9 = vmul.f32 %v4964_v46, %v6620_v28 }
 0x585   : > { %v4968_v58 = vpop.eup %4967  ;;  %v2185_v11 = vmul.f32 %v4966_v4, %v6615_v56  ;;  %v2215_v19 = vmul.f32 %v5109_v48, %v2183_v20 }
 0x586   : > { %v4970_v33 = vpop.eup %4969  ;;  %2551 = vmatprep.mubr.bf16.mxu1 %v2268_v34  ;;  %v2186_v36 = vmul.f32 %v4968_v58, %v6620_v28  ;;  %v2216_v35 = vmul.f32 %v5110_v3, %v2184_v9  ;;  %v5118_v34 = vld [vmem:[%s5894_s9 + $0xe8] sm:$0xff]  ;;  %v5119_v58 = vld [vmem:[%s5894_s9 + $0xf0] sm:$0xff] }
 0x587   : > { %v4972_v52 = vpop.eup %4971  ;;  %v2083_v17 = vadd.f32 1.0, %v4970_v33  ;;  %2552 = vmatmul.mubr.bf16.vlgmr.msra.gmra.mrb[32].mxu1 %v2267_v55  ;;  %v2217_v47 = vmul.f32 %v5111_v59, %v2185_v11  ;;  %v2247_v53 = vadd.f32 %v5109_v48, %v2215_v19  ;;  %v5117_v55 = vld [vmem:[%s5894_s9 + $0xe0] sm:$0xff]  ;;  %v5120_v48 = vld [vmem:[%s5894_s9 + $0xf8] sm:$0xff]  ;;  %s7349_s9 = scalar_lea.vmem [#allocation14], %s5902_s2  ;;  %s7511_s2 = sshll.u32 %s5625_s26, 11 }
 0x588   : > { %v4974_v5 = vpop.eup %4973  ;;  %v2084_v16 = vadd.f32 1.0, %v4972_v52  ;;  %v2218_v38 = vmul.f32 %v5112_v54, %v2186_v36  ;;  %v2248_v6 = vadd.f32 %v5110_v3, %v2216_v35  ;;  %s3947_s19 = sshll.u32 %s7349_s9, 4  ;;  %s7543_s7 = scalar_lea.hbm %s7789_s20, %s7511_s2  ;;  %s7535_s19 = int_to_ptr.vmem [resolvable:$true] %s3947_s19 }
 0x589   : > { %v4976_v13 = vpop.eup %4975  ;;  %4985 = vrcp.f32 %v2083_v17  ;;  %v2085_v37 = vadd.f32 1.0, %v4974_v5  ;;  %v2249_v1 = vadd.f32 %v5111_v59, %v2217_v47  ;;  %s5321_s18 = scalar_lea.vmem %s7535_s19, 2048 }
 0x58a   : > { %4987 = vrcp.f32 %v2084_v16  ;;  %v2086_v14 = vadd.f32 1.0, %v4976_v13  ;;  %v2250_v24 = vadd.f32 %v5112_v54, %v2218_v38  ;;  %p5322_p2 = scmp.ne.s32.totalorder %s7535_s19, %s5321_s18 }
 0x58b   : > { %v4978_v10 = vpop.eup %4977  ;;  %4989 = vrcp.f32 %v2085_v37  ;;  %v2269_v22 = vpack.c.bf16 %v2249_v1, %v2247_v53 }
 0x58c   : > { %v4980_v7 = vpop.eup %4979  ;;  %4991 = vrcp.f32 %v2086_v14  ;;  %v2270_v40 = vpack.c.bf16 %v2250_v24, %v2248_v6  ;;  %v2187_v41 = vmul.f32 %v4978_v10, %v6615_v56  ;;  %p5323_p6 = pnand %p5322_p2, %p7790_p13 }
 0x58d   : > { %v4982_v43 = vpop.eup %4981  ;;  %v2188_v62 = vmul.f32 %v4980_v7, %v6620_v28 }
 0x58e   : > { %v4984_v63 = vpop.eup %4983  ;;  %2561 = vmatprep.mubr.bf16.mxu1 %v2270_v40  ;;  %v2189_v44 = vmul.f32 %v4982_v43, %v6615_v56  ;;  %v2219_v23 = vmul.f32 %v5113_v27, %v2187_v41  ;;  %p5324_p9 = pneg %p5323_p6 }
 0x58f   : > { %2562 = vmatmul.mubr.bf16.gmra.mrb[36].mxu1 %v2269_v22  ;;  %v2190_v18 = vmul.f32 %v4984_v63, %v6620_v28  ;;  %v2220_v42 = vmul.f32 %v5114_v31, %v2188_v62 }
 0x590   : > { %v2221_v32 = vmul.f32 %v5115_v8, %v2189_v44  ;;  %v2251_v0 = vadd.f32 %v5113_v27, %v2219_v23 }
 0x591   : > { %v2222_v39 = vmul.f32 %v5116_v21, %v2190_v18  ;;  %v2252_v2 = vadd.f32 %v5114_v31, %v2220_v42 }
 0x592   : > { %v2253_v30 = vadd.f32 %v5115_v8, %v2221_v32 }
 0x593   : > { %v4986_v61 = vpop.eup %4985  ;;  %v2254_v12 = vadd.f32 %v5116_v21, %v2222_v39 }
 0x594   : > { %v4988_v51 = vpop.eup %4987  ;;  %v2271_v15 = vpack.c.bf16 %v2253_v30, %v2251_v0  ;;  %v2191_v57 = vmul.f32 %v4986_v61, %v6615_v56 }
 0x595   : > { %v4990_v60 = vpop.eup %4989  ;;  %v2272_v29 = vpack.c.bf16 %v2254_v12, %v2252_v2  ;;  %v2192_v49 = vmul.f32 %v4988_v51, %v6620_v28 }
 0x596   : > { %v4992_v50 = vpop.eup %4991  ;;  %v2193_v46 = vmul.f32 %v4990_v60, %v6615_v56  ;;  %v2223_v20 = vmul.f32 %v5117_v55, %v2191_v57  ;;  %v2307_v56 = vld [vmem:[%s7695_s12] sm:$0x3] }
 0x597   : > { %2571 = vmatprep.mubr.bf16.mxu1 %v2272_v29  ;;  %v2194_v4 = vmul.f32 %v4992_v50, %v6620_v28  ;;  %v2224_v9 = vmul.f32 %v5118_v34, %v2192_v49  ;;  %v6709_v28 = vrot.slane %v2307_v56, %v6213_v25  ;;  %v6712_v59 = vrot.slane %v2307_v56, %v6215_v26 }
 0x598   : > { %2572 = vmatmul.mubr.bf16.gmra.mrb[40].mxu1 %v2271_v15  ;;  %v2225_v11 = vmul.f32 %v5119_v58, %v2193_v46  ;;  %v2255_v33 = vadd.f32 %v5117_v55, %v2223_v20 }
 0x599   : > { %v2226_v19 = vmul.f32 %v5120_v48, %v2194_v4  ;;  %v2256_v3 = vadd.f32 %v5118_v34, %v2224_v9 }
 0x59a   : > { %v2257_v36 = vadd.f32 %v5119_v58, %v2225_v11 }
 0x59b   : > { %v2258_v35 = vadd.f32 %v5120_v48, %v2226_v19 }
 0x59c   : > { %v2273_v52 = vpack.c.bf16 %v2257_v36, %v2255_v33 }
 0x59d   : > { %v2274_v17 = vpack.c.bf16 %v2258_v35, %v2256_v3 }
 0x59f   : > { %2581 = vmatprep.mubr.bf16.mxu1 %v2274_v17 }
 0x5a0   : > { %2582 = vmatmul.mubr.bf16.gmra.mrb[44].mxu1 %v2273_v52 }
 0x639   : > { %v2513_v47 = vpop.f32.mrb[32].mxu0 }
 0x63a   : > { %v6715_v5 = vadd.f32 %v2513_v47, %v6709_v28  ;;  %v2515_v16 = vpop.f32.mrb[33].mxu0 }
 0x63b   : > { %v6718_v54 = vadd.f32 %v2515_v16, %v6712_v59  ;;  %v2517_v38 = vpop.f32.mrb[34].mxu0 }
 0x63c   : > { %v6721_v13 = vadd.f32 %v2517_v38, %v6709_v28  ;;  %v2519_v37 = vpop.f32.mrb[35].mxu0 }
 0x63d   : > { %v6724_v53 = vadd.f32 %v2519_v37, %v6712_v59  ;;  %v2594_v1 = vadd.f32 %v6718_v54, %v6715_v5 }
 0x63f   : > { %2595 = vadd.xlane.f32.xlu0 %v2594_v1  ;;  %v2597_v14 = vadd.f32 %v6724_v53, %v6721_v13 }
 0x641   : > { %2598 = vadd.xlane.f32.xlu1 %v2597_v14 }
 0x643   : > { %v2523_v6 = vpop.f32.mrb[36].mxu0 }
 0x644   : > { %v6731_v24 = vadd.f32 %v2523_v6, %v6709_v28  ;;  %v2525_v10 = vpop.f32.mrb[37].mxu0 }
 0x645   : > { %v6734_v22 = vadd.f32 %v2525_v10, %v6712_v59  ;;  %v2527_v7 = vpop.f32.mrb[38].mxu0 }
 0x646   : > { %v6737_v40 = vadd.f32 %v2527_v7, %v6709_v28  ;;  %v2529_v41 = vpop.f32.mrb[39].mxu0 }
 0x647   : > { %v6740_v43 = vadd.f32 %v2529_v41, %v6712_v59  ;;  %v2600_v62 = vadd.f32 %v6734_v22, %v6731_v24 }
 0x649   : > { %2601 = vadd.xlane.f32.xlu0 %v2600_v62  ;;  %v2603_v63 = vadd.f32 %v6740_v43, %v6737_v40 }
 0x64b   : > { %2604 = vadd.xlane.f32.xlu1 %v2603_v63 }
 0x64c   : > { %v2533_v44 = vpop.f32.mrb[40].mxu0 }
 0x64d   : > { %v6747_v27 = vadd.f32 %v2533_v44, %v6709_v28  ;;  %v2535_v23 = vpop.f32.mrb[41].mxu0 }
 0x64e   : > { %v6750_v18 = vadd.f32 %v2535_v23, %v6712_v59  ;;  %v2537_v31 = vpop.f32.mrb[42].mxu0 }
 0x64f   : > { %v6753_v42 = vadd.f32 %v2537_v31, %v6709_v28  ;;  %v2539_v8 = vpop.f32.mrb[43].mxu0 }
 0x650   : > { %v6756_v32 = vadd.f32 %v2539_v8, %v6712_v59  ;;  %v2606_v21 = vadd.f32 %v6750_v18, %v6747_v27 }
 0x652   : > { %2607 = vadd.xlane.f32.xlu0 %v2606_v21  ;;  %v2609_v39 = vadd.f32 %v6756_v32, %v6753_v42 }
 0x654   : > { %2610 = vadd.xlane.f32.xlu1 %v2609_v39 }
 0x655   : > { %v2543_v0 = vpop.f32.mrb[44].mxu0 }
 0x656   : > { %v6763_v30 = vadd.f32 %v2543_v0, %v6709_v28  ;;  %v2545_v61 = vpop.f32.mrb[45].mxu0 }
 0x657   : > { %v6766_v2 = vadd.f32 %v2545_v61, %v6712_v59  ;;  %v2547_v12 = vpop.f32.mrb[46].mxu0 }
 0x658   : > { %v6769_v51 = vadd.f32 %v2547_v12, %v6709_v28  ;;  %v2549_v15 = vpop.f32.mrb[47].mxu0 }
 0x659   : > { %v6772_v57 = vadd.f32 %v2549_v15, %v6712_v59  ;;  %v2612_v60 = vadd.f32 %v6766_v2, %v6763_v30  ;;  %v4761_v15 = vld [vmem:[#allocation11 + $0x40] sm:$0xff]  }
 0x65a   : > { %v2553_v29 = vpop.f32.mrb[32].mxu1  ;;  %4456 = vmatprep.subr.bf16.mxu1 %v4761_v15 }
 0x65b   : > { %2613 = vadd.xlane.f32.xlu0 %v2612_v60  ;;  %v2615_v49 = vadd.f32 %v6772_v57, %v6769_v51  ;;  %v6779_v50 = vadd.f32 %v2553_v29, %v6709_v28  ;;  %v2555_v46 = vpop.f32.mrb[33].mxu1  ;;  %v4762_v60 = vld [vmem:[#allocation11] sm:$0xff]   ;;  %v4763_v29 = vld [vmem:[#allocation11 + $0x48] sm:$0xff]  }
 0x65c   : > { %v6782_v55 = vadd.f32 %v2555_v46, %v6712_v59  ;;  %v2557_v20 = vpop.f32.mrb[34].mxu1  ;;  %4457 = vmatpush3.bf16.msra.mxu1 %v4762_v60 }
 0x65d   : > { %2616 = vadd.xlane.f32.xlu1 %v2615_v49  ;;  %v6785_v4 = vadd.f32 %v2557_v20, %v6709_v28  ;;  %v2559_v34 = vpop.f32.mrb[35].mxu1  ;;  %4458 = vmatprep.subr.bf16.mxu1 %v4763_v29 }
 0x65e   : > { %v6788_v9 = vadd.f32 %v2559_v34, %v6712_v59  ;;  %v2618_v58 = vadd.f32 %v6782_v55, %v6779_v50 }
 0x660   : > { %2619 = vadd.xlane.f32.xlu0 %v2618_v58  ;;  %v2621_v11 = vadd.f32 %v6788_v9, %v6785_v4 }
 0x662   : > { %v2563_v48 = vpop.f32.mrb[36].mxu1  ;;  %2622 = vadd.xlane.f32.xlu1 %v2621_v11 }
 0x663   : > { %v6795_v19 = vadd.f32 %v2563_v48, %v6709_v28  ;;  %v2565_v33 = vpop.f32.mrb[37].mxu1 }
 0x664   : > { %v6798_v36 = vadd.f32 %v2565_v33, %v6712_v59  ;;  %v2567_v3 = vpop.f32.mrb[38].mxu1 }
 0x665   : > { %v6801_v35 = vadd.f32 %v2567_v3, %v6709_v28  ;;  %v2569_v52 = vpop.f32.mrb[39].mxu1 }
 0x666   : > { %v6804_v17 = vadd.f32 %v2569_v52, %v6712_v59  ;;  %v2624_v56 = vadd.f32 %v6798_v36, %v6795_v19 }
 0x668   : > { %2625 = vadd.xlane.f32.xlu0 %v2624_v56  ;;  %v2627_v47 = vadd.f32 %v6804_v17, %v6801_v35 }
 0x66a   : > { %2628 = vadd.xlane.f32.xlu1 %v2627_v47 }
 0x66b   : > { %v2573_v16 = vpop.f32.mrb[40].mxu1 }
 0x66c   : > { %v6811_v38 = vadd.f32 %v2573_v16, %v6709_v28  ;;  %v2575_v37 = vpop.f32.mrb[41].mxu1 }
 0x66d   : > { %v6814_v1 = vadd.f32 %v2575_v37, %v6712_v59  ;;  %v2577_v14 = vpop.f32.mrb[42].mxu1 }
 0x66e   : > { %v6817_v6 = vadd.f32 %v2577_v14, %v6709_v28  ;;  %v2579_v10 = vpop.f32.mrb[43].mxu1 }
 0x66f   : > { %v6820_v7 = vadd.f32 %v2579_v10, %v6712_v59  ;;  %v2630_v41 = vadd.f32 %v6814_v1, %v6811_v38 }
 0x671   : > { %2631 = vadd.xlane.f32.xlu0 %v2630_v41  ;;  %v2633_v62 = vadd.f32 %v6820_v7, %v6817_v6 }
 0x673   : > { %2634 = vadd.xlane.f32.xlu1 %v2633_v62  ;;  %v2583_v63 = vpop.f32.mrb[44].mxu1 }
 0x674   : > { %v6827_v44 = vadd.f32 %v2583_v63, %v6709_v28  ;;  %v2585_v23 = vpop.f32.mrb[45].mxu1 }
 0x675   : > { %v6830_v31 = vadd.f32 %v2585_v23, %v6712_v59  ;;  %v2587_v8 = vpop.f32.mrb[46].mxu1 }
 0x676   : > { %v6833_v21 = vadd.f32 %v2587_v8, %v6709_v28  ;;  %v2589_v39 = vpop.f32.mrb[47].mxu1 }
 0x677   : > { %v6836_v0 = vadd.f32 %v2589_v39, %v6712_v59  ;;  %v2636_v61 = vadd.f32 %v6830_v31, %v6827_v44 }
 0x679   : > { %2637 = vadd.xlane.f32.xlu0 %v2636_v61  ;;  %v2639_v12 = vadd.f32 %v6836_v0, %v6833_v21 }
 0x67b   : > { %2640 = vadd.xlane.f32.xlu1 %v2639_v12 }
 0x6cc   : > { %v2596_v28 = vpop.xlane.xlu0 %2595 }
 0x6cd   : > { %v2642_v49 = vmul.f32 0.00390625, %v2596_v28 }
 0x6ce   : > { %v2599_v46 = vpop.xlane.xlu1 %2598 }
 0x6cf   : > { %v6843_v59 = vsub.f32 %v6715_v5, %v2642_v49  ;;  %v6846_v20 = vsub.f32 %v6718_v54, %v2642_v49  ;;  %v2643_v34 = vmul.f32 0.00390625, %v2599_v46 }
 0x6d1   : > { %v6849_v58 = vsub.f32 %v6721_v13, %v2643_v34  ;;  %v6852_v11 = vsub.f32 %v6724_v53, %v2643_v34  ;;  %v2690_v48 = vmul.f32 %v6843_v59, %v6843_v59  ;;  %v2691_v33 = vmul.f32 %v6846_v20, %v6846_v20  ;;  %v4764_v34 = vld [vmem:[#allocation11 + $0x8] sm:$0xff]  }
 0x6d2   : > { %4459 = vmatpush3.bf16.msra.mxu1 %v4764_v34 }
 0x6d3   : > { %v2722_v3 = vadd.f32 %v2691_v33, %v2690_v48  ;;  %v2692_v5 = vmul.f32 %v6849_v58, %v6849_v58  ;;  %v2693_v54 = vmul.f32 %v6852_v11, %v6852_v11 }
 0x6d5   : > { %2723 = vadd.xlane.f32.xlu0 %v2722_v3  ;;  %v2725_v52 = vadd.f32 %v2693_v54, %v2692_v5  ;;  %v4765_v54 = vld [vmem:[#allocation11 + $0x50] sm:$0xff]  }
 0x6d6   : > { %v2602_v13 = vpop.xlane.xlu0 %2601  ;;  %4460 = vmatprep.subr.bf16.mxu1 %v4765_v54  ;;  %v4772_v54 = vld [vmem:[#allocation11 + $0x28] sm:$0xff]  }
 0x6d7   : > { %v2644_v56 = vmul.f32 0.00390625, %v2602_v13  ;;  %2726 = vadd.xlane.f32.xlu1 %v2725_v52  ;;  %v4766_v52 = vld [vmem:[#allocation11 + $0x10] sm:$0xff]  }
 0x6d8   : > { %v2605_v53 = vpop.xlane.xlu1 %2604  ;;  %4461 = vmatpush3.bf16.msra.mxu1 %v4766_v52 }
 0x6d9   : > { %v6863_v47 = vsub.f32 %v6731_v24, %v2644_v56  ;;  %v6866_v16 = vsub.f32 %v6734_v22, %v2644_v56  ;;  %v2645_v37 = vmul.f32 0.00390625, %v2605_v53 }
 0x6db   : > { %v6869_v14 = vsub.f32 %v6737_v40, %v2645_v37  ;;  %v6872_v10 = vsub.f32 %v6740_v43, %v2645_v37  ;;  %v2694_v41 = vmul.f32 %v6863_v47, %v6863_v47  ;;  %v2695_v62 = vmul.f32 %v6866_v16, %v6866_v16 }
 0x6dd   : > { %v2728_v63 = vadd.f32 %v2695_v62, %v2694_v41  ;;  %v2696_v24 = vmul.f32 %v6869_v14, %v6869_v14  ;;  %v2697_v22 = vmul.f32 %v6872_v10, %v6872_v10 }
 0x6df   : > { %v2608_v23 = vpop.xlane.xlu0 %2607  ;;  %2729 = vadd.xlane.f32.xlu0 %v2728_v63  ;;  %v2731_v40 = vadd.f32 %v2697_v22, %v2696_v24 }
 0x6e0   : > { %v2646_v8 = vmul.f32 0.00390625, %v2608_v23 }
 0x6e1   : > { %v2611_v39 = vpop.xlane.xlu1 %2610  ;;  %2732 = vadd.xlane.f32.xlu1 %v2731_v40  ;;  %v4768_v40 = vld [vmem:[#allocation11 + $0x18] sm:$0xff]  }
 0x6e2   : > { %v6883_v43 = vsub.f32 %v6747_v27, %v2646_v8  ;;  %v6886_v61 = vsub.f32 %v6750_v18, %v2646_v8  ;;  %v2647_v12 = vmul.f32 0.00390625, %v2611_v39 }
 0x6e4   : > { %v6889_v15 = vsub.f32 %v6753_v42, %v2647_v12  ;;  %v6892_v60 = vsub.f32 %v6756_v32, %v2647_v12  ;;  %v2698_v29 = vmul.f32 %v6883_v43, %v6883_v43  ;;  %v2699_v28 = vmul.f32 %v6886_v61, %v6886_v61 }
 0x6e6   : > { %v2734_v49 = vadd.f32 %v2699_v28, %v2698_v29  ;;  %v2700_v27 = vmul.f32 %v6889_v15, %v6889_v15  ;;  %v2701_v18 = vmul.f32 %v6892_v60, %v6892_v60 }
 0x6e8   : > { %v2614_v46 = vpop.xlane.xlu0 %2613  ;;  %2735 = vadd.xlane.f32.xlu0 %v2734_v49  ;;  %v2737_v42 = vadd.f32 %v2701_v18, %v2700_v27  ;;  %v4770_v27 = vld [vmem:[#allocation11 + $0x20] sm:$0xff]  }
 0x6e9   : > { %v2648_v48 = vmul.f32 0.00390625, %v2614_v46 }
 0x6ea   : > { %v2617_v32 = vpop.xlane.xlu1 %2616  ;;  %2738 = vadd.xlane.f32.xlu1 %v2737_v42  ;;  %v4771_v42 = vld [vmem:[#allocation11 + $0x68] sm:$0xff]  }
 0x6eb   : > { %v6903_v33 = vsub.f32 %v6763_v30, %v2648_v48  ;;  %v6906_v3 = vsub.f32 %v6766_v2, %v2648_v48  ;;  %v2649_v5 = vmul.f32 0.00390625, %v2617_v32 }
 0x6ed   : > { %v6909_v13 = vsub.f32 %v6769_v51, %v2649_v5  ;;  %v6912_v56 = vsub.f32 %v6772_v57, %v2649_v5  ;;  %v2620_v53 = vpop.xlane.xlu0 %2619  ;;  %v2702_v37 = vmul.f32 %v6903_v33, %v6903_v33  ;;  %v2703_v30 = vmul.f32 %v6906_v3, %v6906_v3  ;;  %v4767_v57 = vld [vmem:[#allocation11 + $0x58] sm:$0xff]  }
 0x6ee   : > { %v2650_v41 = vmul.f32 0.00390625, %v2620_v53  ;;  %4462 = vmatprep.subr.bf16.mxu1 %v4767_v57 }
 0x6ef   : > { %v2740_v2 = vadd.f32 %v2703_v30, %v2702_v37  ;;  %v2623_v62 = vpop.xlane.xlu1 %2622  ;;  %v2704_v63 = vmul.f32 %v6909_v13, %v6909_v13  ;;  %v2705_v51 = vmul.f32 %v6912_v56, %v6912_v56  ;;  %4463 = vmatpush3.bf16.msra.mxu1 %v4768_v40  ;;  %v4773_v30 = vld [vmem:[#allocation11 + $0x70] sm:$0xff]  }
 0x6f0   : > { %v6923_v24 = vsub.f32 %v6779_v50, %v2650_v41  ;;  %v6926_v22 = vsub.f32 %v6782_v55, %v2650_v41  ;;  %v2651_v23 = vmul.f32 0.00390625, %v2623_v62  ;;  %v4769_v55 = vld [vmem:[#allocation11 + $0x60] sm:$0xff]   ;;  %v4775_v62 = vld [vmem:[#allocation11 + $0x78] sm:$0xff]  }
 0x6f1   : > { %2741 = vadd.xlane.f32.xlu0 %v2740_v2  ;;  %v2743_v8 = vadd.f32 %v2705_v51, %v2704_v63  ;;  %4464 = vmatprep.subr.bf16.mxu1 %v4769_v55 }
 0x6f2   : > { %v6929_v39 = vsub.f32 %v6785_v4, %v2651_v23  ;;  %v6932_v12 = vsub.f32 %v6788_v9, %v2651_v23  ;;  %v2706_v29 = vmul.f32 %v6923_v24, %v6923_v24  ;;  %v2707_v50 = vmul.f32 %v6926_v22, %v6926_v22  ;;  %v4776_v23 = vld [vmem:[#allocation11 + $0x38] sm:$0xff]  }
 0x6f3   : > { %2744 = vadd.xlane.f32.xlu1 %v2743_v8  ;;  %4465 = vmatpush3.bf16.msra.mxu1 %v4770_v27 }
 0x6f4   : > { %v2746_v28 = vadd.f32 %v2707_v50, %v2706_v29  ;;  %v2708_v49 = vmul.f32 %v6929_v39, %v6929_v39  ;;  %v2709_v4 = vmul.f32 %v6932_v12, %v6932_v12  ;;  %4466 = vmatprep.subr.bf16.mxu1 %v4771_v42 }
 0x6f5   : > { %v2626_v18 = vpop.xlane.xlu0 %2625 }
 0x6f6   : > { %v2652_v9 = vmul.f32 0.00390625, %v2626_v18  ;;  %2747 = vadd.xlane.f32.xlu0 %v2746_v28  ;;  %v2749_v46 = vadd.f32 %v2709_v4, %v2708_v49 }
 0x6f7   : > { %v2629_v34 = vpop.xlane.xlu1 %2628  ;;  %4467 = vmatpush3.bf16.msra.mxu1 %v4772_v54 }
 0x6f8   : > { %v6943_v48 = vsub.f32 %v6795_v19, %v2652_v9  ;;  %v6946_v32 = vsub.f32 %v6798_v36, %v2652_v9  ;;  %v2653_v5 = vmul.f32 0.00390625, %v2629_v34  ;;  %2750 = vadd.xlane.f32.xlu1 %v2749_v46  ;;  %4468 = vmatprep.subr.bf16.mxu1 %v4773_v30 }
 0x6fa   : > { %v6949_v52 = vsub.f32 %v6801_v35, %v2653_v5  ;;  %v6952_v53 = vsub.f32 %v6804_v17, %v2653_v5  ;;  %v2710_v37 = vmul.f32 %v6943_v48, %v6943_v48  ;;  %v2711_v19 = vmul.f32 %v6946_v32, %v6946_v32  ;;  %v4774_v35 = vld [vmem:[#allocation11 + $0x30] sm:$0xff]  }
 0x6fb   : > { %4469 = vmatpush3.bf16.msra.mxu1 %v4774_v35 }
 0x6fc   : > { %v2752_v36 = vadd.f32 %v2711_v19, %v2710_v37  ;;  %v2712_v41 = vmul.f32 %v6949_v52, %v6949_v52  ;;  %v2713_v2 = vmul.f32 %v6952_v53, %v6952_v53  ;;  %4470 = vmatprep.subr.bf16.mxu1 %v4775_v62 }
 0x6fe   : > { %v2632_v17 = vpop.xlane.xlu0 %2631  ;;  %2753 = vadd.xlane.f32.xlu0 %v2752_v36  ;;  %v2755_v63 = vadd.f32 %v2713_v2, %v2712_v41 }
 0x6ff   : > { %v2654_v51 = vmul.f32 0.00390625, %v2632_v17  ;;  %4471 = vmatpush3.bf16.msra.mxu1 %v4776_v23  ;;  %v2592_v17 = vld [vmem:[%s7696_s13] sm:$0x3] }
 0x700   : > { %v2635_v57 = vpop.xlane.xlu1 %2634  ;;  %2756 = vadd.xlane.f32.xlu1 %v2755_v63 }
 0x701   : > { %v6963_v40 = vsub.f32 %v6811_v38, %v2654_v51  ;;  %v6966_v8 = vsub.f32 %v6814_v1, %v2654_v51  ;;  %v2655_v29 = vmul.f32 0.00390625, %v2635_v57 }
 0x703   : > { %v6969_v50 = vsub.f32 %v6817_v6, %v2655_v29  ;;  %v6972_v55 = vsub.f32 %v6820_v7, %v2655_v29  ;;  %v2714_v28 = vmul.f32 %v6963_v40, %v6963_v40  ;;  %v2715_v49 = vmul.f32 %v6966_v8, %v6966_v8  ;;  %v2593_v29 = vld [vmem:[%s7783_s29] sm:$0x3]  ;;  %s3963_s29 = sshll.u32 %s7354_s3, 4  ;;  %s7545_s29 = int_to_ptr.vmem [resolvable:$true] %s3963_s29 }
 0x705   : > { %v2758_v4 = vadd.f32 %v2715_v49, %v2714_v28  ;;  %v2716_v38 = vmul.f32 %v6969_v50, %v6969_v50  ;;  %v2717_v1 = vmul.f32 %v6972_v55, %v6972_v55  ;;  %v7009_v28 = vrot.slane %v2592_v17, %v6213_v25 }
 0x706   : > { %v2638_v27 = vpop.xlane.xlu0 %2637  ;;  %v7012_v49 = vrot.slane %v2592_v17, %v6215_v26 }
 0x707   : > { %v2656_v18 = vmul.f32 0.00390625, %v2638_v27  ;;  %2759 = vadd.xlane.f32.xlu0 %v2758_v4  ;;  %v2761_v6 = vadd.f32 %v2717_v1, %v2716_v38 }
 0x708   : > { %v2641_v9 = vpop.xlane.xlu1 %2640 }
 0x709   : > { %v6983_v7 = vsub.f32 %v6827_v44, %v2656_v18  ;;  %v6986_v46 = vsub.f32 %v6830_v31, %v2656_v18  ;;  %v2657_v42 = vmul.f32 0.00390625, %v2641_v9  ;;  %2762 = vadd.xlane.f32.xlu1 %v2761_v6  ;;  %v7017_v18 = vrot.slane %v2593_v29, %v6215_v26 }
 0x70a   : > { %v7020_v9 = vrot.slane %v2593_v29, %v6213_v25 }
 0x70b   : > { %v6989_v34 = vsub.f32 %v6833_v21, %v2657_v42  ;;  %v6992_v5 = vsub.f32 %v6836_v0, %v2657_v42  ;;  %v2718_v54 = vmul.f32 %v6983_v7, %v6983_v7  ;;  %v2719_v37 = vmul.f32 %v6986_v46, %v6986_v46 }
 0x70d   : > { %v2764_v19 = vadd.f32 %v2719_v37, %v2718_v54  ;;  %v2720_v44 = vmul.f32 %v6989_v34, %v6989_v34  ;;  %v2721_v31 = vmul.f32 %v6992_v5, %v6992_v5 }
 0x70f   : > { %2765 = vadd.xlane.f32.xlu0 %v2764_v19  ;;  %v2767_v30 = vadd.f32 %v2721_v31, %v2720_v44 }
 0x711   : > { %2768 = vadd.xlane.f32.xlu1 %v2767_v30 }
 0x762   : > { %v2724_v21 = vpop.xlane.xlu0 %2723 }
 0x763   : > { %v2770_v36 = vmul.f32 0.00390625, %v2724_v21 }
 0x764   : > { %v2727_v0 = vpop.xlane.xlu1 %2726 }
 0x765   : > { %v2786_v41 = vadd.f32 1e-05, %v2770_v36  ;;  %v2771_v2 = vmul.f32 0.00390625, %v2727_v0 }
 0x767   : > { %4993 = vrsqrt.f32 %v2786_v41  ;;  %v2787_v35 = vadd.f32 1e-05, %v2771_v2 }
 0x769   : > { %4995 = vrsqrt.f32 %v2787_v35 }
 0x76c   : > { %v2730_v62 = vpop.xlane.xlu0 %2729 }
 0x76d   : > { %v2772_v63 = vmul.f32 0.00390625, %v2730_v62 }
 0x76e   : > { %v2733_v51 = vpop.xlane.xlu1 %2732 }
 0x76f   : > { %v2788_v57 = vadd.f32 1e-05, %v2772_v63  ;;  %v2773_v23 = vmul.f32 0.00390625, %v2733_v51 }
 0x771   : > { %v4994_v4 = vpop.eup %4993  ;;  %4997 = vrsqrt.f32 %v2788_v57  ;;  %v2789_v38 = vadd.f32 1e-05, %v2773_v23 }
 0x772   : > { %v2818_v1 = vmul.f32 %v4994_v4, %v6843_v59  ;;  %v2819_v27 = vmul.f32 %v4994_v4, %v6846_v20 }
 0x773   : > { %v4996_v6 = vpop.eup %4995  ;;  %4999 = vrsqrt.f32 %v2789_v38 }
 0x774   : > { %v2861_v42 = vmul.f32 %v7009_v28, %v2818_v1  ;;  %v2820_v54 = vmul.f32 %v4996_v6, %v6849_v58  ;;  %v2821_v37 = vmul.f32 %v4996_v6, %v6852_v11  ;;  %v2862_v19 = vmul.f32 %v7012_v49, %v2819_v27 }
 0x775   : > { %v2736_v44 = vpop.xlane.xlu0 %2735 }
 0x776   : > { %v2863_v59 = vmul.f32 %v7009_v28, %v2820_v54  ;;  %v2774_v20 = vmul.f32 0.00390625, %v2736_v44  ;;  %v2864_v31 = vmul.f32 %v7012_v49, %v2821_v37  ;;  %v2905_v30 = vadd.f32 %v7017_v18, %v2862_v19 }
 0x777   : > { %v2739_v21 = vpop.xlane.xlu1 %2738  ;;  %v2904_v36 = vadd.f32 %v7020_v9, %v2861_v42 }
 0x778   : > { %v2790_v0 = vadd.f32 1e-05, %v2774_v20  ;;  %v2775_v41 = vmul.f32 0.00390625, %v2739_v21  ;;  %v2907_v2 = vadd.f32 %v7017_v18, %v2864_v31  ;;  %v2906_v58 = vadd.f32 %v7020_v9, %v2863_v59 }
 0x779   : > { %v2937_v35 = vmax.f32 %v2905_v30, 0.0  ;;  %v2936_v63 = vmax.f32 %v2904_v36, 0.0 }
 0x77a   : > { %5001 = vrsqrt.f32 %v2790_v0  ;;  %v2791_v11 = vadd.f32 1e-05, %v2775_v41  ;;  %v2939_v62 = vmax.f32 %v2907_v2, 0.0  ;;  %v2938_v51 = vmax.f32 %v2906_v58, 0.0 }
 0x77b   : > { %v4998_v17 = vpop.eup %4997 }
 0x77c   : > { %5003 = vrsqrt.f32 %v2791_v11  ;;  %v2969_v57 = vpack.c.bf16 %v2939_v62, %v2937_v35  ;;  %v2823_v23 = vmul.f32 %v4998_v17, %v6866_v16  ;;  %v2822_v29 = vmul.f32 %v4998_v17, %v6863_v47 }
 0x77d   : > { %v5000_v4 = vpop.eup %4999  ;;  %v2968_v38 = vpack.c.bf16 %v2938_v51, %v2936_v63 }
 0x77e   : > { %v2742_v1 = vpop.xlane.xlu0 %2741  ;;  %3151 = vmatprep.mubr.bf16.mxu1 %v2969_v57  ;;  %v2825_v27 = vmul.f32 %v5000_v4, %v6872_v10  ;;  %v2866_v6 = vmul.f32 %v7012_v49, %v2823_v23  ;;  %v2824_v42 = vmul.f32 %v5000_v4, %v6869_v14  ;;  %v2865_v54 = vmul.f32 %v7009_v28, %v2822_v29 }
 0x77f   : > { %v2776_v37 = vmul.f32 0.00390625, %v2742_v1  ;;  %3152 = vmatmul.mubr.bf16.vlgmr.msra.gmra.mrb[48].mxu1 %v2968_v38 }
 0x780   : > { %v2745_v19 = vpop.xlane.xlu1 %2744  ;;  %v2868_v44 = vmul.f32 %v7012_v49, %v2825_v27  ;;  %v2909_v16 = vadd.f32 %v7017_v18, %v2866_v6  ;;  %v2867_v47 = vmul.f32 %v7009_v28, %v2824_v42  ;;  %v2908_v59 = vadd.f32 %v7020_v9, %v2865_v54 }
 0x781   : > { %v2792_v20 = vadd.f32 1e-05, %v2776_v37  ;;  %v2777_v31 = vmul.f32 0.00390625, %v2745_v19 }
 0x782   : > { %v2911_v10 = vadd.f32 %v7017_v18, %v2868_v44  ;;  %v2910_v30 = vadd.f32 %v7020_v9, %v2867_v47  ;;  %v2941_v36 = vmax.f32 %v2909_v16, 0.0  ;;  %v2940_v58 = vmax.f32 %v2908_v59, 0.0 }
 0x783   : > { %5005 = vrsqrt.f32 %v2792_v20  ;;  %v2793_v14 = vadd.f32 1e-05, %v2777_v31  ;;  %v2748_v21 = vpop.xlane.xlu0 %2747 }
 0x784   : > { %v5002_v0 = vpop.eup %5001  ;;  %v2778_v41 = vmul.f32 0.00390625, %v2748_v21  ;;  %v2943_v2 = vmax.f32 %v2911_v10, 0.0  ;;  %v2942_v11 = vmax.f32 %v2910_v30, 0.0 }
 0x785   : > { %5007 = vrsqrt.f32 %v2793_v14  ;;  %v2751_v35 = vpop.xlane.xlu1 %2750  ;;  %v2827_v62 = vmul.f32 %v5002_v0, %v6886_v61  ;;  %v2826_v17 = vmul.f32 %v5002_v0, %v6883_v43 }
 0x786   : > { %v5004_v63 = vpop.eup %5003  ;;  %v2794_v51 = vadd.f32 1e-05, %v2778_v41  ;;  %v2779_v57 = vmul.f32 0.00390625, %v2751_v35  ;;  %v2971_v23 = vpack.c.bf16 %v2943_v2, %v2941_v36  ;;  %v2970_v29 = vpack.c.bf16 %v2942_v11, %v2940_v58 }
 0x787   : > { %v2829_v4 = vmul.f32 %v5004_v63, %v6892_v60  ;;  %v2870_v38 = vmul.f32 %v7012_v49, %v2827_v62  ;;  %v2828_v1 = vmul.f32 %v5004_v63, %v6889_v15  ;;  %v2869_v27 = vmul.f32 %v7009_v28, %v2826_v17 }
 0x788   : > { %5009 = vrsqrt.f32 %v2794_v51  ;;  %v2795_v6 = vadd.f32 1e-05, %v2779_v57  ;;  %3159 = vmatprep.mubr.bf16.mxu1 %v2971_v23 }
 0x789   : > { %3160 = vmatmul.mubr.bf16.gmra.mrb[52].mxu1 %v2970_v29  ;;  %v2872_v61 = vmul.f32 %v7012_v49, %v2829_v4  ;;  %v2913_v43 = vadd.f32 %v7017_v18, %v2870_v38  ;;  %v2871_v42 = vmul.f32 %v7009_v28, %v2828_v1  ;;  %v2912_v54 = vadd.f32 %v7020_v9, %v2869_v27 }
 0x78a   : > { %5011 = vrsqrt.f32 %v2795_v6 }
 0x78b   : > { %v2754_v60 = vpop.xlane.xlu0 %2753  ;;  %v2915_v37 = vadd.f32 %v7017_v18, %v2872_v61  ;;  %v2914_v15 = vadd.f32 %v7020_v9, %v2871_v42  ;;  %v2945_v47 = vmax.f32 %v2913_v43, 0.0  ;;  %v2944_v20 = vmax.f32 %v2912_v54, 0.0 }
 0x78c   : > { %v2780_v19 = vmul.f32 0.00390625, %v2754_v60 }
 0x78d   : > { %v5006_v44 = vpop.eup %5005  ;;  %v2757_v16 = vpop.xlane.xlu1 %2756  ;;  %v2947_v59 = vmax.f32 %v2915_v37, 0.0  ;;  %v2946_v31 = vmax.f32 %v2914_v15, 0.0 }
 0x78e   : > { %v2796_v10 = vadd.f32 1e-05, %v2780_v19  ;;  %v2781_v30 = vmul.f32 0.00390625, %v2757_v16  ;;  %v2831_v14 = vmul.f32 %v5006_v44, %v6906_v3  ;;  %v2830_v21 = vmul.f32 %v5006_v44, %v6903_v33 }
 0x78f   : > { %v5008_v36 = vpop.eup %5007  ;;  %v2973_v0 = vpack.c.bf16 %v2947_v59, %v2945_v47  ;;  %v2972_v41 = vpack.c.bf16 %v2946_v31, %v2944_v20 }
 0x790   : > { %5013 = vrsqrt.f32 %v2796_v10  ;;  %v2797_v2 = vadd.f32 1e-05, %v2781_v30  ;;  %v2833_v58 = vmul.f32 %v5008_v36, %v6912_v56  ;;  %v2874_v11 = vmul.f32 %v7012_v49, %v2831_v14 }
 0x791   : > { %3167 = vmatprep.mubr.bf16.mxu1 %v2973_v0  ;;  %v2832_v35 = vmul.f32 %v5008_v36, %v6909_v13  ;;  %v2873_v62 = vmul.f32 %v7009_v28, %v2830_v21 }
 0x792   : > { %v5010_v17 = vpop.eup %5009  ;;  %5015 = vrsqrt.f32 %v2797_v2  ;;  %3168 = vmatmul.mubr.bf16.gmra.mrb[56].mxu1 %v2972_v41  ;;  %v2876_v3 = vmul.f32 %v7012_v49, %v2833_v58  ;;  %v2917_v33 = vadd.f32 %v7017_v18, %v2874_v11 }
 0x793   : > { %v2875_v63 = vmul.f32 %v7009_v28, %v2832_v35  ;;  %v2916_v51 = vadd.f32 %v7020_v9, %v2873_v62  ;;  %v2835_v56 = vmul.f32 %v5010_v17, %v6926_v22  ;;  %v2834_v57 = vmul.f32 %v5010_v17, %v6923_v24 }
 0x794   : > { %v5012_v23 = vpop.eup %5011  ;;  %v2760_v29 = vpop.xlane.xlu0 %2759  ;;  %v2919_v13 = vadd.f32 %v7017_v18, %v2876_v3  ;;  %v2949_v4 = vmax.f32 %v2917_v33, 0.0 }
 0x795   : > { %v2782_v38 = vmul.f32 0.00390625, %v2760_v29  ;;  %v2918_v1 = vadd.f32 %v7020_v9, %v2875_v63  ;;  %v2948_v27 = vmax.f32 %v2916_v51, 0.0  ;;  %v2837_v6 = vmul.f32 %v5012_v23, %v6932_v12 }
 0x796   : > { %v2763_v61 = vpop.xlane.xlu1 %2762  ;;  %v2951_v43 = vmax.f32 %v2919_v13, 0.0  ;;  %v2878_v42 = vmul.f32 %v7012_v49, %v2835_v56  ;;  %v2836_v54 = vmul.f32 %v5012_v23, %v6929_v39  ;;  %v2877_v22 = vmul.f32 %v7009_v28, %v2834_v57 }
 0x797   : > { %v2798_v24 = vadd.f32 1e-05, %v2782_v38  ;;  %v2783_v60 = vmul.f32 0.00390625, %v2763_v61  ;;  %v2950_v37 = vmax.f32 %v2918_v1, 0.0  ;;  %v2880_v15 = vmul.f32 %v7012_v49, %v2837_v6 }
 0x798   : > { %v2975_v19 = vpack.c.bf16 %v2951_v43, %v2949_v4  ;;  %v2921_v44 = vadd.f32 %v7017_v18, %v2878_v42  ;;  %v2879_v16 = vmul.f32 %v7009_v28, %v2836_v54  ;;  %v2920_v12 = vadd.f32 %v7020_v9, %v2877_v22 }
 0x799   : > { %5017 = vrsqrt.f32 %v2798_v24  ;;  %v2799_v47 = vadd.f32 1e-05, %v2783_v60  ;;  %v2974_v59 = vpack.c.bf16 %v2950_v37, %v2948_v27  ;;  %v2923_v20 = vadd.f32 %v7017_v18, %v2880_v15 }
 0x79a   : > { %v5014_v39 = vpop.eup %5013  ;;  %3175 = vmatprep.mubr.bf16.mxu1 %v2975_v19  ;;  %v2953_v31 = vmax.f32 %v2921_v44, 0.0  ;;  %v2922_v10 = vadd.f32 %v7020_v9, %v2879_v16  ;;  %v2952_v41 = vmax.f32 %v2920_v12, 0.0 }
 0x79b   : > { %5019 = vrsqrt.f32 %v2799_v47  ;;  %3176 = vmatmul.mubr.bf16.gmra.mrb[60].mxu1 %v2974_v59  ;;  %v2955_v30 = vmax.f32 %v2923_v20, 0.0  ;;  %v2839_v14 = vmul.f32 %v5014_v39, %v6946_v32  ;;  %v2838_v21 = vmul.f32 %v5014_v39, %v6943_v48 }
 0x79c   : > { %v5016_v36 = vpop.eup %5015  ;;  %v2766_v0 = vpop.xlane.xlu0 %2765  ;;  %v2954_v2 = vmax.f32 %v2922_v10, 0.0 }
 0x79d   : > { %v2784_v58 = vmul.f32 0.00390625, %v2766_v0  ;;  %v2977_v11 = vpack.c.bf16 %v2955_v30, %v2953_v31  ;;  %v2841_v35 = vmul.f32 %v5016_v36, %v6952_v53  ;;  %v2882_v62 = vmul.f32 %v7012_v49, %v2839_v14 }
 0x79e   : > { %v2769_v17 = vpop.xlane.xlu1 %2768  ;;  %v2976_v3 = vpack.c.bf16 %v2954_v2, %v2952_v41  ;;  %v2840_v33 = vmul.f32 %v5016_v36, %v6949_v52  ;;  %v2881_v63 = vmul.f32 %v7009_v28, %v2838_v21 }
 0x79f   : > { %v2800_v51 = vadd.f32 1e-05, %v2784_v58  ;;  %v2785_v32 = vmul.f32 0.00390625, %v2769_v17  ;;  %3183 = vmatprep.mubr.bf16.mxu1 %v2977_v11  ;;  %v2884_v48 = vmul.f32 %v7012_v49, %v2841_v35  ;;  %v2925_v56 = vadd.f32 %v7017_v18, %v2882_v62 }
 0x7a0   : > { %v2883_v57 = vmul.f32 %v7009_v28, %v2840_v33  ;;  %v2924_v29 = vadd.f32 %v7020_v9, %v2881_v63 }
 0x7a1   : > { %5021 = vrsqrt.f32 %v2800_v51  ;;  %v2801_v23 = vadd.f32 1e-05, %v2785_v32  ;;  %v2927_v53 = vadd.f32 %v7017_v18, %v2884_v48  ;;  %v2957_v4 = vmax.f32 %v2925_v56, 0.0 }
 0x7a2   : > { %v2926_v13 = vadd.f32 %v7020_v9, %v2883_v57  ;;  %v2956_v42 = vmax.f32 %v2924_v29, 0.0 }
 0x7a3   : > { %v5018_v52 = vpop.eup %5017  ;;  %5023 = vrsqrt.f32 %v2801_v23  ;;  %3184 = vmatmul.mubr.bf16.gmra.mrb[64].mxu1 %v2976_v3  ;;  %v2959_v38 = vmax.f32 %v2927_v53, 0.0 }
 0x7a4   : > { %v2958_v1 = vmax.f32 %v2926_v13, 0.0  ;;  %v2843_v27 = vmul.f32 %v5018_v52, %v6966_v8  ;;  %v2842_v6 = vmul.f32 %v5018_v52, %v6963_v40 }
 0x7a5   : > { %v5020_v61 = vpop.eup %5019  ;;  %v2979_v43 = vpack.c.bf16 %v2959_v38, %v2957_v4 }
 0x7a6   : > { %v2845_v54 = vmul.f32 %v5020_v61, %v6972_v55  ;;  %v2886_v22 = vmul.f32 %v7012_v49, %v2843_v27  ;;  %v2844_v24 = vmul.f32 %v5020_v61, %v6969_v50  ;;  %v2978_v60 = vpack.c.bf16 %v2958_v1, %v2956_v42 }
 0x7a7   : > { %3191 = vmatprep.mubr.bf16.mxu1 %v2979_v43  ;;  %v2885_v37 = vmul.f32 %v7009_v28, %v2842_v6 }
 0x7a8   : > { %v2888_v15 = vmul.f32 %v7012_v49, %v2845_v54  ;;  %v2929_v19 = vadd.f32 %v7017_v18, %v2886_v22  ;;  %v2887_v8 = vmul.f32 %v7009_v28, %v2844_v24 }
 0x7a9   : > { %v2928_v40 = vadd.f32 %v7020_v9, %v2885_v37 }
 0x7aa   : > { %v2931_v44 = vadd.f32 %v7017_v18, %v2888_v15  ;;  %v2930_v55 = vadd.f32 %v7020_v9, %v2887_v8  ;;  %v2961_v12 = vmax.f32 %v2929_v19, 0.0 }
 0x7ab   : > { %v5022_v16 = vpop.eup %5021  ;;  %3192 = vmatmul.mubr.bf16.gmra.mrb[68].mxu1 %v2978_v60  ;;  %v2960_v31 = vmax.f32 %v2928_v40, 0.0 }
 0x7ac   : > { %v2963_v50 = vmax.f32 %v2931_v44, 0.0  ;;  %v2962_v47 = vmax.f32 %v2930_v55, 0.0  ;;  %v2847_v59 = vmul.f32 %v5022_v16, %v6986_v46  ;;  %v2846_v20 = vmul.f32 %v5022_v16, %v6983_v7 }
 0x7ad   : > { %v5024_v39 = vpop.eup %5023 }
 0x7ae   : > { %v2981_v10 = vpack.c.bf16 %v2963_v50, %v2961_v12  ;;  %v2849_v30 = vmul.f32 %v5024_v39, %v6992_v5  ;;  %v2890_v14 = vmul.f32 %v7012_v49, %v2847_v59  ;;  %v2980_v21 = vpack.c.bf16 %v2962_v47, %v2960_v31 }
 0x7af   : > { %v2848_v36 = vmul.f32 %v5024_v39, %v6989_v34  ;;  %v2889_v0 = vmul.f32 %v7009_v28, %v2846_v20 }
 0x7b0   : > { %3199 = vmatprep.mubr.bf16.mxu1 %v2981_v10  ;;  %v2892_v41 = vmul.f32 %v7012_v49, %v2849_v30  ;;  %v2933_v2 = vadd.f32 %v7017_v18, %v2890_v14 }
 0x7b1   : > { %v2891_v46 = vmul.f32 %v7009_v28, %v2848_v36  ;;  %v2932_v7 = vadd.f32 %v7020_v9, %v2889_v0  ;;  %v7119_v28 = vld [vmem:[%s7784_s16] ss:$0 sm:$0xff]  ;;  %s7788_s16 = sld [smem:[#allocation46_spill]] }
 0x7b2   : > { %v2935_v58 = vadd.f32 %v7017_v18, %v2892_v41  ;;  %v2965_v11 = vmax.f32 %v2933_v2, 0.0 }
 0x7b3   : > { %3200 = vmatmul.mubr.bf16.gmra.mrb[72].mxu1 %v2980_v21  ;;  %v2934_v5 = vadd.f32 %v7020_v9, %v2891_v46  ;;  %v2964_v62 = vmax.f32 %v2932_v7, 0.0 }
 0x7b4   : > { %v2967_v35 = vmax.f32 %v2935_v58, 0.0 }
 0x7b5   : > { %v2966_v34 = vmax.f32 %v2934_v5, 0.0 }
 0x7b6   : > { %v2983_v17 = vpack.c.bf16 %v2967_v35, %v2965_v11 }
 0x7b7   : > { %v2982_v3 = vpack.c.bf16 %v2966_v34, %v2964_v62  ;;  %s7533_s5 = scalar_lea.hbm %s7788_s16, %s7511_s2 }
 0x7b8   : > { %3207 = vmatprep.mubr.bf16.mxu1 %v2983_v17 }
 0x7bb   : > { %3208 = vmatmul.mubr.bf16.gmra.mrb[76].mxu1 %v2982_v3 }
 0x852   : > { %v4472_v49 = vpop.f32.mrb[48].mxu1 }
 0x853   : > { %v4473_v33 = vpop.f32.mrb[49].mxu1 }
 0x854   : > { %v4474_v63 = vadd.f32 %v4473_v33, %v4472_v49  ;;  %v4475_v18 = vpop.f32.mrb[50].mxu1 }
 0x855   : > { %v4476_v51 = vpop.f32.mrb[51].mxu1 }
 0x856   : > { %v4477_v32 = vadd.f32 %v4476_v51, %v4475_v18  ;;  %v7122_v9 = vadd.f32 %v4474_v63, %v7119_v28  ;;  %v4777_v51 = vld [vmem:[#allocation13] ss:$8 sps:$4 sm:$0xff]  }
 0x858   : > { %3218 = vadd.xlane.f32.xlu0 %v7122_v9  ;;  %v7126_v48 = vadd.f32 %v4477_v32, %v7119_v28  ;;  %v4779_v32 = vld [vmem:[#allocation13 + $0x4] ss:$8 sps:$4 sm:$0xff]  }
 0x859   : > { %3570 = vmatprep.subr.bf16.mxu0 %v4779_v32  ;;  %v4795_v32 = vld [vmem:[#allocation13 + $0x60] ss:$8 sps:$4 sm:$0xff]  }
 0x85a   : > { %3220 = vadd.xlane.f32.xlu1 %v7126_v48  ;;  %3571 = vmatpush1.bf16.msra.mxu0 %v4777_v51  ;;  %v4797_v51 = vld [vmem:[#allocation13 + $0x64] ss:$8 sps:$4 sm:$0xff]  }
 0x85c   : > { %v4478_v56 = vpop.f32.mrb[52].mxu1 }
 0x85d   : > { %v4479_v57 = vpop.f32.mrb[53].mxu1 }
 0x85e   : > { %v4480_v23 = vadd.f32 %v4479_v57, %v4478_v56  ;;  %v4481_v53 = vpop.f32.mrb[54].mxu1  ;;  %v4782_v56 = vld [vmem:[#allocation13 + $0x14] ss:$8 sps:$4 sm:$0xff]   ;;  %v4780_v57 = vld [vmem:[#allocation13 + $0x10] ss:$8 sps:$4 sm:$0xff]  }
 0x85f   : > { %v4482_v29 = vpop.f32.mrb[55].mxu1  ;;  %3572 = vmatprep.subr.bf16.mxu0 %v4782_v56 }
 0x860   : > { %v7130_v13 = vadd.f32 %v4480_v23, %v7119_v28  ;;  %v4483_v52 = vadd.f32 %v4482_v29, %v4481_v53  ;;  %3573 = vmatpush1.bf16.msra.mxu0 %v4780_v57  ;;  %v4800_v57 = vld [vmem:[#allocation13 + $0x74] ss:$8 sps:$4 sm:$0xff]  }
 0x862   : > { %v7133_v4 = vadd.f32 %v4483_v52, %v7119_v28  ;;  %3222 = vadd.xlane.f32.xlu0 %v7130_v13 }
 0x864   : > { %3224 = vadd.xlane.f32.xlu1 %v7133_v4 }
 0x865   : > { %v4484_v38 = vpop.f32.mrb[56].mxu1 }
 0x866   : > { %v4485_v1 = vpop.f32.mrb[57].mxu1 }
 0x867   : > { %v4486_v27 = vadd.f32 %v4485_v1, %v4484_v38  ;;  %v4487_v6 = vpop.f32.mrb[58].mxu1 }
 0x868   : > { %v4488_v61 = vpop.f32.mrb[59].mxu1 }
 0x869   : > { %v7138_v43 = vadd.f32 %v4486_v27, %v7119_v28  ;;  %v4489_v42 = vadd.f32 %v4488_v61, %v4487_v6 }
 0x86b   : > { %v7141_v54 = vadd.f32 %v4489_v42, %v7119_v28  ;;  %3226 = vadd.xlane.f32.xlu0 %v7138_v43 }
 0x86d   : > { %3228 = vadd.xlane.f32.xlu1 %v7141_v54 }
 0x86e   : > { %v4490_v22 = vpop.f32.mrb[60].mxu1 }
 0x86f   : > { %v4491_v24 = vpop.f32.mrb[61].mxu1 }
 0x870   : > { %v4492_v60 = vadd.f32 %v4491_v24, %v4490_v22  ;;  %v4493_v37 = vpop.f32.mrb[62].mxu1 }
 0x871   : > { %v4494_v15 = vpop.f32.mrb[63].mxu1 }
 0x872   : > { %v7146_v19 = vadd.f32 %v4492_v60, %v7119_v28  ;;  %v4495_v8 = vadd.f32 %v4494_v15, %v4493_v37 }
 0x874   : > { %v7149_v40 = vadd.f32 %v4495_v8, %v7119_v28  ;;  %3230 = vadd.xlane.f32.xlu0 %v7146_v19 }
 0x876   : > { %3232 = vadd.xlane.f32.xlu1 %v7149_v40  ;;  %v4496_v44 = vpop.f32.mrb[64].mxu1 }
 0x877   : > { %v4497_v55 = vpop.f32.mrb[65].mxu1 }
 0x878   : > { %v4498_v16 = vadd.f32 %v4497_v55, %v4496_v44  ;;  %v4499_v12 = vpop.f32.mrb[66].mxu1 }
 0x879   : > { %v4500_v50 = vpop.f32.mrb[67].mxu1 }
 0x87a   : > { %v7154_v47 = vadd.f32 %v4498_v16, %v7119_v28  ;;  %v4501_v59 = vadd.f32 %v4500_v50, %v4499_v12  ;;  %v4785_v50 = vld [vmem:[#allocation13 + $0x24] ss:$8 sps:$4 sm:$0xff]  }
 0x87b   : > { %3574 = vmatprep.subr.bf16.mxu0 %v4785_v50 }
 0x87c   : > { %v7157_v20 = vadd.f32 %v4501_v59, %v7119_v28  ;;  %3234 = vadd.xlane.f32.xlu0 %v7154_v47 }
 0x87e   : > { %3236 = vadd.xlane.f32.xlu1 %v7157_v20  ;;  %v4502_v39 = vpop.f32.mrb[68].mxu1 }
 0x87f   : > { %v4503_v31 = vpop.f32.mrb[69].mxu1 }
 0x880   : > { %v4504_v10 = vadd.f32 %v4503_v31, %v4502_v39  ;;  %v4505_v30 = vpop.f32.mrb[70].mxu1  ;;  %v4783_v39 = vld [vmem:[#allocation13 + $0x20] ss:$8 sps:$4 sm:$0xff]  }
 0x881   : > { %v4506_v14 = vpop.f32.mrb[71].mxu1  ;;  %3575 = vmatpush1.bf16.msra.mxu0 %v4783_v39 }
 0x882   : > { %v7162_v21 = vadd.f32 %v4504_v10, %v7119_v28  ;;  %v4507_v36 = vadd.f32 %v4506_v14, %v4505_v30 }
 0x884   : > { %v7165_v0 = vadd.f32 %v4507_v36, %v7119_v28  ;;  %3238 = vadd.xlane.f32.xlu0 %v7162_v21  ;;  %v4786_v36 = vld [vmem:[#allocation13 + $0x30] ss:$8 sps:$4 sm:$0xff]  }
 0x886   : > { %3240 = vadd.xlane.f32.xlu1 %v7165_v0  ;;  %v4508_v41 = vpop.f32.mrb[72].mxu1 }
 0x887   : > { %v4509_v2 = vpop.f32.mrb[73].mxu1 }
 0x888   : > { %v4510_v46 = vadd.f32 %v4509_v2, %v4508_v41  ;;  %v4511_v7 = vpop.f32.mrb[74].mxu1 }
 0x889   : > { %v4512_v58 = vpop.f32.mrb[75].mxu1 }
 0x88a   : > { %v7170_v5 = vadd.f32 %v4510_v46, %v7119_v28  ;;  %v4513_v11 = vadd.f32 %v4512_v58, %v4511_v7  ;;  %v4791_v46 = vld [vmem:[#allocation13 + $0x44] ss:$8 sps:$4 sm:$0xff]   ;;  %v4789_v7 = vld [vmem:[#allocation13 + $0x40] ss:$8 sps:$4 sm:$0xff]  }
 0x88c   : > { %v7173_v35 = vadd.f32 %v4513_v11, %v7119_v28  ;;  %3242 = vadd.xlane.f32.xlu0 %v7170_v5 }
 0x88e   : > { %3244 = vadd.xlane.f32.xlu1 %v7173_v35  ;;  %v4514_v62 = vpop.f32.mrb[76].mxu1 }
 0x88f   : > { %v4515_v34 = vpop.f32.mrb[77].mxu1 }
 0x890   : > { %v4516_v17 = vadd.f32 %v4515_v34, %v4514_v62  ;;  %v4517_v3 = vpop.f32.mrb[78].mxu1  ;;  %v4792_v62 = vld [vmem:[#allocation13 + $0x50] ss:$8 sps:$4 sm:$0xff]   ;;  %v4794_v34 = vld [vmem:[#allocation13 + $0x54] ss:$8 sps:$4 sm:$0xff]  }
 0x891   : > { %v4518_v49 = vpop.f32.mrb[79].mxu1 }
 0x892   : > { %v7178_v33 = vadd.f32 %v4516_v17, %v7119_v28  ;;  %v4519_v63 = vadd.f32 %v4518_v49, %v4517_v3 }
 0x894   : > { %v7181_v18 = vadd.f32 %v4519_v63, %v7119_v28  ;;  %3246 = vadd.xlane.f32.xlu0 %v7178_v33 }
 0x896   : > { %3248 = vadd.xlane.f32.xlu1 %v7181_v18 }
 0x8e5   : > { %v3219_v23 = vpop.xlane.xlu0 %3218 }
 0x8e6   : > { %v3250_v53 = vmul.f32 0.0078125, %v3219_v23 }
 0x8e7   : > { %v3221_v29 = vpop.xlane.xlu1 %3220 }
 0x8e8   : > { %v7186_v52 = vsub.f32 %v7122_v9, %v3250_v53  ;;  %v3251_v28 = vmul.f32 0.0078125, %v3221_v29  ;;  %v4798_v53 = vld [vmem:[#allocation13 + $0x70] ss:$8 sps:$4 sm:$0xff]  }
 0x8ea   : > { %v7189_v38 = vsub.f32 %v7126_v48, %v3251_v28  ;;  %v3282_v1 = vmul.f32 %v7186_v52, %v7186_v52 }
 0x8ec   : > { %3298 = vadd.xlane.f32.xlu0 %v3282_v1  ;;  %v3283_v27 = vmul.f32 %v7189_v38, %v7189_v38 }
 0x8ee   : > { %3300 = vadd.xlane.f32.xlu1 %v3283_v27 }
 0x8ef   : > { %v3223_v6 = vpop.xlane.xlu0 %3222 }
 0x8f0   : > { %v3252_v61 = vmul.f32 0.0078125, %v3223_v6 }
 0x8f1   : > { %v3225_v42 = vpop.xlane.xlu1 %3224 }
 0x8f2   : > { %v7196_v22 = vsub.f32 %v7130_v13, %v3252_v61  ;;  %v3253_v9 = vmul.f32 0.0078125, %v3225_v42 }
 0x8f4   : > { %v7199_v24 = vsub.f32 %v7133_v4, %v3253_v9  ;;  %v3284_v48 = vmul.f32 %v7196_v22, %v7196_v22 }
 0x8f6   : > { %3302 = vadd.xlane.f32.xlu0 %v3284_v48  ;;  %v3285_v60 = vmul.f32 %v7199_v24, %v7199_v24 }
 0x8f8   : > { %v3227_v37 = vpop.xlane.xlu0 %3226  ;;  %3304 = vadd.xlane.f32.xlu1 %v3285_v60 }
 0x8f9   : > { %v3254_v15 = vmul.f32 0.0078125, %v3227_v37 }
 0x8fa   : > { %v3229_v8 = vpop.xlane.xlu1 %3228 }
 0x8fb   : > { %v7206_v44 = vsub.f32 %v7138_v43, %v3254_v15  ;;  %v3255_v13 = vmul.f32 0.0078125, %v3229_v8 }
 0x8fd   : > { %v7209_v55 = vsub.f32 %v7141_v54, %v3255_v13  ;;  %v3286_v4 = vmul.f32 %v7206_v44, %v7206_v44  ;;  %v4788_v54 = vld [vmem:[#allocation13 + $0x34] ss:$8 sps:$4 sm:$0xff]  }
 0x8fe   : > { %3576 = vmatprep.subr.bf16.mxu0 %v4788_v54 }
 0x8ff   : > { %3306 = vadd.xlane.f32.xlu0 %v3286_v4  ;;  %v3287_v16 = vmul.f32 %v7209_v55, %v7209_v55  ;;  %3577 = vmatpush1.bf16.msra.mxu0 %v4786_v36 }
 0x900   : > { %3578 = vmatprep.subr.bf16.mxu0 %v4791_v46 }
 0x901   : > { %v3231_v12 = vpop.xlane.xlu0 %3230  ;;  %3308 = vadd.xlane.f32.xlu1 %v3287_v16 }
 0x902   : > { %v3256_v59 = vmul.f32 0.0078125, %v3231_v12 }
 0x903   : > { %v3233_v31 = vpop.xlane.xlu1 %3232  ;;  %3579 = vmatpush1.bf16.msra.mxu0 %v4789_v7  ;;  %v7274_v7 = vld [vmem:[%s7786_s6] ss:$0 sm:$0xff]  ;;  %s3924_s6 = scalar_lea.sflag [#allocation4], %s5890_s0 }
 0x904   : > { %v7216_v43 = vsub.f32 %v7146_v19, %v3256_v59  ;;  %v3257_v10 = vmul.f32 0.0078125, %v3233_v31  ;;  %3580 = vmatprep.subr.bf16.mxu0 %v4794_v34 }
 0x906   : > { %v7219_v30 = vsub.f32 %v7149_v40, %v3257_v10  ;;  %v3288_v14 = vmul.f32 %v7216_v43, %v7216_v43 }
 0x907   : > { %3581 = vmatpush1.bf16.msra.mxu0 %v4792_v62 }
 0x908   : > { %3310 = vadd.xlane.f32.xlu0 %v3288_v14  ;;  %v3289_v41 = vmul.f32 %v7219_v30, %v7219_v30  ;;  %3582 = vmatprep.subr.bf16.mxu0 %v4797_v51 }
 0x909   : > { %v3235_v2 = vpop.xlane.xlu0 %3234 }
 0x90a   : > { %v3258_v19 = vmul.f32 0.0078125, %v3235_v2  ;;  %3312 = vadd.xlane.f32.xlu1 %v3289_v41  ;;  %v7268_v41 = vld [vmem:[%s7785_s21] ss:$0 sm:$0xff] }
 0x90b   : > { %v3237_v58 = vpop.xlane.xlu1 %3236  ;;  %3583 = vmatpush1.bf16.msra.mxu0 %v4795_v32 }
 0x90c   : > { %v7226_v40 = vsub.f32 %v7154_v47, %v3258_v19  ;;  %v3259_v11 = vmul.f32 0.0078125, %v3237_v58  ;;  %3584 = vmatprep.subr.bf16.mxu0 %v4800_v57 }
 0x90e   : > { %v7229_v17 = vsub.f32 %v7157_v20, %v3259_v11  ;;  %v3290_v3 = vmul.f32 %v7226_v40, %v7226_v40 }
 0x90f   : > { %3585 = vmatpush1.bf16.msra.mxu0 %v4798_v53 }
 0x910   : > { %3314 = vadd.xlane.f32.xlu0 %v3290_v3  ;;  %v3291_v49 = vmul.f32 %v7229_v17, %v7229_v17 }
 0x911   : > { %v3239_v63 = vpop.xlane.xlu0 %3238 }
 0x912   : > { %v3260_v47 = vmul.f32 0.0078125, %v3239_v63  ;;  %3316 = vadd.xlane.f32.xlu1 %v3291_v49 }
 0x913   : > { %v3241_v56 = vpop.xlane.xlu1 %3240 }
 0x914   : > { %v7236_v20 = vsub.f32 %v7162_v21, %v3260_v47  ;;  %v3261_v23 = vmul.f32 0.0078125, %v3241_v56 }
 0x916   : > { %v7239_v29 = vsub.f32 %v7165_v0, %v3261_v23  ;;  %v3292_v28 = vmul.f32 %v7236_v20, %v7236_v20 }
 0x918   : > { %3318 = vadd.xlane.f32.xlu0 %v3292_v28  ;;  %v3293_v1 = vmul.f32 %v7239_v29, %v7239_v29 }
 0x919   : > { %v3243_v27 = vpop.xlane.xlu0 %3242 }
 0x91a   : > { %v3262_v6 = vmul.f32 0.0078125, %v3243_v27  ;;  %3320 = vadd.xlane.f32.xlu1 %v3293_v1 }
 0x91b   : > { %v3245_v21 = vpop.xlane.xlu1 %3244 }
 0x91c   : > { %v7246_v61 = vsub.f32 %v7170_v5, %v3262_v6  ;;  %v3263_v42 = vmul.f32 0.0078125, %v3245_v21 }
 0x91e   : > { %v7249_v9 = vsub.f32 %v7173_v35, %v3263_v42  ;;  %v3294_v0 = vmul.f32 %v7246_v61, %v7246_v61 }
 0x920   : > { %3322 = vadd.xlane.f32.xlu0 %v3294_v0  ;;  %v3295_v48 = vmul.f32 %v7249_v9, %v7249_v9 }
 0x921   : > { %v3247_v60 = vpop.xlane.xlu0 %3246 }
 0x922   : > { %v3264_v37 = vmul.f32 0.0078125, %v3247_v60  ;;  %3324 = vadd.xlane.f32.xlu1 %v3295_v48 }
 0x923   : > { %v3249_v15 = vpop.xlane.xlu1 %3248 }
 0x924   : > { %v7256_v8 = vsub.f32 %v7178_v33, %v3264_v37  ;;  %v3265_v5 = vmul.f32 0.0078125, %v3249_v15 }
 0x926   : > { %v7259_v13 = vsub.f32 %v7181_v18, %v3265_v5  ;;  %v3296_v35 = vmul.f32 %v7256_v8, %v7256_v8 }
 0x928   : > { %3326 = vadd.xlane.f32.xlu0 %v3296_v35  ;;  %v3297_v4 = vmul.f32 %v7259_v13, %v7259_v13 }
 0x92a   : > { %3328 = vadd.xlane.f32.xlu1 %v3297_v4 }
 0x979   : > { %v3299_v16 = vpop.xlane.xlu0 %3298 }
 0x97a   : > { %v3330_v12 = vmul.f32 0.0078125, %v3299_v16 }
 0x97b   : > { %v3301_v50 = vpop.xlane.xlu1 %3300 }
 0x97c   : > { %v3346_v59 = vadd.f32 1e-05, %v3330_v12  ;;  %v3331_v39 = vmul.f32 0.0078125, %v3301_v50 }
 0x97e   : > { %5025 = vrsqrt.f32 %v3346_v59  ;;  %v3347_v33 = vadd.f32 1e-05, %v3331_v39 }
 0x980   : > { %5027 = vrsqrt.f32 %v3347_v33 }
 0x983   : > { %v3303_v31 = vpop.xlane.xlu0 %3302 }
 0x984   : > { %v3332_v10 = vmul.f32 0.0078125, %v3303_v31 }
 0x985   : > { %v3305_v18 = vpop.xlane.xlu1 %3304 }
 0x986   : > { %v3348_v54 = vadd.f32 1e-05, %v3332_v10  ;;  %v3333_v14 = vmul.f32 0.0078125, %v3305_v18 }
 0x988   : > { %v5026_v36 = vpop.eup %5025  ;;  %5029 = vrsqrt.f32 %v3348_v54  ;;  %v3349_v2 = vadd.f32 1e-05, %v3333_v14 }
 0x989   : > { %v3378_v46 = vmul.f32 %v5026_v36, %v7186_v52 }
 0x98a   : > { %v5028_v19 = vpop.eup %5027  ;;  %5031 = vrsqrt.f32 %v3349_v2 }
 0x98b   : > { %v3400_v58 = vmul.f32 %v7268_v41, %v3378_v46  ;;  %v3379_v11 = vmul.f32 %v5028_v19, %v7189_v38 }
 0x98c   : > { %v3307_v62 = vpop.xlane.xlu0 %3306 }
 0x98d   : > { %v3401_v34 = vmul.f32 %v7268_v41, %v3379_v11  ;;  %v3334_v3 = vmul.f32 0.0078125, %v3307_v62  ;;  %v3422_v49 = vadd.f32 %v7274_v7, %v3400_v58 }
 0x98e   : > { %v3309_v63 = vpop.xlane.xlu1 %3308 }
 0x98f   : > { %v3350_v51 = vadd.f32 1e-05, %v3334_v3  ;;  %v3335_v52 = vmul.f32 0.0078125, %v3309_v63  ;;  %v3423_v47 = vadd.f32 %v7274_v7, %v3401_v34  ;;  %v3438_v56 = vmax.f32 %v3422_v49, 0.0 }
 0x991   : > { %5033 = vrsqrt.f32 %v3350_v51  ;;  %v3351_v32 = vadd.f32 1e-05, %v3335_v52  ;;  %v3439_v57 = vmax.f32 %v3423_v47, 0.0 }
 0x992   : > { %v5030_v23 = vpop.eup %5029 }
 0x993   : > { %5035 = vrsqrt.f32 %v3351_v32  ;;  %v3454_v53 = vpack.c.bf16 %v3439_v57, %v3438_v56  ;;  %v3380_v38 = vmul.f32 %v5030_v23, %v7196_v22 }
 0x994   : > { %v5032_v28 = vpop.eup %5031 }
 0x995   : > { %v3311_v1 = vpop.xlane.xlu0 %3310  ;;  %3603 = vmatmul.mubr.bf16.vlgmr.msra.gmra.mrb[48].mxu0 %v3454_v53  ;;  %v3381_v27 = vmul.f32 %v5032_v28, %v7199_v24  ;;  %v3402_v6 = vmul.f32 %v7268_v41, %v3380_v38 }
 0x996   : > { %v3336_v21 = vmul.f32 0.0078125, %v3311_v1  ;;  %3612 = vmatprep.mubr.bf16.mxu0 %v5478_v45 }
 0x997   : > { %v3313_v42 = vpop.xlane.xlu1 %3312  ;;  %v3403_v0 = vmul.f32 %v7268_v41, %v3381_v27  ;;  %v3424_v48 = vadd.f32 %v7274_v7, %v3402_v6 }
 0x998   : > { %v3352_v60 = vadd.f32 1e-05, %v3336_v21  ;;  %v3337_v37 = vmul.f32 0.0078125, %v3313_v42 }
 0x999   : > { %v3425_v15 = vadd.f32 %v7274_v7, %v3403_v0  ;;  %v3440_v35 = vmax.f32 %v3424_v48, 0.0 }
 0x99a   : > { %5037 = vrsqrt.f32 %v3352_v60  ;;  %v3353_v22 = vadd.f32 1e-05, %v3337_v37 }
 0x99b   : > { %v5034_v5 = vpop.eup %5033  ;;  %v3441_v4 = vmax.f32 %v3425_v15, 0.0 }
 0x99c   : > { %5039 = vrsqrt.f32 %v3353_v22  ;;  %v3382_v24 = vmul.f32 %v5034_v5, %v7206_v44 }
 0x99d   : > { %v5036_v16 = vpop.eup %5035  ;;  %v3315_v12 = vpop.xlane.xlu0 %3314  ;;  %v3455_v50 = vpack.c.bf16 %v3441_v4, %v3440_v35 }
 0x99e   : > { %v3338_v59 = vmul.f32 0.0078125, %v3315_v12  ;;  %v3383_v39 = vmul.f32 %v5036_v16, %v7209_v55  ;;  %v3404_v33 = vmul.f32 %v7268_v41, %v3382_v24 }
 0x99f   : > { %v3317_v31 = vpop.xlane.xlu1 %3316  ;;  %3613 = vmatmul.mubr.bf16.gmra.mrb[52].mxu0 %v3455_v50 }
 0x9a0   : > { %v3354_v10 = vadd.f32 1e-05, %v3338_v59  ;;  %v3339_v18 = vmul.f32 0.0078125, %v3317_v31  ;;  %3622 = vmatprep.mubr.bf16.mxu0 %v5478_v45  ;;  %v3405_v54 = vmul.f32 %v7268_v41, %v3383_v39  ;;  %v3426_v14 = vadd.f32 %v7274_v7, %v3404_v33 }
 0x9a2   : > { %5041 = vrsqrt.f32 %v3354_v10  ;;  %v3355_v44 = vadd.f32 1e-05, %v3339_v18  ;;  %v3427_v36 = vadd.f32 %v7274_v7, %v3405_v54  ;;  %v3442_v46 = vmax.f32 %v3426_v14, 0.0 }
 0x9a4   : > { %v5038_v2 = vpop.eup %5037  ;;  %5043 = vrsqrt.f32 %v3355_v44  ;;  %v3443_v55 = vmax.f32 %v3427_v36, 0.0 }
 0x9a5   : > { %v3319_v19 = vpop.xlane.xlu0 %3318  ;;  %v3384_v58 = vmul.f32 %v5038_v2, %v7216_v43 }
 0x9a6   : > { %v5040_v11 = vpop.eup %5039  ;;  %v3340_v62 = vmul.f32 0.0078125, %v3319_v19  ;;  %v3456_v34 = vpack.c.bf16 %v3443_v55, %v3442_v46 }
 0x9a7   : > { %v3321_v3 = vpop.xlane.xlu1 %3320  ;;  %v3385_v49 = vmul.f32 %v5040_v11, %v7219_v30  ;;  %v3406_v63 = vmul.f32 %v7268_v41, %v3384_v58 }
 0x9a8   : > { %v3356_v51 = vadd.f32 1e-05, %v3340_v62  ;;  %v3341_v52 = vmul.f32 0.0078125, %v3321_v3  ;;  %3623 = vmatmul.mubr.bf16.gmra.mrb[56].mxu0 %v3456_v34 }
 0x9a9   : > { %3632 = vmatprep.mubr.bf16.mxu0 %v5478_v45  ;;  %v3407_v47 = vmul.f32 %v7268_v41, %v3385_v49  ;;  %v3428_v32 = vadd.f32 %v7274_v7, %v3406_v63 }
 0x9aa   : > { %5045 = vrsqrt.f32 %v3356_v51  ;;  %v3357_v56 = vadd.f32 1e-05, %v3341_v52 }
 0x9ab   : > { %v3429_v43 = vadd.f32 %v7274_v7, %v3407_v47  ;;  %v3444_v53 = vmax.f32 %v3428_v32, 0.0 }
 0x9ac   : > { %v5042_v57 = vpop.eup %5041  ;;  %5047 = vrsqrt.f32 %v3357_v56 }
 0x9ad   : > { %v3323_v23 = vpop.xlane.xlu0 %3322  ;;  %v3445_v30 = vmax.f32 %v3429_v43, 0.0  ;;  %v3386_v38 = vmul.f32 %v5042_v57, %v7226_v40 }
 0x9ae   : > { %v5044_v28 = vpop.eup %5043  ;;  %v3342_v1 = vmul.f32 0.0078125, %v3323_v23 }
 0x9af   : > { %v3325_v27 = vpop.xlane.xlu1 %3324  ;;  %v3457_v6 = vpack.c.bf16 %v3445_v30, %v3444_v53  ;;  %v3387_v21 = vmul.f32 %v5044_v28, %v7229_v17  ;;  %v3408_v42 = vmul.f32 %v7268_v41, %v3386_v38 }
 0x9b0   : > { %v3358_v0 = vadd.f32 1e-05, %v3342_v1  ;;  %v3343_v48 = vmul.f32 0.0078125, %v3325_v27 }
 0x9b1   : > { %3633 = vmatmul.mubr.bf16.gmra.mrb[60].mxu0 %v3457_v6  ;;  %v3409_v60 = vmul.f32 %v7268_v41, %v3387_v21  ;;  %v3430_v37 = vadd.f32 %v7274_v7, %v3408_v42 }
 0x9b2   : > { %5049 = vrsqrt.f32 %v3358_v0  ;;  %v3359_v15 = vadd.f32 1e-05, %v3343_v48  ;;  %3642 = vmatprep.mubr.bf16.mxu0 %v5478_v45 }
 0x9b3   : > { %v3431_v40 = vadd.f32 %v7274_v7, %v3409_v60  ;;  %v3446_v35 = vmax.f32 %v3430_v37, 0.0 }
 0x9b4   : > { %v5046_v22 = vpop.eup %5045  ;;  %5051 = vrsqrt.f32 %v3359_v15 }
 0x9b5   : > { %v3327_v5 = vpop.xlane.xlu0 %3326  ;;  %v3447_v17 = vmax.f32 %v3431_v40, 0.0  ;;  %v3388_v4 = vmul.f32 %v5046_v22, %v7236_v20 }
 0x9b6   : > { %v5048_v24 = vpop.eup %5047  ;;  %v3344_v16 = vmul.f32 0.0078125, %v3327_v5 }
 0x9b7   : > { %v3329_v12 = vpop.xlane.xlu1 %3328  ;;  %v3458_v50 = vpack.c.bf16 %v3447_v17, %v3446_v35  ;;  %v3389_v59 = vmul.f32 %v5048_v24, %v7239_v29  ;;  %v3410_v39 = vmul.f32 %v7268_v41, %v3388_v4 }
 0x9b8   : > { %v3360_v33 = vadd.f32 1e-05, %v3344_v16  ;;  %v3345_v31 = vmul.f32 0.0078125, %v3329_v12 }
 0x9b9   : > { %3643 = vmatmul.mubr.bf16.gmra.mrb[64].mxu0 %v3458_v50  ;;  %v3411_v10 = vmul.f32 %v7268_v41, %v3389_v59  ;;  %v3432_v18 = vadd.f32 %v7274_v7, %v3410_v39 }
 0x9ba   : > { %5053 = vrsqrt.f32 %v3360_v33  ;;  %v3361_v54 = vadd.f32 1e-05, %v3345_v31  ;;  %3652 = vmatprep.mubr.bf16.mxu0 %v5478_v45 }
 0x9bb   : > { %v3433_v20 = vadd.f32 %v7274_v7, %v3411_v10  ;;  %v3448_v44 = vmax.f32 %v3432_v18, 0.0 }
 0x9bc   : > { %v5050_v14 = vpop.eup %5049  ;;  %5055 = vrsqrt.f32 %v3361_v54  ;;  %v3827_v54 = vld [vmem:[%s5907_s17] sm:$0xff] }
 0x9bd   : > { %v3449_v36 = vmax.f32 %v3433_v20, 0.0  ;;  %v3390_v29 = vmul.f32 %v5050_v14, %v7246_v61 }
 0x9be   : > { %v5052_v2 = vpop.eup %5051 }
 0x9bf   : > { %v3459_v46 = vpack.c.bf16 %v3449_v36, %v3448_v44  ;;  %v3391_v55 = vmul.f32 %v5052_v2, %v7249_v9  ;;  %v3412_v19 = vmul.f32 %v7268_v41, %v3390_v29 }
 0x9c1   : > { %3653 = vmatmul.mubr.bf16.gmra.mrb[68].mxu0 %v3459_v46  ;;  %v3413_v58 = vmul.f32 %v7268_v41, %v3391_v55  ;;  %v3434_v11 = vadd.f32 %v7274_v7, %v3412_v19  ;;  %v3828_v55 = vld [vmem:[%s5907_s17 + $0x8] sm:$0xff] }
 0x9c2   : > { %3662 = vmatprep.mubr.bf16.mxu0 %v5478_v45 }
 0x9c3   : > { %v3435_v62 = vadd.f32 %v7274_v7, %v3413_v58  ;;  %v3450_v3 = vmax.f32 %v3434_v11, 0.0 }
 0x9c4   : > { %v5054_v34 = vpop.eup %5053 }
 0x9c5   : > { %v3451_v49 = vmax.f32 %v3435_v62, 0.0  ;;  %v3392_v61 = vmul.f32 %v5054_v34, %v7256_v8  ;;  %v3478_v8 = vld [vmem:[%s7787_s23] sm:$0x3]  ;;  %s5325_s23 = sshll.u32 %s5479_s22, 4  ;;  %s5326_s23 = int_to_ptr.vmem [resolvable:$false] %s5325_s23 }
 0x9c6   : > { %v5056_v63 = vpop.eup %5055  ;;  %s5327_s14 = scalar_lea.vmem %s5326_s23, 4096  ;;  %p5328_p0 = scmp.lt.s32.totalorder %s7535_s19, %s5326_s23 }
 0x9c7   : > { %v3460_v51 = vpack.c.bf16 %v3451_v49, %v3450_v3  ;;  %v3393_v9 = vmul.f32 %v5056_v63, %v7259_v13  ;;  %v3414_v52 = vmul.f32 %v7268_v41, %v3392_v61  ;;  %v7334_v13 = vrot.slane %v3478_v8, %v6213_v25  ;;  %p5329_p5 = scmp.lt.s32.totalorder %s5327_s14, %s5321_s18 }
 0x9c9   : > { %3663 = vmatmul.mubr.bf16.gmra.mrb[72].mxu0 %v3460_v51  ;;  %v3415_v47 = vmul.f32 %v7268_v41, %v3393_v9  ;;  %v3436_v32 = vadd.f32 %v7274_v7, %v3414_v52  ;;  %v7337_v41 = vrot.slane %v3478_v8, %v6215_v26  ;;  %p5330_p7 = por %p5329_p5, %p5328_p0 }
 0x9ca   : > { %3672 = vmatprep.mubr.bf16.mxu0 %v5478_v45 }
 0x9cb   : > { %v3437_v56 = vadd.f32 %v7274_v7, %v3415_v47  ;;  %v3452_v43 = vmax.f32 %v3436_v32, 0.0  ;;  %p5331_p8 = pnand %p5330_p7, %p5324_p9 }
 0x9cd   : > { %v3453_v57 = vmax.f32 %v3437_v56, 0.0 }
 0x9cf   : > { %v3461_v23 = vpack.c.bf16 %v3453_v57, %v3452_v43 }
 0x9d1   : > { %3673 = vmatmul.mubr.bf16.gmra.mrb[76].mxu0 %v3461_v23 }
 0xa68   : > { %v3604_v53 = vpop.f32.mrb[48].mxu0 }
 0xa69   : > { %v7340_v45 = vadd.f32 %v3604_v53, %v7334_v13  ;;  %v3606_v7 = vpop.f32.mrb[49].mxu0 }
 0xa6a   : > { %v3607_v30 = vadd.f32 %v3606_v7, %v7337_v41  ;;  %v3608_v38 = vpop.f32.mrb[50].mxu0  ;;  %v3829_v7 = vld [vmem:[%s5907_s17 + $0x10] sm:$0xff] }
 0xa6b   : > { %v4343_v28 = vclamps-f32 %v7340_v45, 20.0  ;;  %v7345_v1 = vadd.f32 %v3608_v38, %v7334_v13  ;;  %v3610_v27 = vpop.f32.mrb[51].mxu0 }
 0xa6c   : > { %v4359_v25 = vclamps-f32 %v3607_v30, 20.0  ;;  %v3611_v6 = vadd.f32 %v3610_v27, %v7337_v41 }
 0xa6d   : > { %3875 = vst [vmem:[%s7349_s9] sm:$0xff] %v4343_v28  ;;  %v4344_v26 = vclamps-f32 %v7345_v1, 20.0 }
 0xa6e   : > { %v3763_v21 = vmin.f32 %v4359_v25, 2.0  ;;  %3891 = vst [vmem:[%s7354_s3] sm:$0xff] %v4359_v25  ;;  %v4360_v42 = vclamps-f32 %v3611_v6, 20.0 }
 0xa6f   : > { %3876 = vst [vmem:[%s7349_s9 + $0x8] sm:$0xff] %v4344_v26 }
 0xa70   : > { %v3779_v0 = vmul.f32 0.5, %v3763_v21  ;;  %v3764_v48 = vmin.f32 %v4360_v42, 2.0  ;;  %3892 = vst [vmem:[%s7354_s3 + $0x8] sm:$0xff] %v4360_v42 }
 0xa72   : > { %v3795_v60 = vmul.f32 1.442695, %v3779_v0  ;;  %v3780_v37 = vmul.f32 0.5, %v3764_v48  ;;  %v3614_v15 = vpop.f32.mrb[52].mxu0 }
 0xa73   : > { %v7362_v40 = vadd.f32 %v3614_v15, %v7334_v13  ;;  %v3616_v22 = vpop.f32.mrb[53].mxu0 }
 0xa74   : > { %5057 = vpow2.f32 %v3795_v60  ;;  %v3797_v5 = vmul.f32 1.442695, %v3780_v37  ;;  %v3617_v35 = vadd.f32 %v3616_v22, %v7337_v41  ;;  %v3618_v17 = vpop.f32.mrb[54].mxu0 }
 0xa75   : > { %v4345_v4 = vclamps-f32 %v7362_v40, 20.0  ;;  %v7367_v24 = vadd.f32 %v3618_v17, %v7334_v13  ;;  %v3620_v16 = vpop.f32.mrb[55].mxu0 }
 0xa76   : > { %5059 = vpow2.f32 %v3797_v5  ;;  %v4361_v12 = vclamps-f32 %v3617_v35, 20.0  ;;  %v3621_v50 = vadd.f32 %v3620_v16, %v7337_v41 }
 0xa77   : > { %3877 = vst [vmem:[%s7349_s9 + $0x10] sm:$0xff] %v4345_v4  ;;  %v4346_v59 = vclamps-f32 %v7367_v24, 20.0 }
 0xa78   : > { %v3765_v39 = vmin.f32 %v4361_v12, 2.0  ;;  %3893 = vst [vmem:[%s7354_s3 + $0x10] sm:$0xff] %v4361_v12  ;;  %v4362_v33 = vclamps-f32 %v3621_v50, 20.0 }
 0xa79   : > { %3878 = vst [vmem:[%s7349_s9 + $0x18] sm:$0xff] %v4346_v59 }
 0xa7a   : > { %v3781_v31 = vmul.f32 0.5, %v3765_v39  ;;  %v3766_v10 = vmin.f32 %v4362_v33, 2.0  ;;  %3894 = vst [vmem:[%s7354_s3 + $0x18] sm:$0xff] %v4362_v33 }
 0xa7b   : > { %v3624_v18 = vpop.f32.mrb[56].mxu0 }
 0xa7c   : > { %v3799_v20 = vmul.f32 1.442695, %v3781_v31  ;;  %v3782_v14 = vmul.f32 0.5, %v3766_v10  ;;  %v7381_v44 = vadd.f32 %v3624_v18, %v7334_v13  ;;  %v3626_v36 = vpop.f32.mrb[57].mxu0  ;;  %v3831_v10 = vld [vmem:[%s5907_s17 + $0x20] sm:$0xff] }
 0xa7d   : > { %v3627_v29 = vadd.f32 %v3626_v36, %v7337_v41  ;;  %v3628_v2 = vpop.f32.mrb[58].mxu0 }
 0xa7e   : > { %v5058_v46 = vpop.eup %5057  ;;  %5061 = vpow2.f32 %v3799_v20  ;;  %v3801_v19 = vmul.f32 1.442695, %v3782_v14  ;;  %v4347_v58 = vclamps-f32 %v7381_v44, 20.0  ;;  %v7387_v11 = vadd.f32 %v3628_v2, %v7334_v13  ;;  %v3630_v62 = vpop.f32.mrb[59].mxu0 }
 0xa7f   : > { %v3843_v34 = vmul.f32 %v5058_v46, %v3827_v54  ;;  %v4363_v3 = vclamps-f32 %v3627_v29, 20.0  ;;  %v3631_v49 = vadd.f32 %v3630_v62, %v7337_v41  ;;  %v3832_v29 = vld [vmem:[%s5907_s17 + $0x28] sm:$0xff] }
 0xa80   : > { %v5060_v61 = vpop.eup %5059  ;;  %5063 = vpow2.f32 %v3801_v19  ;;  %3879 = vst [vmem:[%s7349_s9 + $0x20] sm:$0xff] %v4347_v58  ;;  %v4348_v63 = vclamps-f32 %v7387_v11, 20.0 }
 0xa81   : > { %v3859_v51 = vadd.f32 %v4343_v28, %v3843_v34  ;;  %v3844_v9 = vmul.f32 %v5060_v61, %v3828_v55  ;;  %v3767_v52 = vmin.f32 %v4363_v3, 2.0  ;;  %3895 = vst [vmem:[%s7354_s3 + $0x20] sm:$0xff] %v4363_v3  ;;  %v4364_v47 = vclamps-f32 %v3631_v49, 20.0 }
 0xa82   : > { %3880 = vst [vmem:[%s7349_s9 + $0x28] sm:$0xff] %v4348_v63 }
 0xa83   : > { %3907 = vst [vmem:[%s7399_s15] sm:$0xff] %v3859_v51  ;;  %v3860_v32 = vadd.f32 %v4344_v26, %v3844_v9  ;;  %v3783_v56 = vmul.f32 0.5, %v3767_v52  ;;  %v3768_v43 = vmin.f32 %v4364_v47, 2.0  ;;  %3896 = vst [vmem:[%s7354_s3 + $0x28] sm:$0xff] %v4364_v47  ;;  %v3830_v26 = vld [vmem:[%s5907_s17 + $0x18] sm:$0xff] }
 0xa84   : > { %v3634_v57 = vpop.f32.mrb[60].mxu0 }
 0xa85   : > { %3908 = vst [vmem:[%s7399_s15 + $0x8] sm:$0xff] %v3860_v32  ;;  %v3803_v23 = vmul.f32 1.442695, %v3783_v56  ;;  %v3784_v8 = vmul.f32 0.5, %v3768_v43  ;;  %v7407_v53 = vadd.f32 %v3634_v57, %v7334_v13  ;;  %v3636_v45 = vpop.f32.mrb[61].mxu0 }
 0xa86   : > { %v3637_v30 = vadd.f32 %v3636_v45, %v7337_v41  ;;  %v3638_v38 = vpop.f32.mrb[62].mxu0 }
 0xa87   : > { %5065 = vpow2.f32 %v3803_v23  ;;  %v3805_v28 = vmul.f32 1.442695, %v3784_v8  ;;  %v4349_v1 = vclamps-f32 %v7407_v53, 20.0  ;;  %v7413_v27 = vadd.f32 %v3638_v38, %v7334_v13  ;;  %v3640_v25 = vpop.f32.mrb[63].mxu0  ;;  %v3833_v8 = vld [vmem:[%s5907_s17 + $0x30] sm:$0xff]  ;;  %v3834_v38 = vld [vmem:[%s5907_s17 + $0x38] sm:$0xff] }
 0xa88   : > { %v5062_v6 = vpop.eup %5061  ;;  %v4365_v21 = vclamps-f32 %v3637_v30, 20.0  ;;  %v3641_v42 = vadd.f32 %v3640_v25, %v7337_v41 }
 0xa89   : > { %v3845_v0 = vmul.f32 %v5062_v6, %v3829_v7  ;;  %5067 = vpow2.f32 %v3805_v28  ;;  %3881 = vst [vmem:[%s7349_s9 + $0x30] sm:$0xff] %v4349_v1  ;;  %v4350_v48 = vclamps-f32 %v7413_v27, 20.0 }
 0xa8a   : > { %v5064_v60 = vpop.eup %5063  ;;  %v3769_v37 = vmin.f32 %v4365_v21, 2.0  ;;  %3897 = vst [vmem:[%s7354_s3 + $0x30] sm:$0xff] %v4365_v21  ;;  %v4366_v15 = vclamps-f32 %v3641_v42, 20.0 }
 0xa8b   : > { %v3861_v22 = vadd.f32 %v4345_v4, %v3845_v0  ;;  %v3846_v5 = vmul.f32 %v5064_v60, %v3830_v26  ;;  %3882 = vst [vmem:[%s7349_s9 + $0x38] sm:$0xff] %v4350_v48 }
 0xa8c   : > { %v3785_v35 = vmul.f32 0.5, %v3769_v37  ;;  %v3770_v17 = vmin.f32 %v4366_v15, 2.0  ;;  %3898 = vst [vmem:[%s7354_s3 + $0x38] sm:$0xff] %v4366_v15  ;;  %v3644_v16 = vpop.f32.mrb[64].mxu0 }
 0xa8d   : > { %3909 = vst [vmem:[%s7399_s15 + $0x10] sm:$0xff] %v3861_v22  ;;  %v3862_v12 = vadd.f32 %v4346_v59, %v3846_v5  ;;  %v7432_v50 = vadd.f32 %v3644_v16, %v7334_v13  ;;  %v3646_v40 = vpop.f32.mrb[65].mxu0 }
 0xa8e   : > { %v3807_v4 = vmul.f32 1.442695, %v3785_v35  ;;  %v3786_v39 = vmul.f32 0.5, %v3770_v17  ;;  %v3647_v33 = vadd.f32 %v3646_v40, %v7337_v41  ;;  %v3648_v31 = vpop.f32.mrb[66].mxu0 }
 0xa8f   : > { %3910 = vst [vmem:[%s7399_s15 + $0x18] sm:$0xff] %v3862_v12  ;;  %v4351_v18 = vclamps-f32 %v7432_v50, 20.0  ;;  %v7439_v54 = vadd.f32 %v3648_v31, %v7334_v13  ;;  %v3650_v24 = vpop.f32.mrb[67].mxu0 }
 0xa90   : > { %5069 = vpow2.f32 %v3807_v4  ;;  %v3809_v59 = vmul.f32 1.442695, %v3786_v39  ;;  %v4367_v20 = vclamps-f32 %v3647_v33, 20.0  ;;  %v3651_v14 = vadd.f32 %v3650_v24, %v7337_v41  ;;  %v3835_v4 = vld [vmem:[%s5907_s17 + $0x40] sm:$0xff] }
 0xa91   : > { %v5066_v36 = vpop.eup %5065  ;;  %3883 = vst [vmem:[%s7349_s9 + $0x40] sm:$0xff] %v4351_v18  ;;  %v4352_v2 = vclamps-f32 %v7439_v54, 20.0 }
 0xa92   : > { %v3847_v46 = vmul.f32 %v5066_v36, %v3831_v10  ;;  %5071 = vpow2.f32 %v3809_v59  ;;  %v3771_v55 = vmin.f32 %v4367_v20, 2.0  ;;  %3899 = vst [vmem:[%s7354_s3 + $0x40] sm:$0xff] %v4367_v20  ;;  %v4368_v19 = vclamps-f32 %v3651_v14, 20.0  ;;  %v3836_v10 = vld [vmem:[%s5907_s17 + $0x48] sm:$0xff] }
 0xa93   : > { %v5068_v62 = vpop.eup %5067  ;;  %3884 = vst [vmem:[%s7349_s9 + $0x48] sm:$0xff] %v4352_v2 }
 0xa94   : > { %v3863_v34 = vadd.f32 %v4347_v58, %v3847_v46  ;;  %v3848_v3 = vmul.f32 %v5068_v62, %v3832_v29  ;;  %v3787_v49 = vmul.f32 0.5, %v3771_v55  ;;  %v3772_v61 = vmin.f32 %v4368_v19, 2.0  ;;  %3900 = vst [vmem:[%s7354_s3 + $0x48] sm:$0xff] %v4368_v19  ;;  %v3654_v51 = vpop.f32.mrb[68].mxu0 }
 0xa95   : > { %v7455_v9 = vadd.f32 %v3654_v51, %v7334_v13  ;;  %v3656_v52 = vpop.f32.mrb[69].mxu0 }
 0xa96   : > { %3911 = vst [vmem:[%s7399_s15 + $0x20] sm:$0xff] %v3863_v34  ;;  %v3864_v47 = vadd.f32 %v4348_v63, %v3848_v3  ;;  %v3811_v32 = vmul.f32 1.442695, %v3787_v49  ;;  %v3788_v44 = vmul.f32 0.5, %v3772_v61  ;;  %v3657_v58 = vadd.f32 %v3656_v52, %v7337_v41  ;;  %v3658_v56 = vpop.f32.mrb[70].mxu0 }
 0xa97   : > { %v4353_v43 = vclamps-f32 %v7455_v9, 20.0  ;;  %v7463_v57 = vadd.f32 %v3658_v56, %v7334_v13  ;;  %v3660_v23 = vpop.f32.mrb[71].mxu0 }
 0xa98   : > { %3912 = vst [vmem:[%s7399_s15 + $0x28] sm:$0xff] %v3864_v47  ;;  %5073 = vpow2.f32 %v3811_v32  ;;  %v3813_v45 = vmul.f32 1.442695, %v3788_v44  ;;  %v4369_v11 = vclamps-f32 %v3657_v58, 20.0  ;;  %v3661_v63 = vadd.f32 %v3660_v23, %v7337_v41  ;;  %v3837_v32 = vld [vmem:[%s5907_s17 + $0x50] sm:$0xff] }
 0xa99   : > { %3885 = vst [vmem:[%s7349_s9 + $0x50] sm:$0xff] %v4353_v43  ;;  %v4354_v7 = vclamps-f32 %v7463_v57, 20.0 }
 0xa9a   : > { %v5070_v30 = vpop.eup %5069  ;;  %5075 = vpow2.f32 %v3813_v45  ;;  %v3773_v28 = vmin.f32 %v4369_v11, 2.0  ;;  %3901 = vst [vmem:[%s7354_s3 + $0x50] sm:$0xff] %v4369_v11  ;;  %v4370_v25 = vclamps-f32 %v3661_v63, 20.0 }
 0xa9b   : > { %v3849_v6 = vmul.f32 %v5070_v30, %v3833_v8  ;;  %3886 = vst [vmem:[%s7349_s9 + $0x58] sm:$0xff] %v4354_v7 }
 0xa9c   : > { %v5072_v26 = vpop.eup %5071  ;;  %v3789_v21 = vmul.f32 0.5, %v3773_v28  ;;  %v3774_v42 = vmin.f32 %v4370_v25, 2.0  ;;  %3902 = vst [vmem:[%s7354_s3 + $0x58] sm:$0xff] %v4370_v25  ;;  %v3664_v0 = vpop.f32.mrb[72].mxu0 }
 0xa9d   : > { %v3865_v60 = vadd.f32 %v4349_v1, %v3849_v6  ;;  %v3850_v37 = vmul.f32 %v5072_v26, %v3834_v38  ;;  %v7481_v15 = vadd.f32 %v3664_v0, %v7334_v13  ;;  %v3666_v22 = vpop.f32.mrb[73].mxu0 }
 0xa9e   : > { %v3815_v5 = vmul.f32 1.442695, %v3789_v21  ;;  %v3790_v35 = vmul.f32 0.5, %v3774_v42  ;;  %v3667_v17 = vadd.f32 %v3666_v22, %v7337_v41  ;;  %v3668_v16 = vpop.f32.mrb[74].mxu0 }
 0xa9f   : > { %3913 = vst [vmem:[%s7399_s15 + $0x30] sm:$0xff] %v3865_v60  ;;  %v3866_v12 = vadd.f32 %v4350_v48, %v3850_v37  ;;  %v4355_v53 = vclamps-f32 %v7481_v15, 20.0  ;;  %v7489_v1 = vadd.f32 %v3668_v16, %v7334_v13  ;;  %v3670_v40 = vpop.f32.mrb[75].mxu0 }
 0xaa0   : > { %5077 = vpow2.f32 %v3815_v5  ;;  %v3817_v39 = vmul.f32 1.442695, %v3790_v35  ;;  %v4371_v33 = vclamps-f32 %v3667_v17, 20.0  ;;  %v3671_v31 = vadd.f32 %v3670_v40, %v7337_v41 }
 0xaa1   : > { %3914 = vst [vmem:[%s7399_s15 + $0x38] sm:$0xff] %v3866_v12  ;;  %3887 = vst [vmem:[%s7349_s9 + $0x60] sm:$0xff] %v4355_v53  ;;  %v4356_v27 = vclamps-f32 %v7489_v1, 20.0 }
 0xaa2   : > { %v5074_v48 = vpop.eup %5073  ;;  %5079 = vpow2.f32 %v3817_v39  ;;  %v3775_v24 = vmin.f32 %v4371_v33, 2.0  ;;  %3903 = vst [vmem:[%s7354_s3 + $0x60] sm:$0xff] %v4371_v33  ;;  %v4372_v59 = vclamps-f32 %v3671_v31, 20.0 }
 0xaa3   : > { %v3851_v20 = vmul.f32 %v5074_v48, %v3835_v4  ;;  %3888 = vst [vmem:[%s7349_s9 + $0x68] sm:$0xff] %v4356_v27 }
 0xaa4   : > { %v5076_v14 = vpop.eup %5075  ;;  %v3791_v36 = vmul.f32 0.5, %v3775_v24  ;;  %v3776_v29 = vmin.f32 %v4372_v59, 2.0  ;;  %3904 = vst [vmem:[%s7354_s3 + $0x68] sm:$0xff] %v4372_v59  ;;  %v3674_v46 = vpop.f32.mrb[76].mxu0 }
 0xaa5   : > { %v3867_v55 = vadd.f32 %v4351_v18, %v3851_v20  ;;  %v3852_v19 = vmul.f32 %v5076_v14, %v3836_v10  ;;  %v7507_v62 = vadd.f32 %v3674_v46, %v7334_v13  ;;  %v3676_v34 = vpop.f32.mrb[77].mxu0 }
 0xaa6   : > { %v3819_v3 = vmul.f32 1.442695, %v3791_v36  ;;  %v3792_v49 = vmul.f32 0.5, %v3776_v29  ;;  %v3677_v61 = vadd.f32 %v3676_v34, %v7337_v41  ;;  %v3678_v51 = vpop.f32.mrb[78].mxu0 }
 0xaa7   : > { %3915 = vst [vmem:[%s7399_s15 + $0x40] sm:$0xff] %v3867_v55  ;;  %v3868_v50 = vadd.f32 %v4352_v2, %v3852_v19  ;;  %v4357_v18 = vclamps-f32 %v7507_v62, 20.0  ;;  %v7519_v52 = vadd.f32 %v3678_v51, %v7334_v13  ;;  %v3680_v47 = vpop.f32.mrb[79].mxu0  ;;  %v3838_v2 = vld [vmem:[%s5907_s17 + $0x58] sm:$0xff] }
 0xaa8   : > { %5081 = vpow2.f32 %v3819_v3  ;;  %v3821_v44 = vmul.f32 1.442695, %v3792_v49  ;;  %v4373_v58 = vclamps-f32 %v3677_v61, 20.0  ;;  %v3681_v56 = vadd.f32 %v3680_v47, %v7337_v41 }
 0xaa9   : > { %3916 = vst [vmem:[%s7399_s15 + $0x48] sm:$0xff] %v3868_v50  ;;  %3889 = vst [vmem:[%s7349_s9 + $0x70] sm:$0xff] %v4357_v18  ;;  %v4358_v54 = vclamps-f32 %v7519_v52, 20.0 }
 0xaaa   : > { %v5078_v13 = vpop.eup %5077  ;;  %5083 = vpow2.f32 %v3821_v44  ;;  %v3777_v41 = vmin.f32 %v4373_v58, 2.0  ;;  %3905 = vst [vmem:[%s7354_s3 + $0x70] sm:$0xff] %v4373_v58  ;;  %v4374_v23 = vclamps-f32 %v3681_v56, 20.0 }
 0xaab   : > { %v3853_v8 = vmul.f32 %v5078_v13, %v3837_v32  ;;  %3890 = vst [vmem:[%s7349_s9 + $0x78] sm:$0xff] %v4358_v54 }
 0xaac   : > { %v5080_v45 = vpop.eup %5079  ;;  %v3793_v11 = vmul.f32 0.5, %v3777_v41  ;;  %v3778_v63 = vmin.f32 %v4374_v23, 2.0  ;;  %3906 = vst [vmem:[%s7354_s3 + $0x78] sm:$0xff] %v4374_v23 }
 0xaad   : > { %5334 = shalt.err (!%p5331_p8)
}
 0xaae   : > { %s5335_s9 = scalar_lea.hbm %s7533_s5, 2048  ;;  %s5339_s1 = scalar_lea.hbm %s7788_s16, 4096 }
 0xaaf   : > { %p5336_p4 = scmp.ne.s32.totalorder %s7533_s5, %s5335_s9  ;;  %p5340_p1 = scmp.lt.u32.totalorder %s7533_s5, %s7788_s16 }
 0xab0   : > { %p5341_p11 = scmp.lt.u32.totalorder %s5339_s1, %s5335_s9  ;;  %p5343_p2 = scmp.lt.u32.totalorder %s5335_s9, %s7533_s5 }
 0xab1   : > { %p5337_p3 = pnand %p5336_p4, %p7790_p13 }
 0xab2   : > { %p5342_p12 = por %p5341_p11, %p5340_p1 }
 0xab3   : > { %p5338_p10 = pneg %p5337_p3 }
 0xab4   : > { %p5344_p6 = por %p5343_p2, %p5342_p12 }
 0xab6   : > { %p5345_p9 = pnand %p5344_p6, %p5338_p10 }
 0xab8   : > { %5348 = shalt.err (!%p5345_p9)
}
 0xab9   : > { %s5480_s18 = smov 128   ;;  %s5481_s23 = smov 8   ;;  %v3869_v30 = vadd.f32 %v4353_v43, %v3853_v8  ;;  %v3854_v38 = vmul.f32 %v5080_v45, %v3838_v2 }
 0xaba   : > { %4576 = dma.vmem_to_hbm [thread:$0]  (%p7790_p13), %s7535_s19, 2048, %s7533_s5, %s3924_s6, %s5480_s18, %s5480_s18, %s5481_s23  }
 0xabb   : > { %s7582_s14 = scalar_lea.sflag [#allocation16], %s758_s24  ;;  %s5349_s9 = scalar_lea.vmem %s7545_s29, 2048 }
 0xabc   : > { %p5350_p0 = scmp.ne.s32.totalorder %s7545_s29, %s5349_s9  ;;  %s5482_s3 = smov [#allocation15]  }
 0xabd   : > { %s5353_s11 = sshll.u32 %s5482_s3, 4  ;;  %s5354_s11 = int_to_ptr.vmem [resolvable:$false] %s5353_s11 }
 0xabe   : > { %p5351_p5 = pnand %p5350_p0, %p7790_p13  ;;  %s5355_s1 = scalar_lea.vmem %s5354_s11, 4096 }
 0xabf   : > { %p5356_p8 = scmp.lt.s32.totalorder %s7545_s29, %s5354_s11  ;;  %p5357_p4 = scmp.lt.s32.totalorder %s5355_s1, %s5349_s9 }
 0xac0   : > { %p5352_p7 = pneg %p5351_p5 }
 0xac1   : > { %p5358_p3 = por %p5357_p4, %p5356_p8 }
 0xac3   : > { %p5359_p10 = pnand %p5358_p3, %p5352_p7 }
 0xac5   : > { %5362 = shalt.err (!%p5359_p10)
}
 0xac6   : > { %s5363_s26 = scalar_lea.hbm %s7543_s7, 2048  ;;  %s5367_s19 = scalar_lea.hbm %s7789_s20, 4096 }
 0xac7   : > { %p5364_p1 = scmp.ne.s32.totalorder %s7543_s7, %s5363_s26  ;;  %p5368_p2 = scmp.lt.u32.totalorder %s7543_s7, %s7789_s20 }
 0xac8   : > { %p5369_p6 = scmp.lt.u32.totalorder %s5367_s19, %s5363_s26  ;;  %p5371_p0 = scmp.lt.u32.totalorder %s5363_s26, %s7543_s7 }
 0xac9   : > { %p5365_p11 = pnand %p5364_p1, %p7790_p13 }
 0xaca   : > { %p5370_p9 = por %p5369_p6, %p5368_p2 }
 0xacb   : > { %p5366_p12 = pneg %p5365_p11 }
 0xacc   : > { %p5372_p5 = por %p5371_p0, %p5370_p9 }
 0xace   : > { %p5373_p7 = pnand %p5372_p5, %p5366_p12 }
 0xad0   : > { %5376 = shalt.err (!%p5373_p7)
}
 0xad1   : > { %4577 = dma.vmem_to_hbm [thread:$0]  (%p7790_p13), %s7545_s29, 2048, %s7543_s7, %s7582_s14, %s5480_s18, %s5480_s18, %s5481_s23   ;;  %v3823_v9 = vmul.f32 1.442695, %v3793_v11  ;;  %v3794_v43 = vmul.f32 0.5, %v3778_v63  ;;  %v3870_v28 = vadd.f32 %v4354_v7, %v3854_v38  ;;  %v5082_v26 = vpop.eup %5081 }
 0xad2   : > { %3917 = vst [vmem:[%s7399_s15 + $0x50] sm:$0xff] %v3869_v30  ;;  %v3839_v25 = vld [vmem:[%s5907_s17 + $0x60] sm:$0xff]  ;;  %v3840_v21 = vld [vmem:[%s5907_s17 + $0x68] sm:$0xff]  ;;  %v5084_v0 = vpop.eup %5083  ;;  %v3841_v7 = vld [vmem:[%s5907_s17 + $0x70] sm:$0xff]  ;;  %s3979_s29 = sshll.u32 %s7399_s15, 4  ;;  %s7791_s22 = sld [smem:[#allocation48_spill]]  ;;  %s7635_s29 = int_to_ptr.vmem [resolvable:$true] %s3979_s29 }
 0xad3   : > { %5085 = vpow2.f32 %v3823_v9  ;;  %v3825_v6 = vmul.f32 1.442695, %v3794_v43  ;;  %3918 = vst [vmem:[%s7399_s15 + $0x58] sm:$0xff] %v3870_v28  ;;  %v3855_v42 = vmul.f32 %v5082_v26, %v3839_v25  ;;  %v3856_v37 = vmul.f32 %v5084_v0, %v3840_v21  ;;  %v3842_v5 = vld [vmem:[%s5907_s17 + $0x78] sm:$0xff]  ;;  %s5377_s17 = scalar_lea.vmem %s7635_s29, 2048  ;;  %s5483_s3 = smov [#allocation17]  }
 0xad4   : > { %p5378_p8 = scmp.ne.s32.totalorder %s7635_s29, %s5377_s17  ;;  %s5381_s11 = sshll.u32 %s5483_s3, 4  ;;  %s5382_s11 = int_to_ptr.vmem [resolvable:$false] %s5381_s11 }
 0xad5   : > { %5087 = vpow2.f32 %v3825_v6  ;;  %v3871_v60 = vadd.f32 %v4355_v53, %v3855_v42  ;;  %v3872_v57 = vadd.f32 %v4356_v27, %v3856_v37  ;;  %s5383_s1 = scalar_lea.vmem %s5382_s11, 4096  ;;  %p5384_p10 = scmp.lt.s32.totalorder %s7635_s29, %s5382_s11 }
 0xad6   : > { %p5379_p4 = pnand %p5378_p8, %p7790_p13  ;;  %p5385_p1 = scmp.lt.s32.totalorder %s5383_s1, %s5377_s17 }
 0xad7   : > { %3919 = vst [vmem:[%s7399_s15 + $0x60] sm:$0xff] %v3871_v60  ;;  %3920 = vst [vmem:[%s7399_s15 + $0x68] sm:$0xff] %v3872_v57 }
 0xad8   : > { %s7633_s9 = scalar_lea.hbm %s7791_s22, %s7511_s2  ;;  %p5380_p3 = pneg %p5379_p4 }
 0xad9   : > { %p5386_p11 = por %p5385_p1, %p5384_p10 }
 0xadb   : > { %p5387_p12 = pnand %p5386_p11, %p5380_p3 }
 0xadd   : > { %v5086_v22 = vpop.eup %5085 }
 0xade   : > { %v3857_v35 = vmul.f32 %v5086_v22, %v3841_v7 }
 0xadf   : > { %v5088_v17 = vpop.eup %5087 }
 0xae0   : > { %v3873_v16 = vadd.f32 %v4357_v18, %v3857_v35  ;;  %v3858_v15 = vmul.f32 %v5088_v17, %v3842_v5 }
 0xae2   : > { %3921 = vst [vmem:[%s7399_s15 + $0x70] sm:$0xff] %v3873_v16  ;;  %v3874_v12 = vadd.f32 %v4358_v54, %v3858_v15 }
 0xae4   : > { %3922 = vst [vmem:[%s7399_s15 + $0x78] sm:$0xff] %v3874_v12 }
 0xae5   : > { %5390 = shalt.err (!%p5387_p12)
}
 0xae6   : > { %s5391_s15 = scalar_lea.hbm %s7633_s9, 2048  ;;  %s5395_s0 = scalar_lea.hbm %s7791_s22, 4096 }
 0xae7   : > { %p5392_p2 = scmp.ne.s32.totalorder %s7633_s9, %s5391_s15  ;;  %p5396_p0 = scmp.lt.u32.totalorder %s7633_s9, %s7791_s22 }
 0xae8   : > { %p5397_p5 = scmp.lt.u32.totalorder %s5395_s0, %s5391_s15  ;;  %p5399_p8 = scmp.lt.u32.totalorder %s5391_s15, %s7633_s9 }
 0xae9   : > { %p5393_p6 = pnand %p5392_p2, %p7790_p13 }
 0xaea   : > { %p5398_p7 = por %p5397_p5, %p5396_p0 }
 0xaeb   : > { %p5394_p9 = pneg %p5393_p6 }
 0xaec   : > { %p5400_p4 = por %p5399_p8, %p5398_p7 }
 0xaee   : > { %p5401_p3 = pnand %p5400_p4, %p5394_p9 }
 0xaf0   : > { %5404 = shalt.err (!%p5401_p3)
}
 0xaf1   : > { %4578 = dma.vmem_to_hbm [thread:$0]  (%p7790_p13), %s7635_s29, 2048, %s7633_s9, %s7582_s14, %s5480_s18, %s5480_s18, %s5481_s23  }
 0xaf2 PF: > { %s7792_s5 = sld [smem:[#allocation28_spill]]  ;;  %s3994_s6 = sand.u32 1, %s5451_s4  }
 0xaf3   : > { %p7794_p1 = scmp.ge.s32.totalorder %s5463_s25, 2  ;;  %s3995_s7 = scalar_lea.sflag [#allocation4], %s3994_s6 }
 0xaf8   : > { %p7793_p10 = scmp.ne.s32.totalorder %s7792_s5, 0 }
 0xafa   : > { %p4606_p11 = pnand %p7794_p1, %p7793_p10 }
 0xafc   : > { %5442 = dma.done.wait (!%p4606_p11), %s3995_s7, 2048  }
 0xafd   : > { %5444 = vsyncadd (!%p4606_p11), %s3995_s7, 4294965248  ;;  %s7795_s28 = sadd.s32 4294967294, %s5463_s25  }
 0xafe   : > { %s4003_s21 = sand.u32 1, %s7795_s28  }
 0xaff   : > { %s4004_s17 = scalar_lea.sflag [#allocation16], %s4003_s21 }
 0xb00   : > { %5446 = dma.done.wait (!%p4606_p11), %s4004_s17, 4096  }
 0xb01   : > { %5448 = vsyncadd (!%p4606_p11), %s4004_s17, 4294963200  ;;  %s7796_s25 = sld [smem:[#allocation26_spill]]  ;;  %s7797_s18 = sld [smem:[#allocation25_spill]] }
 0xb02   : > { %s7798_s24 = sld [smem:[#allocation27_spill]]  ;;  %s7799_s4 = smov %s5455_s30 }
 0xb07   : > { %p45_p13 = scmp.ge.s32.totalorder %s7796_s25, 4   ;;  %s7800_s30 = smov %s7797_s18 }
 0xb09   :  { %47 = sbr.rel (!%p45_p13) target bundleno = 32 (0x20), region = 214 }
 0xb10   :  { %4018 = vsyncpa [#allocation3], 1 }
 0xb11   :  { %4020 = vsyncpa [#allocation3 + $0x1], 1 }
 0xb12   :  { %4021 = vsyncpa [#allocation6], 1 }
 0xb13   :  { %4023 = vsyncpa [#allocation6 + $0x1], 1 }
 0xb14   :  { %4024 = vsyncpa [#allocation9], 1 }
 0xb15   :  { %4025 = vsyncpa [#allocation12], 1 }
 0xb16   :  { %4026 = vsyncpa [#allocation4], 1 }
 0xb17   :  { %4028 = vsyncpa [#allocation4 + $0x1], 1 }
 0xb18   :  { %4029 = vsyncpa [#allocation16], 1 }
 0xb19   :  { %4031 = vsyncpa [#allocation16 + $0x1], 1 }

</bundles_post_ra>
